<compile_context>
chip_gen: v5e
topology: v5e:2x2
jax: 0.10.0
libtpu: 0.0.40
codegen_flags: <defaults>
</compile_context>

<pallas_src>
import functools

import jax
import jax.numpy as jnp
from jax.experimental import pallas as pl
from jax.experimental.pallas import tpu as pltpu


# ----------------------------------------------------------------------------
# Kernels
# ----------------------------------------------------------------------------
def _mlp3_kernel(x_ref, w1_ref, b1_ref, w2_ref, b2_ref, w3t_ref, b3_ref, o_ref):
    # Linear(input_dim, 512) + ReLU   (Dropout(p=0) == identity)
    # x is ideally already bf16 (astype is then a no-op); accumulate in f32.
    x_bf = x_ref[...].astype(jnp.bfloat16)
    h1 = jnp.dot(x_bf, w1_ref[...], preferred_element_type=jnp.float32)
    h1 = jnp.maximum(h1 + b1_ref[...], 0.0)           # f32 elementwise (v5e: no bf16 VPU)
    # Linear(512, 32) + ReLU
    h2 = jnp.dot(h1.astype(jnp.bfloat16), w2_ref[...],
                 preferred_element_type=jnp.float32)
    h2 = jnp.maximum(h2 + b2_ref[...], 0.0)
    # Linear(32, 1) + Sigmoid  -> VPU mul + lane reduction (avoids N=1 MXU dot)
    z = jnp.sum(h2 * w3t_ref[...], axis=-1, keepdims=True) + b3_ref[...]
    o_ref[...] = jax.nn.sigmoid(z).astype(o_ref.dtype)


def _mlp2_kernel(x_ref, w1_ref, b1_ref, w2t_ref, b2_ref, o_ref):
    # Linear(input_dim, 512) + ReLU   (Dropout(p=0) == identity)
    x_bf = x_ref[...].astype(jnp.bfloat16)
    h1 = jnp.dot(x_bf, w1_ref[...], preferred_element_type=jnp.float32)
    h1 = jnp.maximum(h1 + b1_ref[...], 0.0)
    # Linear(512, 1) + Sigmoid -> VPU mul + lane reduction
    z = jnp.sum(h1 * w2t_ref[...], axis=-1, keepdims=True) + b2_ref[...]
    o_ref[...] = jax.nn.sigmoid(z).astype(o_ref.dtype)


# ----------------------------------------------------------------------------
# Tiling
# ----------------------------------------------------------------------------
def _round_up(n, m):
    return ((n + m - 1) // m) * m


def _pick_bm(B):
    """Batch tile: fill the MXU, stay a multiple of 8 (sublane granularity),
    reach ~85% of HBM roofline (>=512-row tiles for mid batches), and keep
    the grid >= 2 steps for 128 < B so "parallel" shards across v7x's 2 TCs."""
    if B <= 128:
        return B                                          # single full-extent block
    if B <= 1024:
        return min(512, _round_up(pl.cdiv(B, 2), 8))      # >= 2 grid steps
    if B < 4096:
        return 512
    return 1024


# ----------------------------------------------------------------------------
# One-time parameter preparation (hoisted out of the jitted forward)
# ----------------------------------------------------------------------------
def prepare_learner_params(params, layers=3):
    """Cast the big weights to bf16 and pre-transpose the final weight to a
    row vector ONCE.  Doing this inside the jitted forward re-ran a convert /
    transpose kernel (and ~MiBs of HBM traffic) on every call."""
    if layers == 3:
        w1, b1, w2, b2, w3, b3 = params
        return (jnp.asarray(w1, jnp.bfloat16), jnp.asarray(b1, jnp.float32),
                jnp.asarray(w2, jnp.bfloat16), jnp.asarray(b2, jnp.float32),
                jnp.asarray(w3, jnp.float32).T,            # (1, 32) row vector
                jnp.asarray(b3, jnp.float32))
    elif layers == 2:
        w1, b1, w2, b2 = params
        return (jnp.asarray(w1, jnp.bfloat16), jnp.asarray(b1, jnp.float32),
                jnp.asarray(w2, jnp.float32).T,            # (1, 512) row vector
                jnp.asarray(b2, jnp.float32))
    raise ValueError("layers must be 2 or 3")


# ----------------------------------------------------------------------------
# Forward wrapper
# ----------------------------------------------------------------------------
@functools.partial(jax.jit, static_argnames=("layers",))
def learner_forward(x, prepared_params, layers=3):
    """Pallas forward of Learner.

    x: (B, input_dim), ideally bf16 (halves the HBM-bound activation read on
       v6e/v7x); f32 also accepted (kernel casts in-VMEM).
    prepared_params: output of prepare_learner_params (pre-cast / transposed).
    Returns (B, 1) float32 probabilities.
    """
    B, D = x.shape
    bm = _pick_bm(B)
    grid = (pl.cdiv(B, bm),)

    def resident(arr):
        shape = arr.shape
        return pl.BlockSpec(shape, lambda i: (0,) * len(shape))

    if layers == 3:
        kernel = _mlp3_kernel
        weight_args = prepared_params
        flops = 2 * B * (D * 512 + 512 * 32 + 32)
    elif layers == 2:
        kernel = _mlp2_kernel
        weight_args = prepared_params
        flops = 2 * B * (D * 512 + 512)
    else:
        raise ValueError("layers must be 2 or 3")

    in_specs = [pl.BlockSpec((bm, D), lambda i: (i, 0))]
    in_specs += [resident(a) for a in weight_args]

    x_itemsize = jnp.dtype(x.dtype).itemsize
    param_bytes = sum(int(a.size) * a.dtype.itemsize for a in weight_args)

    # VMEM budget: x double-buffer + out double-buffer + params (counted twice
    # in case the pipeline double-buffers the resident blocks) + f32/bf16
    # intermediates + small headroom.  Capped at 48 MiB: safe below v7x's
    # 64 MiB physical VMEM and trivially within v5e/v6e's 128 MiB.
    vmem_needed = (2 * bm * D * x_itemsize + 2 * bm * 4 + 2 * param_bytes
                   + 3 * bm * 512 * 4 + (4 << 20))
    vmem_limit = int(min(max(vmem_needed, 24 << 20), 48 << 20))

    cost = pl.CostEstimate(
        flops=flops,
        transcendentals=2 * B,   # sigmoid = exp + reciprocal per row
        bytes_accessed=B * D * x_itemsize + param_bytes + B * 4,
    )

    return pl.pallas_call(
        kernel,
        out_shape=jax.ShapeDtypeStruct((B, 1), jnp.float32),
        grid_spec=pltpu.PrefetchScalarGridSpec(
            num_scalar_prefetch=0,
            grid=grid,
            in_specs=in_specs,
            out_specs=pl.BlockSpec((bm, 1), lambda i: (i, 0)),
        ),
        compiler_params=pltpu.CompilerParams(
            dimension_semantics=("parallel",),
            vmem_limit_bytes=vmem_limit,
        ),
        cost_estimate=cost,
    )(x, *weight_args)


# ----------------------------------------------------------------------------
# Deterministic parameter init (matches nn.init.xavier_normal_ on weights,
# PyTorch default uniform(-1/sqrt(fan_in), 1/sqrt(fan_in)) on biases).
# ----------------------------------------------------------------------------
def init_learner_params(key, layers=3, input_dim=2048):
    if layers == 3:
        dims = [(input_dim, 512), (512, 32), (32, 1)]
    elif layers == 2:
        dims = [(input_dim, 512), (512, 1)]
    else:
        raise ValueError("layers must be 2 or 3")

    params = []
    for (fan_in, fan_out) in dims:
        key, kw, kb = jax.random.split(key, 3)
        std = (2.0 / (fan_in + fan_out)) ** 0.5
        w = std * jax.random.normal(kw, (fan_in, fan_out), dtype=jnp.float32)
        bound = 1.0 / (fan_in ** 0.5)
        b = jax.random.uniform(kb, (1, fan_out), dtype=jnp.float32,
                               minval=-bound, maxval=bound)
        params.extend([w, b])
    return tuple(params)


def reference_forward(x, params, layers=3):
    """Pure-JAX f32 reference for correctness checking."""
    if layers == 3:
        w1, b1, w2, b2, w3, b3 = params
        h = jnp.maximum(x @ w1 + b1, 0.0)
        h = jnp.maximum(h @ w2 + b2, 0.0)
        return jax.nn.sigmoid(h @ w3 + b3)
    else:
        w1, b1, w2, b2 = params
        h = jnp.maximum(x @ w1 + b1, 0.0)
        return jax.nn.sigmoid(h @ w2 + b2)


if __name__ == "__main__":
    key = jax.random.PRNGKey(0)
    kx, kx2, kp2, kp3 = jax.random.split(key, 4)

    input_dim = 2048  # module default
    x_small_f32 = jax.random.normal(kx, (8, input_dim), dtype=jnp.float32)
    x_small = x_small_f32.astype(jnp.bfloat16)            # producer supplies bf16
    # Exercises the >=2-step grid + partial last block (300 -> bm=152, grid=2).
    x_tiled_f32 = jax.random.normal(kx2, (300, input_dim), dtype=jnp.float32)
    x_tiled = x_tiled_f32.astype(jnp.bfloat16)

    params3 = init_learner_params(kp3, layers=3, input_dim=input_dim)
    params2 = init_learner_params(kp2, layers=2, input_dim=input_dim)
    prep3 = prepare_learner_params(params3, layers=3)     # one-time, outside jit
    prep2 = prepare_learner_params(params2, layers=2)

    ok = True
    cases = [
        (3, prep3, params3, x_small),       # bf16 x, single-block grid
        (2, prep2, params2, x_small),       # 2-layer head
        (3, prep3, params3, x_tiled),       # bf16 x, 2-step grid + partial block
        (3, prep3, params3, x_small_f32),   # f32 x fallback (in-kernel cast)
    ]
    for layers, prep, raw, xin in cases:
        y = learner_forward(xin, prep, layers=layers)
        jax.block_until_ready(y)
        y_ref = reference_forward(xin.astype(jnp.float32), raw, layers=layers)
        assert y.shape == (xin.shape[0], 1), y.shape
        # bf16 MXU inputs for the big matmuls -> loosened tolerance vs f32 ref.
        if not jnp.allclose(y, y_ref, atol=2e-2, rtol=2e-2):
            ok = False

    if ok:
        print("KERNEL_OK")
</pallas_src>

<mosaic_0001>
module attributes {stable_mosaic.version = 11 : i64} {
  func.func @_mlp3_kernel(%arg0: i32, %arg1: memref<8x2048xbf16, #tpu.memory_space<vmem>>, %arg2: memref<2048x512xbf16, #tpu.memory_space<vmem>>, %arg3: memref<1x512xf32, #tpu.memory_space<vmem>>, %arg4: memref<512x32xbf16, #tpu.memory_space<vmem>>, %arg5: memref<1x32xf32, #tpu.memory_space<vmem>>, %arg6: memref<1x32xf32, #tpu.memory_space<vmem>>, %arg7: memref<1x1xf32, #tpu.memory_space<vmem>>, %arg8: memref<8x1xf32, #tpu.memory_space<vmem>>) attributes {dimension_semantics = [#tpu.dimension_semantics<parallel>], iteration_bounds = array<i64: 1>, scalar_prefetch = 0 : i64, scratch_operands = 0 : i64, tpu.core_type = #tpu.core_type<tc>, window_params = [{transform_indices = @transform_0, window_bounds = array<i64: 8, 2048>}, {pipeline_mode = #tpu.pipeline_mode<synchronous>, transform_indices = @transform_1, window_bounds = array<i64: 2048, 512>}, {pipeline_mode = #tpu.pipeline_mode<synchronous>, transform_indices = @transform_2, window_bounds = array<i64: 1, 512>}, {pipeline_mode = #tpu.pipeline_mode<synchronous>, transform_indices = @transform_3, window_bounds = array<i64: 512, 32>}, {pipeline_mode = #tpu.pipeline_mode<synchronous>, transform_indices = @transform_4, window_bounds = array<i64: 1, 32>}, {pipeline_mode = #tpu.pipeline_mode<synchronous>, transform_indices = @transform_5, window_bounds = array<i64: 1, 32>}, {pipeline_mode = #tpu.pipeline_mode<synchronous>, transform_indices = @transform_6, window_bounds = array<i64: 1, 1>}, {transform_indices = @transform_7, window_bounds = array<i64: 8, 1>}]} {
    %c0 = arith.constant 0 : index
    %c0_0 = arith.constant 0 : index
    %0 = vector.load %arg1[%c0, %c0_0] : memref<8x2048xbf16, #tpu.memory_space<vmem>>, vector<8x2048xbf16>
    %c0_1 = arith.constant 0 : index
    %c0_2 = arith.constant 0 : index
    %1 = vector.load %arg2[%c0_1, %c0_2] : memref<2048x512xbf16, #tpu.memory_space<vmem>>, vector<2048x512xbf16>
    %cst = arith.constant dense<0.000000e+00> : vector<8x512xf32>
    %2 = tpu.matmul %0, %1, %cst {dimension_numbers = #tpu.dot_dimension_numbers<[1], [0], [0], [1], [0, 0, 1, 1], [], []>} : vector<8x2048xbf16>, vector<2048x512xbf16>, vector<8x512xf32> -> vector<8x512xf32>
    %c0_3 = arith.constant 0 : index
    %c0_4 = arith.constant 0 : index
    %3 = vector.load %arg3[%c0_3, %c0_4] : memref<1x512xf32, #tpu.memory_space<vmem>>, vector<1x512xf32>
    %4 = vector.broadcast %3 : vector<1x512xf32> to vector<8x512xf32>
    %5 = arith.addf %2, %4 : vector<8x512xf32>
    %cst_5 = arith.constant 0.000000e+00 : f32
    %6 = vector.broadcast %cst_5 : f32 to vector<8x512xf32>
    %7 = arith.maximumf %5, %6 : vector<8x512xf32>
    %8 = arith.truncf %7 : vector<8x512xf32> to vector<8x512xbf16>
    %c0_6 = arith.constant 0 : index
    %c0_7 = arith.constant 0 : index
    %9 = vector.load %arg4[%c0_6, %c0_7] : memref<512x32xbf16, #tpu.memory_space<vmem>>, vector<512x32xbf16>
    %cst_8 = arith.constant dense<0.000000e+00> : vector<8x32xf32>
    %10 = tpu.matmul %8, %9, %cst_8 {dimension_numbers = #tpu.dot_dimension_numbers<[1], [0], [0], [1], [0, 0, 1, 1], [], []>} : vector<8x512xbf16>, vector<512x32xbf16>, vector<8x32xf32> -> vector<8x32xf32>
    %c0_9 = arith.constant 0 : index
    %c0_10 = arith.constant 0 : index
    %11 = vector.load %arg5[%c0_9, %c0_10] : memref<1x32xf32, #tpu.memory_space<vmem>>, vector<1x32xf32>
    %12 = vector.broadcast %11 : vector<1x32xf32> to vector<8x32xf32>
    %13 = arith.addf %10, %12 : vector<8x32xf32>
    %cst_11 = arith.constant 0.000000e+00 : f32
    %14 = vector.broadcast %cst_11 : f32 to vector<8x32xf32>
    %15 = arith.maximumf %13, %14 : vector<8x32xf32>
    %c0_12 = arith.constant 0 : index
    %c0_13 = arith.constant 0 : index
    %16 = vector.load %arg6[%c0_12, %c0_13] : memref<1x32xf32, #tpu.memory_space<vmem>>, vector<1x32xf32>
    %17 = vector.broadcast %16 : vector<1x32xf32> to vector<8x32xf32>
    %18 = arith.mulf %15, %17 : vector<8x32xf32>
    %cst_14 = arith.constant dense<0.000000e+00> : vector<8xf32>
    %19 = vector.multi_reduction <add>, %18, %cst_14 [1] : vector<8x32xf32> to vector<8xf32>
    %20 = vector.shape_cast %19 : vector<8xf32> to vector<8x1xf32>
    %c0_15 = arith.constant 0 : index
    %c0_16 = arith.constant 0 : index
    %21 = vector.load %arg7[%c0_15, %c0_16] : memref<1x1xf32, #tpu.memory_space<vmem>>, vector<1x1xf32>
    %22 = vector.broadcast %21 : vector<1x1xf32> to vector<8x1xf32>
    %23 = arith.addf %20, %22 : vector<8x1xf32>
    %24 = arith.negf %23 : vector<8x1xf32>
    %25 = math.exp %24 : vector<8x1xf32>
    %cst_17 = arith.constant 1.000000e+00 : f32
    %26 = vector.broadcast %cst_17 : f32 to vector<8x1xf32>
    %27 = arith.addf %26, %25 : vector<8x1xf32>
    %28 = arith.divf %26, %27 : vector<8x1xf32>
    %c0_18 = arith.constant 0 : index
    %c0_19 = arith.constant 0 : index
    %29 = vector.load %arg8[%c0_18, %c0_19] : memref<8x1xf32, #tpu.memory_space<vmem>>, vector<8x1xf32>
    tpu.vector_store %arg8[%c0_18, %c0_19], %28 {strides = array<i32>} : memref<8x1xf32, #tpu.memory_space<vmem>>, vector<8x1xf32>,
    return
  }
  func.func @transform_0(%arg0: i32) -> (i32, i32) {
    %c0_i32 = arith.constant 0 : i32
    %c0_i32_0 = arith.constant 0 : i32
    return %arg0, %c0_i32 : i32, i32
  }
  func.func @transform_1(%arg0: i32) -> (i32, i32) {
    %c0_i32 = arith.constant 0 : i32
    %c0_i32_0 = arith.constant 0 : i32
    %c0_i32_1 = arith.constant 0 : i32
    return %c0_i32, %c0_i32_0 : i32, i32
  }
  func.func @transform_2(%arg0: i32) -> (i32, i32) {
    %c0_i32 = arith.constant 0 : i32
    %c0_i32_0 = arith.constant 0 : i32
    %c0_i32_1 = arith.constant 0 : i32
    return %c0_i32, %c0_i32_0 : i32, i32
  }
  func.func @transform_3(%arg0: i32) -> (i32, i32) {
    %c0_i32 = arith.constant 0 : i32
    %c0_i32_0 = arith.constant 0 : i32
    %c0_i32_1 = arith.constant 0 : i32
    return %c0_i32, %c0_i32_0 : i32, i32
  }
  func.func @transform_4(%arg0: i32) -> (i32, i32) {
    %c0_i32 = arith.constant 0 : i32
    %c0_i32_0 = arith.constant 0 : i32
    %c0_i32_1 = arith.constant 0 : i32
    return %c0_i32, %c0_i32_0 : i32, i32
  }
  func.func @transform_5(%arg0: i32) -> (i32, i32) {
    %c0_i32 = arith.constant 0 : i32
    %c0_i32_0 = arith.constant 0 : i32
    %c0_i32_1 = arith.constant 0 : i32
    return %c0_i32, %c0_i32_0 : i32, i32
  }
  func.func @transform_6(%arg0: i32) -> (i32, i32) {
    %c0_i32 = arith.constant 0 : i32
    %c0_i32_0 = arith.constant 0 : i32
    %c0_i32_1 = arith.constant 0 : i32
    return %c0_i32, %c0_i32_0 : i32, i32
  }
  func.func @transform_7(%arg0: i32) -> (i32, i32) {
    %c0_i32 = arith.constant 0 : i32
    %c0_i32_0 = arith.constant 0 : i32
    return %arg0, %c0_i32 : i32, i32
  }
}

</mosaic_0001>

<bundles_post_ra>
// kernel: learner_forward.1
= control target key start
LH: loop header
LB: loop body
LE: loop exit
PB: predicated region body
PF: predicated region fallthrough
CT: control target
= control target key end

     0   :  { %s7617_s0 = inlined_call_operand.hbm [shape: bf16[8,2048], index: 0, kind: input, shape index: {}]   ;;  %s7618_s1 = inlined_call_operand.hbm [shape: bf16[2048,512], index: 1, kind: input, shape index: {}]   ;;  %s7619_s2 = inlined_call_operand.hbm [shape: f32[1,512], index: 2, kind: input, shape index: {}]   ;;  %s7620_s3 = inlined_call_operand.vmem [shape: bf16[512,32], index: 3, kind: input, shape index: {}]   ;;  %s7621_s4 = inlined_call_operand.hbm [shape: f32[1,32], index: 4, kind: input, shape index: {}]   ;;  %s7622_s5 = inlined_call_operand.hbm [shape: f32[1,32], index: 5, kind: input, shape index: {}]   ;;  %s7623_s6 = inlined_call_operand.<no memory space> [shape: f32[1,1], index: 6, kind: input, shape index: {}]   ;;  %s7624_s7 = inlined_call_operand.vmem [shape: f32[8,1], index: 7, kind: output, shape index: {}]  }
   0x1   :  { %v12_v0 = vstv %s7623_s6 }
   0x2   :  { %13 = vst [vmem:[#allocation2] sm:$0x1] %v12_v0 }
   0x3   :  { %14 = vsyncpa [#allocation4], 0 }
   0x4   :  { %15 = vsyncpa [#allocation6], 0  ;;  %s32_s28 = sshll.u32 %s7618_s1, 4  ;;  %s33_s28 = int_to_ptr.hbm [resolvable:$true] %s32_s28 }
   0x5   :  { %16 = vsyncpa [#allocation9], 0  ;;  %s7302_s29 = smov [#allocation5]   ;;  %s59_s10 = sshll.u32 %s7621_s4, 4  ;;  %s60_s10 = int_to_ptr.hbm [resolvable:$true] %s59_s10 }
   0x6   :  { %s34_s30 = sshll.u32 %s7302_s29, 4  ;;  %s7303_s11 = smov 256   ;;  %s35_s30 = int_to_ptr.vmem [resolvable:$true] %s34_s30 }
   0x7   :  { %s7304_s12 = smov 16   ;;  %s7305_s6 = smov [#allocation8]  }
   0x8   :  { %40 = dma.hbm_to_vmem [thread:$0]  %s33_s28, 65536, %s35_s30, [#allocation6], %s7303_s11, %s7303_s11, %s7304_s12  }
   0x9   :  { %s61_s13 = sshll.u32 %s7305_s6, 4  ;;  %s22_s16 = sshll.u32 %s7617_s0, 4  ;;  %s62_s13 = int_to_ptr.vmem [resolvable:$true] %s61_s13  ;;  %s23_s16 = int_to_ptr.hbm [resolvable:$true] %s22_s16 }
   0xa   :  { %64 = dma.hbm_to_vmem [thread:$0]  %s60_s10, 16, %s62_s13, [#allocation9]  }
   0xb   :  { %s46_s18 = sshll.u32 %s7619_s2, 4  ;;  %s7306_s19 = smov [#allocation3]   ;;  %s47_s18 = int_to_ptr.hbm [resolvable:$true] %s46_s18 }
   0xc   :  { %s24_s20 = sshll.u32 %s7306_s19, 4  ;;  %s7307_s4 = smov [#allocation7]   ;;  %s25_s20 = int_to_ptr.vmem [resolvable:$true] %s24_s20 }
   0xd   :  { %27 = dma.hbm_to_vmem [thread:$0]  %s23_s16, 1024, %s25_s20, [#allocation4]  }
   0xe   :  { %s48_s21 = sshll.u32 %s7307_s4, 4  ;;  %s70_s24 = sshll.u32 %s7622_s5, 4  ;;  %s49_s21 = int_to_ptr.vmem [resolvable:$true] %s48_s21  ;;  %s71_s24 = int_to_ptr.hbm [resolvable:$true] %s70_s24 }
   0xf   :  { %51 = dma.hbm_to_vmem [thread:$0]  %s47_s18, 64, %s49_s21, [#allocation6]  }
  0x10   :  { %s7308_s0 = smov [#allocation10]  }
  0x11   :  { %s72_s25 = sshll.u32 %s7308_s0, 4  ;;  %s73_s25 = int_to_ptr.vmem [resolvable:$true] %s72_s25 }
  0x12   :  { %75 = dma.hbm_to_vmem [thread:$0]  %s71_s24, 16, %s73_s25, [#allocation9]  }
  0x13   :  { %7296 = dma.done.wait [#allocation4], 1024  }
  0x14   :  { %7297 = vsyncadd [#allocation4], 4294966272 }
  0x15   :  { %7298 = dma.done.wait [#allocation6], 65600  }
  0x16   :  { %7299 = vsyncadd [#allocation6], 4294901696 }
  0x17   :  { %7300 = dma.done.wait [#allocation9], 32  }
  0x18   :  { %7301 = vsyncadd [#allocation9], 4294967264  ;;  %v4553_v1 = vld [vmem:[#allocation5 + $0xe0] sm:$0xf]  ;;  %v6646_v2 = vld [vmem:[#allocation5 + $0xec] sm:$0xf0] }
  0x19   :  { %v4681_v3 = vld [vmem:[#allocation5 + $0x1e0] sm:$0xf]  ;;  %v4554_v4 = vor.u32 %v6646_v2, %v4553_v1  ;;  %v6678_v5 = vld [vmem:[#allocation5 + $0x1ec] sm:$0xf0]  ;;  %vm4402_vm0 = vcmask 261120   ;;  %vm4430_vm4 = vcmask 7168  }
  0x1a   :  { %v4809_v6 = vld [vmem:[#allocation5 + $0x2e0] sm:$0xf]  ;;  %v6710_v7 = vld [vmem:[#allocation5 + $0x2ec] sm:$0xf0]  ;;  %v4682_v8 = vor.u32 %v6678_v5, %v4681_v3 }
  0x1b   :  { %v4810_v9 = vor.u32 %v6710_v7, %v4809_v6  ;;  %v4937_v10 = vld [vmem:[#allocation5 + $0x3e0] sm:$0xf]  ;;  %v6742_v11 = vld [vmem:[#allocation5 + $0x3ec] sm:$0xf0]  ;;  %3244 = vmatpush.bf16.msra.mxu0 %v4554_v4 }
  0x1c   :  { %v4537_v12 = vld [vmem:[#allocation5 + $0xc0] sm:$0xf]  ;;  %v4938_v13 = vor.u32 %v6742_v11, %v4937_v10  ;;  %v6642_v14 = vld [vmem:[#allocation5 + $0xcc] sm:$0xf0]  ;;  %3257 = vmatpush.bf16.msra.mxu1 %v4682_v8 }
  0x1d   :  { %v4665_v15 = vld [vmem:[#allocation5 + $0x1c0] sm:$0xf]  ;;  %v6674_v16 = vld [vmem:[#allocation5 + $0x1cc] sm:$0xf0]  ;;  %3270 = vmatpush.bf16.msra.mxu2 %v4810_v9  ;;  %v4538_v17 = vor.u32 %v6642_v14, %v4537_v12 }
  0x1e   :  { %v4666_v18 = vor.u32 %v6674_v16, %v4665_v15  ;;  %v4793_v19 = vld [vmem:[#allocation5 + $0x2c0] sm:$0xf]  ;;  %v6706_v20 = vld [vmem:[#allocation5 + $0x2cc] sm:$0xf0]  ;;  %3283 = vmatpush.bf16.msra.mxu3 %v4938_v13 }
  0x1f   :  { %v4921_v21 = vld [vmem:[#allocation5 + $0x3c0] sm:$0xf]  ;;  %v4794_v22 = vor.u32 %v6706_v20, %v4793_v19  ;;  %v6738_v23 = vld [vmem:[#allocation5 + $0x3cc] sm:$0xf0]  ;;  %3245 = vmatpush.bf16.msra.mxu0 %v4538_v17 }
  0x20   :  { %v4521_v24 = vld [vmem:[#allocation5 + $0xa0] sm:$0xf]  ;;  %v6638_v25 = vld [vmem:[#allocation5 + $0xac] sm:$0xf0]  ;;  %v4922_v26 = vor.u32 %v6738_v23, %v4921_v21  ;;  %3258 = vmatpush.bf16.msra.mxu1 %v4666_v18 }
  0x21   :  { %v4649_v27 = vld [vmem:[#allocation5 + $0x1a0] sm:$0xf]  ;;  %v6670_v28 = vld [vmem:[#allocation5 + $0x1ac] sm:$0xf0]  ;;  %v4522_v30 = vor.u32 %v6638_v25, %v4521_v24  ;;  %3271 = vmatpush.bf16.msra.mxu2 %v4794_v22 }
  0x22   :  { %v4777_v29 = vld [vmem:[#allocation5 + $0x2a0] sm:$0xf]  ;;  %v6702_v31 = vld [vmem:[#allocation5 + $0x2ac] sm:$0xf0]  ;;  %v4650_v34 = vor.u32 %v6670_v28, %v4649_v27  ;;  %3284 = vmatpush.bf16.msra.mxu3 %v4922_v26 }
  0x23   :  { %v4905_v32 = vld [vmem:[#allocation5 + $0x3a0] sm:$0xf]  ;;  %v6734_v33 = vld [vmem:[#allocation5 + $0x3ac] sm:$0xf0]  ;;  %v4778_v35 = vor.u32 %v6702_v31, %v4777_v29  ;;  %3246 = vmatpush.bf16.msra.mxu0 %v4522_v30 }
  0x24   :  { %v4505_v36 = vld [vmem:[#allocation5 + $0x80] sm:$0xf]  ;;  %v6634_v37 = vld [vmem:[#allocation5 + $0x8c] sm:$0xf0]  ;;  %v4906_v39 = vor.u32 %v6734_v33, %v4905_v32  ;;  %3259 = vmatpush.bf16.msra.mxu1 %v4650_v34 }
  0x25   :  { %v4633_v38 = vld [vmem:[#allocation5 + $0x180] sm:$0xf]  ;;  %v6666_v40 = vld [vmem:[#allocation5 + $0x18c] sm:$0xf0]  ;;  %v4506_v45 = vor.u32 %v6634_v37, %v4505_v36  ;;  %3272 = vmatpush.bf16.msra.mxu2 %v4778_v35 }
  0x26   :  { %v4761_v41 = vld [vmem:[#allocation5 + $0x280] sm:$0xf]  ;;  %v6698_v42 = vld [vmem:[#allocation5 + $0x28c] sm:$0xf0]  ;;  %v4634_v46 = vor.u32 %v6666_v40, %v4633_v38  ;;  %3285 = vmatpush.bf16.msra.mxu3 %v4906_v39 }
  0x27   :  { %v4889_v43 = vld [vmem:[#allocation5 + $0x380] sm:$0xf]  ;;  %v6730_v44 = vld [vmem:[#allocation5 + $0x38c] sm:$0xf0]  ;;  %v4762_v47 = vor.u32 %v6698_v42, %v4761_v41  ;;  %3247 = vmatpush.bf16.msra.mxu0 %v4506_v45 }
  0x28   :  { %v4489_v48 = vld [vmem:[#allocation5 + $0x60] sm:$0xf]  ;;  %v6630_v49 = vld [vmem:[#allocation5 + $0x6c] sm:$0xf0]  ;;  %v4890_v51 = vor.u32 %v6730_v44, %v4889_v43  ;;  %3260 = vmatpush.bf16.msra.mxu1 %v4634_v46 }
  0x29   :  { %v4617_v50 = vld [vmem:[#allocation5 + $0x160] sm:$0xf]  ;;  %v6662_v52 = vld [vmem:[#allocation5 + $0x16c] sm:$0xf0]  ;;  %v4490_v57 = vor.u32 %v6630_v49, %v4489_v48  ;;  %3273 = vmatpush.bf16.msra.mxu2 %v4762_v47 }
  0x2a   :  { %v4745_v53 = vld [vmem:[#allocation5 + $0x260] sm:$0xf]  ;;  %v6694_v54 = vld [vmem:[#allocation5 + $0x26c] sm:$0xf0]  ;;  %v4618_v58 = vor.u32 %v6662_v52, %v4617_v50  ;;  %3286 = vmatpush.bf16.msra.mxu3 %v4890_v51 }
  0x2b   :  { %v4873_v55 = vld [vmem:[#allocation5 + $0x360] sm:$0xf]  ;;  %v6726_v56 = vld [vmem:[#allocation5 + $0x36c] sm:$0xf0]  ;;  %v4746_v59 = vor.u32 %v6694_v54, %v4745_v53  ;;  %3248 = vmatpush.bf16.msra.mxu0 %v4490_v57 }
  0x2c   :  { %v4473_v60 = vld [vmem:[#allocation5 + $0x40] sm:$0xf]  ;;  %v6626_v61 = vld [vmem:[#allocation5 + $0x4c] sm:$0xf0]  ;;  %v4874_v63 = vor.u32 %v6726_v56, %v4873_v55  ;;  %3261 = vmatpush.bf16.msra.mxu1 %v4618_v58 }
  0x2d   :  { %v4601_v62 = vld [vmem:[#allocation5 + $0x140] sm:$0xf]  ;;  %v6658_v0 = vld [vmem:[#allocation5 + $0x14c] sm:$0xf0]  ;;  %v4474_v5 = vor.u32 %v6626_v61, %v4473_v60  ;;  %3274 = vmatpush.bf16.msra.mxu2 %v4746_v59 }
  0x2e   :  { %v4729_v1 = vld [vmem:[#allocation5 + $0x240] sm:$0xf]  ;;  %v6690_v2 = vld [vmem:[#allocation5 + $0x24c] sm:$0xf0]  ;;  %v4602_v6 = vor.u32 %v6658_v0, %v4601_v62  ;;  %3287 = vmatpush.bf16.msra.mxu3 %v4874_v63 }
  0x2f   :  { %v4857_v3 = vld [vmem:[#allocation5 + $0x340] sm:$0xf]  ;;  %v6722_v4 = vld [vmem:[#allocation5 + $0x34c] sm:$0xf0]  ;;  %v4730_v7 = vor.u32 %v6690_v2, %v4729_v1  ;;  %3249 = vmatpush.bf16.msra.mxu0 %v4474_v5 }
  0x30   :  { %v4457_v8 = vld [vmem:[#allocation5 + $0x20] sm:$0xf]  ;;  %v6622_v9 = vld [vmem:[#allocation5 + $0x2c] sm:$0xf0]  ;;  %v4858_v11 = vor.u32 %v6722_v4, %v4857_v3  ;;  %3262 = vmatpush.bf16.msra.mxu1 %v4602_v6  ;;  %v99_v3 = vld [vmem:[#allocation3 + $0x8] sm:$0xff] }
  0x31   :  { %v4585_v10 = vld [vmem:[#allocation5 + $0x120] sm:$0xf]  ;;  %v6654_v12 = vld [vmem:[#allocation5 + $0x12c] sm:$0xf0]  ;;  %v4458_v17 = vor.u32 %v6622_v9, %v4457_v8  ;;  %3275 = vmatpush.bf16.msra.mxu2 %v4730_v7  ;;  %v638_v9 = vunpack.c.l.b16 %v99_v3 }
  0x32   :  { %v4713_v13 = vld [vmem:[#allocation5 + $0x220] sm:$0xf]  ;;  %v6686_v14 = vld [vmem:[#allocation5 + $0x22c] sm:$0xf0]  ;;  %v4586_v20 = vor.u32 %v6654_v12, %v4585_v10  ;;  %3288 = vmatpush.bf16.msra.mxu3 %v4858_v11  ;;  %v639_v11 = vunpack.c.h.b16 %v99_v3 }
  0x33   :  { %v4841_v15 = vld [vmem:[#allocation5 + $0x320] sm:$0xf]  ;;  %v6718_v16 = vld [vmem:[#allocation5 + $0x32c] sm:$0xf0]  ;;  %v4714_v21 = vor.u32 %v6686_v14, %v4713_v13  ;;  %3250 = vmatpush.bf16.msra.mxu0 %v4458_v17 }
  0x34   :  { %v4441_v18 = vld [vmem:[#allocation5] sm:$0xf]  ;;  %v6618_v19 = vld [vmem:[#allocation5 + $0xc] sm:$0xf0]  ;;  %v4842_v25 = vor.u32 %v6718_v16, %v4841_v15  ;;  %3263 = vmatpush.bf16.msra.mxu1 %v4586_v20 }
  0x35   :  { %v4569_v22 = vld [vmem:[#allocation5 + $0x100] sm:$0xf]  ;;  %v6650_v23 = vld [vmem:[#allocation5 + $0x10c] sm:$0xf0]  ;;  %v4442_v32 = vor.u32 %v6618_v19, %v4441_v18  ;;  %3276 = vmatpush.bf16.msra.mxu2 %v4714_v21  ;;  %v7367_v19 = vpack.c.b16 %v638_v9, %v638_v9  ;;  %v7371_v21 = vpack.c.b16 %v639_v11, %v639_v11 }
  0x36   :  { %v4697_v24 = vld [vmem:[#allocation5 + $0x200] sm:$0xf]  ;;  %v6682_v26 = vld [vmem:[#allocation5 + $0x20c] sm:$0xf0]  ;;  %v4570_v36 = vor.u32 %v6650_v23, %v4569_v22  ;;  %3289 = vmatpush.bf16.msra.mxu3 %v4842_v25 }
  0x37   :  { %v4825_v27 = vld [vmem:[#allocation5 + $0x300] sm:$0xf]  ;;  %v6714_v28 = vld [vmem:[#allocation5 + $0x30c] sm:$0xf0]  ;;  %v4698_v37 = vor.u32 %v6682_v26, %v4697_v24  ;;  %3251 = vmatpush.bf16.msra.mxu0 %v4442_v32 }
  0x38   :  { %v5065_v29 = vld [vmem:[#allocation5 + $0x4e0] sm:$0xf]  ;;  %v6774_v30 = vld [vmem:[#allocation5 + $0x4ec] sm:$0xf0]  ;;  %v4826_v40 = vor.u32 %v6714_v28, %v4825_v27  ;;  %3264 = vmatpush.bf16.msra.mxu1 %v4570_v36 }
  0x39   :  { %v5193_v31 = vld [vmem:[#allocation5 + $0x5e0] sm:$0xf]  ;;  %v6806_v33 = vld [vmem:[#allocation5 + $0x5ec] sm:$0xf0]  ;;  %v5066_v41 = vor.u32 %v6774_v30, %v5065_v29  ;;  %3277 = vmatpush.bf16.msra.mxu2 %v4698_v37 }
  0x3a   :  { %v5321_v34 = vld [vmem:[#allocation5 + $0x6e0] sm:$0xf]  ;;  %v6838_v35 = vld [vmem:[#allocation5 + $0x6ec] sm:$0xf0]  ;;  %v5194_v42 = vor.u32 %v6806_v33, %v5193_v31  ;;  %3290 = vmatpush.bf16.msra.mxu3 %v4826_v40 }
  0x3b   :  { %v5449_v38 = vld [vmem:[#allocation5 + $0x7e0] sm:$0xf]  ;;  %v6870_v39 = vld [vmem:[#allocation5 + $0x7ec] sm:$0xf0]  ;;  %v5322_v43 = vor.u32 %v6838_v35, %v5321_v34  ;;  %3296 = vmatpush.bf16.msrb.mxu0 %v5066_v41 }
  0x3c   :  { %v5049_v44 = vld [vmem:[#allocation5 + $0x4c0] sm:$0xf]  ;;  %v6770_v45 = vld [vmem:[#allocation5 + $0x4cc] sm:$0xf0]  ;;  %v5450_v47 = vor.u32 %v6870_v39, %v5449_v38  ;;  %3309 = vmatpush.bf16.msrb.mxu1 %v5194_v42  ;;  %3278 = vmatmul.bf16.vlgmr.msra.gmra.mxu2 %v7367_v19 }
  0x3d   :  { %v5177_v46 = vld [vmem:[#allocation5 + $0x5c0] sm:$0xf]  ;;  %v6802_v48 = vld [vmem:[#allocation5 + $0x5cc] sm:$0xf0]  ;;  %v5050_v53 = vor.u32 %v6770_v45, %v5049_v44  ;;  %3322 = vmatpush.bf16.msrb.mxu2 %v5322_v43  ;;  %3291 = vmatmul.bf16.vlgmr.msra.gmra.mxu3 %v7371_v21 }
  0x3e   :  { %v5305_v49 = vld [vmem:[#allocation5 + $0x6c0] sm:$0xf]  ;;  %v6834_v50 = vld [vmem:[#allocation5 + $0x6cc] sm:$0xf0]  ;;  %v5178_v55 = vor.u32 %v6802_v48, %v5177_v46  ;;  %3335 = vmatpush.bf16.msrb.mxu3 %v5450_v47 }
  0x3f   :  { %v5433_v51 = vld [vmem:[#allocation5 + $0x7c0] sm:$0xf]  ;;  %v6866_v52 = vld [vmem:[#allocation5 + $0x7cc] sm:$0xf0]  ;;  %v5306_v56 = vor.u32 %v6834_v50, %v5305_v49  ;;  %3297 = vmatpush.bf16.msrb.mxu0 %v5050_v53 }
  0x40   :  { %v5033_v54 = vld [vmem:[#allocation5 + $0x4a0] sm:$0xf]  ;;  %v6766_v57 = vld [vmem:[#allocation5 + $0x4ac] sm:$0xf0]  ;;  %v5434_v60 = vor.u32 %v6866_v52, %v5433_v51  ;;  %3310 = vmatpush.bf16.msrb.mxu1 %v5178_v55 }
  0x41   :  { %v5161_v58 = vld [vmem:[#allocation5 + $0x5a0] sm:$0xf]  ;;  %v6798_v59 = vld [vmem:[#allocation5 + $0x5ac] sm:$0xf0]  ;;  %v5034_v1 = vor.u32 %v6766_v57, %v5033_v54  ;;  %3323 = vmatpush.bf16.msrb.mxu2 %v5306_v56 }
  0x42   :  { %v5289_v61 = vld [vmem:[#allocation5 + $0x6a0] sm:$0xf]  ;;  %v6830_v62 = vld [vmem:[#allocation5 + $0x6ac] sm:$0xf0]  ;;  %v5162_v2 = vor.u32 %v6798_v59, %v5161_v58  ;;  %3336 = vmatpush.bf16.msrb.mxu3 %v5434_v60 }
  0x43   :  { %v5417_v63 = vld [vmem:[#allocation5 + $0x7a0] sm:$0xf]  ;;  %v6862_v0 = vld [vmem:[#allocation5 + $0x7ac] sm:$0xf0]  ;;  %v5290_v5 = vor.u32 %v6830_v62, %v5289_v61  ;;  %3298 = vmatpush.bf16.msrb.mxu0 %v5034_v1 }
  0x44   :  { %v98_v4 = vld [vmem:[#allocation3] sm:$0xff]  ;;  %v6762_v7 = vld [vmem:[#allocation5 + $0x48c] sm:$0xf0]  ;;  %v5418_v12 = vor.u32 %v6862_v0, %v5417_v63  ;;  %3311 = vmatpush.bf16.msrb.mxu1 %v5162_v2 }
  0x45   :  { %v5017_v6 = vld [vmem:[#allocation5 + $0x480] sm:$0xf]  ;;  %v636_v10 = vunpack.c.l.b16 %v98_v4  ;;  %v6794_v13 = vld [vmem:[#allocation5 + $0x58c] sm:$0xf0]  ;;  %v637_v16 = vunpack.c.h.b16 %v98_v4  ;;  %3324 = vmatpush.bf16.msrb.mxu2 %v5290_v5  ;;  %v101_v4 = vld [vmem:[#allocation3 + $0x18] sm:$0xff] }
  0x46   :  { %v5145_v8 = vld [vmem:[#allocation5 + $0x580] sm:$0xf]  ;;  %v6826_v15 = vld [vmem:[#allocation5 + $0x68c] sm:$0xf0]  ;;  %v5018_v22 = vor.u32 %v6762_v7, %v5017_v6  ;;  %3337 = vmatpush.bf16.msrb.mxu3 %v5418_v12 }
  0x47   :  { %v5273_v14 = vld [vmem:[#allocation5 + $0x680] sm:$0xf]  ;;  %v6858_v18 = vld [vmem:[#allocation5 + $0x78c] sm:$0xf0]  ;;  %v7369_v20 = vpack.c.b16 %v636_v10, %v636_v10  ;;  %v7373_v23 = vpack.c.b16 %v637_v16, %v637_v16  ;;  %v5146_v24 = vor.u32 %v6794_v13, %v5145_v8  ;;  %v642_v16 = vunpack.c.l.b16 %v101_v4 }
  0x48   :  { %v5401_v17 = vld [vmem:[#allocation5 + $0x780] sm:$0xf]  ;;  %v5274_v25 = vor.u32 %v6826_v15, %v5273_v14  ;;  %v6758_v27 = vld [vmem:[#allocation5 + $0x46c] sm:$0xf0]  ;;  %3299 = vmatpush.bf16.msrb.mxu0 %v5018_v22 }
  0x49   :  { %v5001_v26 = vld [vmem:[#allocation5 + $0x460] sm:$0xf]  ;;  %v5402_v29 = vor.u32 %v6858_v18, %v5401_v17  ;;  %v6790_v30 = vld [vmem:[#allocation5 + $0x56c] sm:$0xf0]  ;;  %3252 = vmatmul.bf16.vlgmr.msra.gmra.mxu0 %v7369_v20  ;;  %3265 = vmatmul.bf16.vlgmr.msra.gmra.mxu1 %v7373_v23 }
  0x4a   :  { %v5129_v28 = vld [vmem:[#allocation5 + $0x560] sm:$0xf]  ;;  %v6822_v32 = vld [vmem:[#allocation5 + $0x66c] sm:$0xf0]  ;;  %v5002_v35 = vor.u32 %v6758_v27, %v5001_v26  ;;  %3312 = vmatpush.bf16.msrb.mxu1 %v5146_v24  ;;  %3325 = vmatpush.bf16.msrb.mxu2 %v5274_v25  ;;  %v643_v26 = vunpack.c.h.b16 %v101_v4 }
  0x4b   :  { %v5257_v31 = vld [vmem:[#allocation5 + $0x660] sm:$0xf]  ;;  %v6854_v34 = vld [vmem:[#allocation5 + $0x76c] sm:$0xf0]  ;;  %v5130_v36 = vor.u32 %v6790_v30, %v5129_v28  ;;  %3338 = vmatpush.bf16.msrb.mxu3 %v5402_v29 }
  0x4c   :  { %v5385_v33 = vld [vmem:[#allocation5 + $0x760] sm:$0xf]  ;;  %v5258_v37 = vor.u32 %v6822_v32, %v5257_v31  ;;  %v6754_v39 = vld [vmem:[#allocation5 + $0x44c] sm:$0xf0]  ;;  %3300 = vmatpush.bf16.msrb.mxu0 %v5002_v35 }
  0x4d   :  { %v4985_v38 = vld [vmem:[#allocation5 + $0x440] sm:$0xf]  ;;  %v5386_v41 = vor.u32 %v6854_v34, %v5385_v33  ;;  %v6786_v42 = vld [vmem:[#allocation5 + $0x54c] sm:$0xf0] }
  0x4e   :  { %v5113_v40 = vld [vmem:[#allocation5 + $0x540] sm:$0xf]  ;;  %v6818_v44 = vld [vmem:[#allocation5 + $0x64c] sm:$0xf0]  ;;  %v4986_v47 = vor.u32 %v6754_v39, %v4985_v38  ;;  %3313 = vmatpush.bf16.msrb.mxu1 %v5130_v36  ;;  %3326 = vmatpush.bf16.msrb.mxu2 %v5258_v37  ;;  %v7379_v39 = vpack.c.b16 %v642_v16, %v642_v16 }
  0x4f   :  { %v5241_v43 = vld [vmem:[#allocation5 + $0x640] sm:$0xf]  ;;  %v6850_v46 = vld [vmem:[#allocation5 + $0x74c] sm:$0xf0]  ;;  %v5114_v48 = vor.u32 %v6786_v42, %v5113_v40  ;;  %3339 = vmatpush.bf16.msrb.mxu3 %v5386_v41 }
  0x50   :  { %v5369_v45 = vld [vmem:[#allocation5 + $0x740] sm:$0xf]  ;;  %v5242_v49 = vor.u32 %v6818_v44, %v5241_v43  ;;  %v6750_v51 = vld [vmem:[#allocation5 + $0x42c] sm:$0xf0]  ;;  %3301 = vmatpush.bf16.msrb.mxu0 %v4986_v47  ;;  %v7383_v43 = vpack.c.b16 %v643_v26, %v643_v26 }
  0x51   :  { %v4969_v50 = vld [vmem:[#allocation5 + $0x420] sm:$0xf]  ;;  %v5370_v53 = vor.u32 %v6850_v46, %v5369_v45  ;;  %v6782_v54 = vld [vmem:[#allocation5 + $0x52c] sm:$0xf0] }
  0x52   :  { %v5097_v52 = vld [vmem:[#allocation5 + $0x520] sm:$0xf]  ;;  %v6814_v56 = vld [vmem:[#allocation5 + $0x62c] sm:$0xf0]  ;;  %v4970_v60 = vor.u32 %v6750_v51, %v4969_v50  ;;  %3314 = vmatpush.bf16.msrb.mxu1 %v5114_v48  ;;  %3327 = vmatpush.bf16.msrb.mxu2 %v5242_v49 }
  0x53   :  { %v5225_v55 = vld [vmem:[#allocation5 + $0x620] sm:$0xf]  ;;  %v6846_v58 = vld [vmem:[#allocation5 + $0x72c] sm:$0xf0]  ;;  %v5098_v0 = vor.u32 %v6782_v54, %v5097_v52  ;;  %3340 = vmatpush.bf16.msrb.mxu3 %v5370_v53 }
  0x54   :  { %v5353_v57 = vld [vmem:[#allocation5 + $0x720] sm:$0xf]  ;;  %v6746_v61 = vld [vmem:[#allocation5 + $0x40c] sm:$0xf0]  ;;  %v5226_v1 = vor.u32 %v6814_v56, %v5225_v55  ;;  %3302 = vmatpush.bf16.msrb.mxu0 %v4970_v60 }
  0x55   :  { %v4953_v59 = vld [vmem:[#allocation5 + $0x400] sm:$0xf]  ;;  %v6778_v63 = vld [vmem:[#allocation5 + $0x50c] sm:$0xf0]  ;;  %v5354_v5 = vor.u32 %v6846_v58, %v5353_v57 }
  0x56   :  { %v5081_v62 = vld [vmem:[#allocation5 + $0x500] sm:$0xf]  ;;  %v6810_v3 = vld [vmem:[#allocation5 + $0x60c] sm:$0xf0]  ;;  %v4954_v12 = vor.u32 %v6746_v61, %v4953_v59  ;;  %3315 = vmatpush.bf16.msrb.mxu1 %v5098_v0  ;;  %3328 = vmatpush.bf16.msrb.mxu2 %v5226_v1 }
  0x57   :  { %v5209_v2 = vld [vmem:[#allocation5 + $0x600] sm:$0xf]  ;;  %v6842_v7 = vld [vmem:[#allocation5 + $0x70c] sm:$0xf0]  ;;  %v5082_v17 = vor.u32 %v6778_v63, %v5081_v62  ;;  %3341 = vmatpush.bf16.msrb.mxu3 %v5354_v5 }
  0x58   :  { %v5337_v6 = vld [vmem:[#allocation5 + $0x700] sm:$0xf]  ;;  %v100_v8 = vld [vmem:[#allocation3 + $0x10] sm:$0xff]  ;;  %v5210_v18 = vor.u32 %v6810_v3, %v5209_v2  ;;  %3303 = vmatpush.bf16.msrb.mxu0 %v4954_v12 }
  0x59   :  { %v5577_v9 = vld [vmem:[#allocation5 + $0x8e0] sm:$0xf]  ;;  %v6902_v10 = vld [vmem:[#allocation5 + $0x8ec] sm:$0xf0]  ;;  %v640_v25 = vunpack.c.l.b16 %v100_v8  ;;  %v5338_v27 = vor.u32 %v6842_v7, %v5337_v6  ;;  %v641_v29 = vunpack.c.h.b16 %v100_v8 }
  0x5a   :  { %v5705_v11 = vld [vmem:[#allocation5 + $0x9e0] sm:$0xf]  ;;  %v6934_v13 = vld [vmem:[#allocation5 + $0x9ec] sm:$0xf0]  ;;  %v5578_v28 = vor.u32 %v6902_v10, %v5577_v9  ;;  %3316 = vmatpush.bf16.msrb.mxu1 %v5082_v17  ;;  %3329 = vmatpush.bf16.msrb.mxu2 %v5210_v18 }
  0x5b   :  { %v5833_v14 = vld [vmem:[#allocation5 + $0xae0] sm:$0xf]  ;;  %v6966_v15 = vld [vmem:[#allocation5 + $0xaec] sm:$0xf0]  ;;  %v5706_v30 = vor.u32 %v6934_v13, %v5705_v11  ;;  %v7381_v42 = vpack.c.b16 %v640_v25, %v640_v25  ;;  %3342 = vmatpush.bf16.msrb.mxu3 %v5338_v27  ;;  %v7385_v45 = vpack.c.b16 %v641_v29, %v641_v29 }
  0x5c   :  { %v5961_v22 = vld [vmem:[#allocation5 + $0xbe0] sm:$0xf]  ;;  %v6998_v24 = vld [vmem:[#allocation5 + $0xbec] sm:$0xf0]  ;;  %v5834_v31 = vor.u32 %v6966_v15, %v5833_v14  ;;  %3348 = vmatpush.bf16.msra.mxu0 %v5578_v28 }
  0x5d   :  { %v5561_v32 = vld [vmem:[#allocation5 + $0x8c0] sm:$0xf]  ;;  %v6898_v33 = vld [vmem:[#allocation5 + $0x8cc] sm:$0xf0]  ;;  %v5962_v35 = vor.u32 %v6998_v24, %v5961_v22  ;;  %3330 = vmatmul.bf16.vlgmr.msrb.gmra.mxu2 %v7379_v39  ;;  %3304 = vmatmul.bf16.vlgmr.msrb.gmra.mxu0 %v7381_v42 }
  0x5e   :  { %v5689_v34 = vld [vmem:[#allocation5 + $0x9c0] sm:$0xf]  ;;  %v6930_v36 = vld [vmem:[#allocation5 + $0x9cc] sm:$0xf0]  ;;  %v5562_v44 = vor.u32 %v6898_v33, %v5561_v32  ;;  %3361 = vmatpush.bf16.msra.mxu1 %v5706_v30  ;;  %3374 = vmatpush.bf16.msra.mxu2 %v5834_v31 }
  0x5f   :  { %v5817_v37 = vld [vmem:[#allocation5 + $0xac0] sm:$0xf]  ;;  %v6962_v38 = vld [vmem:[#allocation5 + $0xacc] sm:$0xf0]  ;;  %v5690_v46 = vor.u32 %v6930_v36, %v5689_v34  ;;  %3387 = vmatpush.bf16.msra.mxu3 %v5962_v35  ;;  %3317 = vmatmul.bf16.vlgmr.msrb.gmra.mxu1 %v7385_v45 }
  0x60   :  { %v5945_v40 = vld [vmem:[#allocation5 + $0xbc0] sm:$0xf]  ;;  %v6994_v41 = vld [vmem:[#allocation5 + $0xbcc] sm:$0xf0]  ;;  %v5818_v47 = vor.u32 %v6962_v38, %v5817_v37  ;;  %3343 = vmatmul.bf16.vlgmr.msrb.gmra.mxu3 %v7383_v43  ;;  %3349 = vmatpush.bf16.msra.mxu0 %v5562_v44 }
  0x61   :  { %v5545_v48 = vld [vmem:[#allocation5 + $0x8a0] sm:$0xf]  ;;  %v6894_v49 = vld [vmem:[#allocation5 + $0x8ac] sm:$0xf0]  ;;  %v5946_v51 = vor.u32 %v6994_v41, %v5945_v40 }
  0x62   :  { %v5673_v50 = vld [vmem:[#allocation5 + $0x9a0] sm:$0xf]  ;;  %v6926_v52 = vld [vmem:[#allocation5 + $0x9ac] sm:$0xf0]  ;;  %v5546_v57 = vor.u32 %v6894_v49, %v5545_v48  ;;  %3362 = vmatpush.bf16.msra.mxu1 %v5690_v46  ;;  %3375 = vmatpush.bf16.msra.mxu2 %v5818_v47 }
  0x63   :  { %v5801_v53 = vld [vmem:[#allocation5 + $0xaa0] sm:$0xf]  ;;  %v6958_v54 = vld [vmem:[#allocation5 + $0xaac] sm:$0xf0]  ;;  %v5674_v58 = vor.u32 %v6926_v52, %v5673_v50  ;;  %3388 = vmatpush.bf16.msra.mxu3 %v5946_v51 }
  0x64   :  { %v5929_v55 = vld [vmem:[#allocation5 + $0xba0] sm:$0xf]  ;;  %v6990_v56 = vld [vmem:[#allocation5 + $0xbac] sm:$0xf0]  ;;  %v5802_v59 = vor.u32 %v6958_v54, %v5801_v53  ;;  %3350 = vmatpush.bf16.msra.mxu0 %v5546_v57 }
  0x65   :  { %v5529_v60 = vld [vmem:[#allocation5 + $0x880] sm:$0xf]  ;;  %v6890_v61 = vld [vmem:[#allocation5 + $0x88c] sm:$0xf0]  ;;  %v5930_v63 = vor.u32 %v6990_v56, %v5929_v55 }
  0x66   :  { %v5657_v62 = vld [vmem:[#allocation5 + $0x980] sm:$0xf]  ;;  %v6922_v0 = vld [vmem:[#allocation5 + $0x98c] sm:$0xf0]  ;;  %v5530_v5 = vor.u32 %v6890_v61, %v5529_v60  ;;  %3363 = vmatpush.bf16.msra.mxu1 %v5674_v58  ;;  %3376 = vmatpush.bf16.msra.mxu2 %v5802_v59 }
  0x67   :  { %v5785_v1 = vld [vmem:[#allocation5 + $0xa80] sm:$0xf]  ;;  %v6954_v2 = vld [vmem:[#allocation5 + $0xa8c] sm:$0xf0]  ;;  %v5658_v6 = vor.u32 %v6922_v0, %v5657_v62  ;;  %3389 = vmatpush.bf16.msra.mxu3 %v5930_v63  ;;  %v103_v62 = vld [vmem:[#allocation3 + $0x28] sm:$0xff] }
  0x68   :  { %v5913_v3 = vld [vmem:[#allocation5 + $0xb80] sm:$0xf]  ;;  %v6986_v4 = vld [vmem:[#allocation5 + $0xb8c] sm:$0xf0]  ;;  %v5786_v7 = vor.u32 %v6954_v2, %v5785_v1  ;;  %3351 = vmatpush.bf16.msra.mxu0 %v5530_v5 }
  0x69   :  { %v5513_v8 = vld [vmem:[#allocation5 + $0x860] sm:$0xf]  ;;  %v6886_v9 = vld [vmem:[#allocation5 + $0x86c] sm:$0xf0]  ;;  %v5914_v11 = vor.u32 %v6986_v4, %v5913_v3 }
  0x6a   :  { %v5641_v10 = vld [vmem:[#allocation5 + $0x960] sm:$0xf]  ;;  %v6918_v12 = vld [vmem:[#allocation5 + $0x96c] sm:$0xf0]  ;;  %v5514_v17 = vor.u32 %v6886_v9, %v5513_v8  ;;  %3364 = vmatpush.bf16.msra.mxu1 %v5658_v6  ;;  %3377 = vmatpush.bf16.msra.mxu2 %v5786_v7 }
  0x6b   :  { %v5769_v13 = vld [vmem:[#allocation5 + $0xa60] sm:$0xf]  ;;  %v6950_v14 = vld [vmem:[#allocation5 + $0xa6c] sm:$0xf0]  ;;  %v5642_v18 = vor.u32 %v6918_v12, %v5641_v10  ;;  %3390 = vmatpush.bf16.msra.mxu3 %v5914_v11  ;;  %v646_v11 = vunpack.c.l.b16 %v103_v62 }
  0x6c   :  { %v5897_v15 = vld [vmem:[#allocation5 + $0xb60] sm:$0xf]  ;;  %v6982_v16 = vld [vmem:[#allocation5 + $0xb6c] sm:$0xf0]  ;;  %v5770_v22 = vor.u32 %v6950_v14, %v5769_v13  ;;  %3352 = vmatpush.bf16.msra.mxu0 %v5514_v17 }
  0x6d   :  { %v5497_v24 = vld [vmem:[#allocation5 + $0x840] sm:$0xf]  ;;  %v6882_v25 = vld [vmem:[#allocation5 + $0x84c] sm:$0xf0]  ;;  %v5898_v27 = vor.u32 %v6982_v16, %v5897_v15  ;;  %v647_v15 = vunpack.c.h.b16 %v103_v62 }
  0x6e   :  { %v5625_v26 = vld [vmem:[#allocation5 + $0x940] sm:$0xf]  ;;  %v6914_v28 = vld [vmem:[#allocation5 + $0x94c] sm:$0xf0]  ;;  %v5498_v33 = vor.u32 %v6882_v25, %v5497_v24  ;;  %3365 = vmatpush.bf16.msra.mxu1 %v5642_v18  ;;  %3378 = vmatpush.bf16.msra.mxu2 %v5770_v22 }
  0x6f   :  { %v5753_v29 = vld [vmem:[#allocation5 + $0xa40] sm:$0xf]  ;;  %v6946_v30 = vld [vmem:[#allocation5 + $0xa4c] sm:$0xf0]  ;;  %v5626_v36 = vor.u32 %v6914_v28, %v5625_v26  ;;  %3391 = vmatpush.bf16.msra.mxu3 %v5898_v27 }
  0x70   :  { %v5881_v31 = vld [vmem:[#allocation5 + $0xb40] sm:$0xf]  ;;  %v6978_v32 = vld [vmem:[#allocation5 + $0xb4c] sm:$0xf0]  ;;  %v5754_v37 = vor.u32 %v6946_v30, %v5753_v29  ;;  %3353 = vmatpush.bf16.msra.mxu0 %v5498_v33  ;;  %v7393_v30 = vpack.c.b16 %v646_v11, %v646_v11 }
  0x71   :  { %v5481_v34 = vld [vmem:[#allocation5 + $0x820] sm:$0xf]  ;;  %v6878_v35 = vld [vmem:[#allocation5 + $0x82c] sm:$0xf0]  ;;  %v5882_v44 = vor.u32 %v6978_v32, %v5881_v31 }
  0x72   :  { %v5609_v38 = vld [vmem:[#allocation5 + $0x920] sm:$0xf]  ;;  %v6910_v40 = vld [vmem:[#allocation5 + $0x92c] sm:$0xf0]  ;;  %v5482_v50 = vor.u32 %v6878_v35, %v5481_v34  ;;  %3366 = vmatpush.bf16.msra.mxu1 %v5626_v36  ;;  %3379 = vmatpush.bf16.msra.mxu2 %v5754_v37  ;;  %v7397_v34 = vpack.c.b16 %v647_v15, %v647_v15 }
  0x73   :  { %v5737_v41 = vld [vmem:[#allocation5 + $0xa20] sm:$0xf]  ;;  %v6942_v46 = vld [vmem:[#allocation5 + $0xa2c] sm:$0xf0]  ;;  %v5610_v54 = vor.u32 %v6910_v40, %v5609_v38  ;;  %3392 = vmatpush.bf16.msra.mxu3 %v5882_v44 }
  0x74   :  { %v5865_v47 = vld [vmem:[#allocation5 + $0xb20] sm:$0xf]  ;;  %v6974_v48 = vld [vmem:[#allocation5 + $0xb2c] sm:$0xf0]  ;;  %v5738_v55 = vor.u32 %v6942_v46, %v5737_v41  ;;  %3354 = vmatpush.bf16.msra.mxu0 %v5482_v50 }
  0x75   :  { %v5465_v49 = vld [vmem:[#allocation5 + $0x800] sm:$0xf]  ;;  %v6874_v51 = vld [vmem:[#allocation5 + $0x80c] sm:$0xf0]  ;;  %v5866_v59 = vor.u32 %v6974_v48, %v5865_v47 }
  0x76   :  { %v5593_v52 = vld [vmem:[#allocation5 + $0x900] sm:$0xf]  ;;  %v6906_v53 = vld [vmem:[#allocation5 + $0x90c] sm:$0xf0]  ;;  %v5466_v2 = vor.u32 %v6874_v51, %v5465_v49  ;;  %3367 = vmatpush.bf16.msra.mxu1 %v5610_v54  ;;  %3380 = vmatpush.bf16.msra.mxu2 %v5738_v55 }
  0x77   :  { %v5721_v56 = vld [vmem:[#allocation5 + $0xa00] sm:$0xf]  ;;  %v6938_v57 = vld [vmem:[#allocation5 + $0xa0c] sm:$0xf0]  ;;  %v5594_v7 = vor.u32 %v6906_v53, %v5593_v52  ;;  %3393 = vmatpush.bf16.msra.mxu3 %v5866_v59 }
  0x78   :  { %v102_v58 = vld [vmem:[#allocation3 + $0x20] sm:$0xff]  ;;  %v6970_v61 = vld [vmem:[#allocation5 + $0xb0c] sm:$0xf0]  ;;  %v5722_v8 = vor.u32 %v6938_v57, %v5721_v56  ;;  %3355 = vmatpush.bf16.msra.mxu0 %v5466_v2 }
  0x79   :  { %v5849_v60 = vld [vmem:[#allocation5 + $0xb00] sm:$0xf]  ;;  %v7030_v0 = vld [vmem:[#allocation5 + $0xcec] sm:$0xf0]  ;;  %v644_v6 = vunpack.c.l.b16 %v102_v58  ;;  %v645_v12 = vunpack.c.h.b16 %v102_v58 }
  0x7a   :  { %v6089_v63 = vld [vmem:[#allocation5 + $0xce0] sm:$0xf]  ;;  %v7062_v3 = vld [vmem:[#allocation5 + $0xdec] sm:$0xf0]  ;;  %v5850_v13 = vor.u32 %v6970_v61, %v5849_v60  ;;  %3368 = vmatpush.bf16.msra.mxu1 %v5594_v7  ;;  %3381 = vmatpush.bf16.msra.mxu2 %v5722_v8 }
  0x7b   :  { %v6217_v1 = vld [vmem:[#allocation5 + $0xde0] sm:$0xf]  ;;  %v7094_v5 = vld [vmem:[#allocation5 + $0xeec] sm:$0xf0]  ;;  %v6090_v14 = vor.u32 %v7030_v0, %v6089_v63  ;;  %v7391_v26 = vpack.c.b16 %v644_v6, %v644_v6  ;;  %v7395_v31 = vpack.c.b16 %v645_v12, %v645_v12 }
  0x7c   :  { %v6345_v4 = vld [vmem:[#allocation5 + $0xee0] sm:$0xf]  ;;  %v7126_v10 = vld [vmem:[#allocation5 + $0xfec] sm:$0xf0]  ;;  %v6218_v16 = vor.u32 %v7062_v3, %v6217_v1  ;;  %3394 = vmatpush.bf16.msra.mxu3 %v5850_v13 }
  0x7d   :  { %v6473_v9 = vld [vmem:[#allocation5 + $0xfe0] sm:$0xf]  ;;  %v6346_v17 = vor.u32 %v7094_v5, %v6345_v4  ;;  %v7026_v22 = vld [vmem:[#allocation5 + $0xccc] sm:$0xf0]  ;;  %3400 = vmatpush.bf16.msrb.mxu0 %v6090_v14  ;;  %3382 = vmatmul.bf16.vlgmr.msra.gmra.mxu2 %v7393_v30 }
  0x7e   :  { %v6073_v18 = vld [vmem:[#allocation5 + $0xcc0] sm:$0xf]  ;;  %v6474_v25 = vor.u32 %v7126_v10, %v6473_v9  ;;  %v7058_v27 = vld [vmem:[#allocation5 + $0xdcc] sm:$0xf0]  ;;  %3413 = vmatpush.bf16.msrb.mxu1 %v6218_v16  ;;  %3356 = vmatmul.bf16.vlgmr.msra.gmra.mxu0 %v7391_v26 }
  0x7f   :  { %v6201_v24 = vld [vmem:[#allocation5 + $0xdc0] sm:$0xf]  ;;  %v7090_v29 = vld [vmem:[#allocation5 + $0xecc] sm:$0xf0]  ;;  %v6074_v35 = vor.u32 %v7026_v22, %v6073_v18  ;;  %3426 = vmatpush.bf16.msrb.mxu2 %v6346_v17  ;;  %3369 = vmatmul.bf16.vlgmr.msra.gmra.mxu1 %v7395_v31 }
  0x80   :  { %v6329_v28 = vld [vmem:[#allocation5 + $0xec0] sm:$0xf]  ;;  %v7122_v33 = vld [vmem:[#allocation5 + $0xfcc] sm:$0xf0]  ;;  %v6202_v36 = vor.u32 %v7058_v27, %v6201_v24  ;;  %3439 = vmatpush.bf16.msrb.mxu3 %v6474_v25 }
  0x81   :  { %v6457_v32 = vld [vmem:[#allocation5 + $0xfc0] sm:$0xf]  ;;  %v6330_v37 = vor.u32 %v7090_v29, %v6329_v28  ;;  %v7022_v40 = vld [vmem:[#allocation5 + $0xcac] sm:$0xf0]  ;;  %3395 = vmatmul.bf16.vlgmr.msra.gmra.mxu3 %v7397_v34  ;;  %3401 = vmatpush.bf16.msrb.mxu0 %v6074_v35 }
  0x82   :  { %v6057_v38 = vld [vmem:[#allocation5 + $0xca0] sm:$0xf]  ;;  %v6458_v44 = vor.u32 %v7122_v33, %v6457_v32  ;;  %v7054_v46 = vld [vmem:[#allocation5 + $0xdac] sm:$0xf0]  ;;  %3414 = vmatpush.bf16.msrb.mxu1 %v6202_v36 }
  0x83   :  { %v6185_v41 = vld [vmem:[#allocation5 + $0xda0] sm:$0xf]  ;;  %v7086_v48 = vld [vmem:[#allocation5 + $0xeac] sm:$0xf0]  ;;  %v6058_v51 = vor.u32 %v7022_v40, %v6057_v38  ;;  %3427 = vmatpush.bf16.msrb.mxu2 %v6330_v37 }
  0x84   :  { %v6313_v47 = vld [vmem:[#allocation5 + $0xea0] sm:$0xf]  ;;  %v7118_v50 = vld [vmem:[#allocation5 + $0xfac] sm:$0xf0]  ;;  %v6186_v52 = vor.u32 %v7054_v46, %v6185_v41  ;;  %3440 = vmatpush.bf16.msrb.mxu3 %v6458_v44 }
  0x85   :  { %v6441_v49 = vld [vmem:[#allocation5 + $0xfa0] sm:$0xf]  ;;  %v6314_v53 = vor.u32 %v7086_v48, %v6313_v47  ;;  %v7018_v55 = vld [vmem:[#allocation5 + $0xc8c] sm:$0xf0]  ;;  %3402 = vmatpush.bf16.msrb.mxu0 %v6058_v51 }
  0x86   :  { %v6041_v54 = vld [vmem:[#allocation5 + $0xc80] sm:$0xf]  ;;  %v6442_v57 = vor.u32 %v7118_v50, %v6441_v49  ;;  %v7050_v58 = vld [vmem:[#allocation5 + $0xd8c] sm:$0xf0]  ;;  %3415 = vmatpush.bf16.msrb.mxu1 %v6186_v52 }
  0x87   :  { %v6169_v56 = vld [vmem:[#allocation5 + $0xd80] sm:$0xf]  ;;  %v7082_v60 = vld [vmem:[#allocation5 + $0xe8c] sm:$0xf0]  ;;  %v6042_v63 = vor.u32 %v7018_v55, %v6041_v54  ;;  %3428 = vmatpush.bf16.msrb.mxu2 %v6314_v53 }
  0x88   :  { %v6297_v59 = vld [vmem:[#allocation5 + $0xe80] sm:$0xf]  ;;  %v7114_v62 = vld [vmem:[#allocation5 + $0xf8c] sm:$0xf0]  ;;  %v6170_v0 = vor.u32 %v7050_v58, %v6169_v56  ;;  %3441 = vmatpush.bf16.msrb.mxu3 %v6442_v57 }
  0x89   :  { %v6425_v61 = vld [vmem:[#allocation5 + $0xf80] sm:$0xf]  ;;  %v6298_v1 = vor.u32 %v7082_v60, %v6297_v59  ;;  %v7014_v3 = vld [vmem:[#allocation5 + $0xc6c] sm:$0xf0]  ;;  %3403 = vmatpush.bf16.msrb.mxu0 %v6042_v63  ;;  %v105_v60 = vld [vmem:[#allocation3 + $0x38] sm:$0xff] }
  0x8a   :  { %v6025_v2 = vld [vmem:[#allocation5 + $0xc60] sm:$0xf]  ;;  %v6426_v5 = vor.u32 %v7114_v62, %v6425_v61  ;;  %v7046_v6 = vld [vmem:[#allocation5 + $0xd6c] sm:$0xf0]  ;;  %3416 = vmatpush.bf16.msrb.mxu1 %v6170_v0  ;;  %v6644_v61 = vld [vmem:[#allocation5 + $0xe4] sm:$0xf] }
  0x8b   :  { %v6153_v4 = vld [vmem:[#allocation5 + $0xd60] sm:$0xf]  ;;  %v7078_v8 = vld [vmem:[#allocation5 + $0xe6c] sm:$0xf0]  ;;  %v6026_v11 = vor.u32 %v7014_v3, %v6025_v2  ;;  %3429 = vmatpush.bf16.msrb.mxu2 %v6298_v1  ;;  %v4555_v62 = vld [vmem:[#allocation5 + $0xf0] sm:$0xf0] }
  0x8c   :  { %v6281_v7 = vld [vmem:[#allocation5 + $0xe60] sm:$0xf]  ;;  %v7110_v10 = vld [vmem:[#allocation5 + $0xf6c] sm:$0xf0]  ;;  %v6154_v12 = vor.u32 %v7046_v6, %v6153_v4  ;;  %3442 = vmatpush.bf16.msrb.mxu3 %v6426_v5  ;;  %v6676_v63 = vld [vmem:[#allocation5 + $0x1e4] sm:$0xf] }
  0x8d   :  { %v6409_v9 = vld [vmem:[#allocation5 + $0xf60] sm:$0xf]  ;;  %v6282_v13 = vor.u32 %v7078_v8, %v6281_v7  ;;  %v7010_v15 = vld [vmem:[#allocation5 + $0xc4c] sm:$0xf0]  ;;  %3404 = vmatpush.bf16.msrb.mxu0 %v6026_v11  ;;  %v4683_v1 = vld [vmem:[#allocation5 + $0x1f0] sm:$0xf0] }
  0x8e   :  { %v6009_v14 = vld [vmem:[#allocation5 + $0xc40] sm:$0xf]  ;;  %v6410_v17 = vor.u32 %v7110_v10, %v6409_v9  ;;  %v7042_v18 = vld [vmem:[#allocation5 + $0xd4c] sm:$0xf0]  ;;  %3417 = vmatpush.bf16.msrb.mxu1 %v6154_v12  ;;  %v6708_v2 = vld [vmem:[#allocation5 + $0x2e4] sm:$0xf]  ;;  %v650_v9 = vunpack.c.l.b16 %v105_v60  ;;  %v4558_v12 = vor.u32 %v6644_v61, %v4555_v62 }
  0x8f   :  { %v6137_v16 = vld [vmem:[#allocation5 + $0xd40] sm:$0xf]  ;;  %v7074_v24 = vld [vmem:[#allocation5 + $0xe4c] sm:$0xf0]  ;;  %v6010_v28 = vor.u32 %v7010_v15, %v6009_v14  ;;  %3430 = vmatpush.bf16.msrb.mxu2 %v6282_v13  ;;  %v4811_v3 = vld [vmem:[#allocation5 + $0x2f0] sm:$0xf0]  ;;  %v651_v13 = vunpack.c.h.b16 %v105_v60  ;;  %v4686_v14 = vor.u32 %v6676_v63, %v4683_v1 }
  0x90   :  { %v6265_v22 = vld [vmem:[#allocation5 + $0xe40] sm:$0xf]  ;;  %v7106_v27 = vld [vmem:[#allocation5 + $0xf4c] sm:$0xf0]  ;;  %v6138_v29 = vor.u32 %v7042_v18, %v6137_v16  ;;  %3443 = vmatpush.bf16.msrb.mxu3 %v6410_v17  ;;  %v6740_v7 = vld [vmem:[#allocation5 + $0x3e4] sm:$0xf]  ;;  %v4814_v15 = vor.u32 %v6708_v2, %v4811_v3 }
  0x91   :  { %v6393_v25 = vld [vmem:[#allocation5 + $0xf40] sm:$0xf]  ;;  %v6266_v32 = vor.u32 %v7074_v24, %v6265_v22  ;;  %v7006_v35 = vld [vmem:[#allocation5 + $0xc2c] sm:$0xf0]  ;;  %3405 = vmatpush.bf16.msrb.mxu0 %v6010_v28  ;;  %v4939_v8 = vld [vmem:[#allocation5 + $0x3f0] sm:$0xf0] }
  0x92   :  { %v5993_v33 = vld [vmem:[#allocation5 + $0xc20] sm:$0xf]  ;;  %v6394_v37 = vor.u32 %v7106_v27, %v6393_v25  ;;  %v7038_v38 = vld [vmem:[#allocation5 + $0xd2c] sm:$0xf0]  ;;  %3418 = vmatpush.bf16.msrb.mxu1 %v6138_v29  ;;  %v6640_v16 = vld [vmem:[#allocation5 + $0xc4] sm:$0xf]  ;;  %v4942_v22 = vor.u32 %v6740_v7, %v4939_v8  ;;  %v7405_v29 = vpack.c.b16 %v650_v9, %v650_v9 }
  0x93   :  { %v6121_v36 = vld [vmem:[#allocation5 + $0xd20] sm:$0xf]  ;;  %v7070_v41 = vld [vmem:[#allocation5 + $0xe2c] sm:$0xf0]  ;;  %v5994_v48 = vor.u32 %v7006_v35, %v5993_v33  ;;  %3431 = vmatpush.bf16.msrb.mxu2 %v6266_v32  ;;  %v4539_v17 = vld [vmem:[#allocation5 + $0xd0] sm:$0xf0] }
  0x94   :  { %v6249_v40 = vld [vmem:[#allocation5 + $0xe20] sm:$0xf]  ;;  %v7102_v46 = vld [vmem:[#allocation5 + $0xf2c] sm:$0xf0]  ;;  %v6122_v52 = vor.u32 %v7038_v38, %v6121_v36  ;;  %3444 = vmatpush.bf16.msrb.mxu3 %v6394_v37  ;;  %v6672_v18 = vld [vmem:[#allocation5 + $0x1c4] sm:$0xf]  ;;  %v7409_v36 = vpack.c.b16 %v651_v13, %v651_v13  ;;  %v4542_v37 = vor.u32 %v6640_v16, %v4539_v17 }
  0x95   :  { %v6377_v44 = vld [vmem:[#allocation5 + $0xf20] sm:$0xf]  ;;  %v7002_v49 = vld [vmem:[#allocation5 + $0xc0c] sm:$0xf0]  ;;  %v6250_v53 = vor.u32 %v7070_v41, %v6249_v40  ;;  %3406 = vmatpush.bf16.msrb.mxu0 %v5994_v48  ;;  %v4667_v25 = vld [vmem:[#allocation5 + $0x1d0] sm:$0xf0] }
  0x96   :  { %v5977_v47 = vld [vmem:[#allocation5 + $0xc00] sm:$0xf]  ;;  %v7034_v51 = vld [vmem:[#allocation5 + $0xd0c] sm:$0xf0]  ;;  %v6378_v57 = vor.u32 %v7102_v46, %v6377_v44  ;;  %3419 = vmatpush.bf16.msrb.mxu1 %v6122_v52  ;;  %v6704_v27 = vld [vmem:[#allocation5 + $0x2c4] sm:$0xf]  ;;  %v4670_v38 = vor.u32 %v6672_v18, %v4667_v25 }
  0x97   :  { %v6105_v50 = vld [vmem:[#allocation5 + $0xd00] sm:$0xf]  ;;  %v7066_v55 = vld [vmem:[#allocation5 + $0xe0c] sm:$0xf0]  ;;  %v5978_v0 = vor.u32 %v7002_v49, %v5977_v47  ;;  %3432 = vmatpush.bf16.msrb.mxu2 %v6250_v53  ;;  %v4795_v28 = vld [vmem:[#allocation5 + $0x2d0] sm:$0xf0] }
  0x98   :  { %v6233_v54 = vld [vmem:[#allocation5 + $0xe00] sm:$0xf]  ;;  %v104_v56 = vld [vmem:[#allocation3 + $0x30] sm:$0xff]  ;;  %v6106_v5 = vor.u32 %v7034_v51, %v6105_v50  ;;  %3445 = vmatpush.bf16.msrb.mxu3 %v6378_v57  ;;  %v6736_v33 = vld [vmem:[#allocation5 + $0x3c4] sm:$0xf]  ;;  %v4798_v40 = vor.u32 %v6704_v27, %v4795_v28 }
  0x99   :  { %v6361_v58 = vld [vmem:[#allocation5 + $0xf00] sm:$0xf]  ;;  %v7098_v59 = vld [vmem:[#allocation5 + $0xf0c] sm:$0xf0]  ;;  %v648_v4 = vunpack.c.l.b16 %v104_v56  ;;  %v6234_v6 = vor.u32 %v7066_v55, %v6233_v54  ;;  %v649_v10 = vunpack.c.h.b16 %v104_v56  ;;  %3407 = vmatpush.bf16.msrb.mxu0 %v5978_v0  ;;  %v4923_v35 = vld [vmem:[#allocation5 + $0x3d0] sm:$0xf0] }
  0x9a   :  { %v6362_v11 = vor.u32 %v7098_v59, %v6361_v58  ;;  %3420 = vmatpush.bf16.msrb.mxu1 %v6106_v5  ;;  %v6636_v41 = vld [vmem:[#allocation5 + $0xa4] sm:$0xf]  ;;  %v4523_v44 = vld [vmem:[#allocation5 + $0xb0] sm:$0xf0]  ;;  %v4926_v47 = vor.u32 %v6736_v33, %v4923_v35 }
  0x9b   :  { %v7403_v24 = vpack.c.b16 %v648_v4, %v648_v4  ;;  %3433 = vmatpush.bf16.msrb.mxu2 %v6234_v6  ;;  %v7407_v32 = vpack.c.b16 %v649_v10, %v649_v10  ;;  %v6668_v46 = vld [vmem:[#allocation5 + $0x1a4] sm:$0xf]  ;;  %v4651_v48 = vld [vmem:[#allocation5 + $0x1b0] sm:$0xf0]  ;;  %v4526_v53 = vor.u32 %v6636_v41, %v4523_v44 }
  0x9c   :  { %3446 = vmatpush.bf16.msrb.mxu3 %v6362_v11  ;;  %v6700_v49 = vld [vmem:[#allocation5 + $0x2a4] sm:$0xf]  ;;  %v4779_v50 = vld [vmem:[#allocation5 + $0x2b0] sm:$0xf0]  ;;  %v4654_v54 = vor.u32 %v6668_v46, %v4651_v48 }
  0x9d   :  { %3452 = vmatpush.bf16.msra.mxu0 %v4558_v12  ;;  %3421 = vmatmul.bf16.vlgmr.msrb.gmra.mxu1 %v7407_v32  ;;  %v6732_v51 = vld [vmem:[#allocation5 + $0x3a4] sm:$0xf]  ;;  %v4907_v52 = vld [vmem:[#allocation5 + $0x3b0] sm:$0xf0]  ;;  %v4782_v55 = vor.u32 %v6700_v49, %v4779_v50 }
  0x9e   :  { %3465 = vmatpush.bf16.msra.mxu1 %v4686_v14  ;;  %3408 = vmatmul.bf16.vlgmr.msrb.gmra.mxu0 %v7403_v24  ;;  %v6632_v56 = vld [vmem:[#allocation5 + $0x84] sm:$0xf]  ;;  %v4507_v57 = vld [vmem:[#allocation5 + $0x90] sm:$0xf0]  ;;  %v4910_v59 = vor.u32 %v6732_v51, %v4907_v52 }
  0x9f   :  { %3478 = vmatpush.bf16.msra.mxu2 %v4814_v15  ;;  %3447 = vmatmul.bf16.vlgmr.msrb.gmra.mxu3 %v7409_v36  ;;  %v6664_v58 = vld [vmem:[#allocation5 + $0x184] sm:$0xf]  ;;  %v4635_v60 = vld [vmem:[#allocation5 + $0x190] sm:$0xf0]  ;;  %v4510_v1 = vor.u32 %v6632_v56, %v4507_v57 }
  0xa0   :  { %3491 = vmatpush.bf16.msra.mxu3 %v4942_v22  ;;  %3434 = vmatmul.bf16.vlgmr.msrb.gmra.mxu2 %v7405_v29  ;;  %v6696_v61 = vld [vmem:[#allocation5 + $0x284] sm:$0xf]  ;;  %v4763_v62 = vld [vmem:[#allocation5 + $0x290] sm:$0xf0]  ;;  %v4638_v2 = vor.u32 %v6664_v58, %v4635_v60 }
  0xa1   :  { %3453 = vmatpush.bf16.msra.mxu0 %v4542_v37  ;;  %v6728_v63 = vld [vmem:[#allocation5 + $0x384] sm:$0xf]  ;;  %v4891_v0 = vld [vmem:[#allocation5 + $0x390] sm:$0xf0]  ;;  %v4766_v3 = vor.u32 %v6696_v61, %v4763_v62 }
  0xa2   :  { %3466 = vmatpush.bf16.msra.mxu1 %v4670_v38  ;;  %v6628_v4 = vld [vmem:[#allocation5 + $0x64] sm:$0xf]  ;;  %v4491_v5 = vld [vmem:[#allocation5 + $0x70] sm:$0xf0]  ;;  %v4894_v7 = vor.u32 %v6728_v63, %v4891_v0 }
  0xa3   :  { %3479 = vmatpush.bf16.msra.mxu2 %v4798_v40  ;;  %v6660_v6 = vld [vmem:[#allocation5 + $0x164] sm:$0xf]  ;;  %v4619_v8 = vld [vmem:[#allocation5 + $0x170] sm:$0xf0]  ;;  %v4494_v13 = vor.u32 %v6628_v4, %v4491_v5 }
  0xa4   :  { %3492 = vmatpush.bf16.msra.mxu3 %v4926_v47  ;;  %v6692_v9 = vld [vmem:[#allocation5 + $0x264] sm:$0xf]  ;;  %v4747_v10 = vld [vmem:[#allocation5 + $0x270] sm:$0xf0]  ;;  %v4622_v14 = vor.u32 %v6660_v6, %v4619_v8 }
  0xa5   :  { %3454 = vmatpush.bf16.msra.mxu0 %v4526_v53  ;;  %v6724_v11 = vld [vmem:[#allocation5 + $0x364] sm:$0xf]  ;;  %v4875_v12 = vld [vmem:[#allocation5 + $0x370] sm:$0xf0]  ;;  %v4750_v15 = vor.u32 %v6692_v9, %v4747_v10 }
  0xa6   :  { %3467 = vmatpush.bf16.msra.mxu1 %v4654_v54  ;;  %v6624_v16 = vld [vmem:[#allocation5 + $0x44] sm:$0xf]  ;;  %v4475_v17 = vld [vmem:[#allocation5 + $0x50] sm:$0xf0]  ;;  %v4878_v22 = vor.u32 %v6724_v11, %v4875_v12 }
  0xa7   :  { %3480 = vmatpush.bf16.msra.mxu2 %v4782_v55  ;;  %v6656_v18 = vld [vmem:[#allocation5 + $0x144] sm:$0xf]  ;;  %v4603_v25 = vld [vmem:[#allocation5 + $0x150] sm:$0xf0]  ;;  %v4478_v37 = vor.u32 %v6624_v16, %v4475_v17 }
  0xa8   :  { %3493 = vmatpush.bf16.msra.mxu3 %v4910_v59  ;;  %v6688_v27 = vld [vmem:[#allocation5 + $0x244] sm:$0xf]  ;;  %v4731_v28 = vld [vmem:[#allocation5 + $0x250] sm:$0xf0]  ;;  %v4606_v38 = vor.u32 %v6656_v18, %v4603_v25 }
  0xa9   :  { %3455 = vmatpush.bf16.msra.mxu0 %v4510_v1  ;;  %v6720_v33 = vld [vmem:[#allocation5 + $0x344] sm:$0xf]  ;;  %v4859_v35 = vld [vmem:[#allocation5 + $0x350] sm:$0xf0]  ;;  %v4734_v40 = vor.u32 %v6688_v27, %v4731_v28 }
  0xaa   :  { %3468 = vmatpush.bf16.msra.mxu1 %v4638_v2  ;;  %v6620_v41 = vld [vmem:[#allocation5 + $0x24] sm:$0xf]  ;;  %v4459_v44 = vld [vmem:[#allocation5 + $0x30] sm:$0xf0]  ;;  %v4862_v47 = vor.u32 %v6720_v33, %v4859_v35 }
  0xab   :  { %3481 = vmatpush.bf16.msra.mxu2 %v4766_v3  ;;  %v6652_v46 = vld [vmem:[#allocation5 + $0x124] sm:$0xf]  ;;  %v4587_v48 = vld [vmem:[#allocation5 + $0x130] sm:$0xf0]  ;;  %v4462_v53 = vor.u32 %v6620_v41, %v4459_v44 }
  0xac   :  { %3494 = vmatpush.bf16.msra.mxu3 %v4894_v7  ;;  %v6684_v49 = vld [vmem:[#allocation5 + $0x224] sm:$0xf]  ;;  %v4715_v50 = vld [vmem:[#allocation5 + $0x230] sm:$0xf0]  ;;  %v4590_v56 = vor.u32 %v6652_v46, %v4587_v48 }
  0xad   :  { %3456 = vmatpush.bf16.msra.mxu0 %v4494_v13  ;;  %v6716_v51 = vld [vmem:[#allocation5 + $0x324] sm:$0xf]  ;;  %v4843_v52 = vld [vmem:[#allocation5 + $0x330] sm:$0xf0]  ;;  %v4718_v57 = vor.u32 %v6684_v49, %v4715_v50 }
  0xae   :  { %3469 = vmatpush.bf16.msra.mxu1 %v4622_v14  ;;  %v6616_v54 = vld [vmem:[#allocation5 + $0x4] sm:$0xf]  ;;  %v4443_v55 = vld [vmem:[#allocation5 + $0x10] sm:$0xf0]  ;;  %v4846_v61 = vor.u32 %v6716_v51, %v4843_v52 }
  0xaf   :  { %3482 = vmatpush.bf16.msra.mxu2 %v4750_v15  ;;  %v6648_v58 = vld [vmem:[#allocation5 + $0x104] sm:$0xf]  ;;  %v4571_v59 = vld [vmem:[#allocation5 + $0x110] sm:$0xf0]  ;;  %v4446_v4 = vor.u32 %v6616_v54, %v4443_v55 }
  0xb0   :  { %3495 = vmatpush.bf16.msra.mxu3 %v4878_v22  ;;  %v6680_v60 = vld [vmem:[#allocation5 + $0x204] sm:$0xf]  ;;  %v4699_v62 = vld [vmem:[#allocation5 + $0x210] sm:$0xf0]  ;;  %v4574_v8 = vor.u32 %v6648_v58, %v4571_v59 }
  0xb1   :  { %3457 = vmatpush.bf16.msra.mxu0 %v4478_v37  ;;  %v6712_v63 = vld [vmem:[#allocation5 + $0x304] sm:$0xf]  ;;  %v4827_v0 = vld [vmem:[#allocation5 + $0x310] sm:$0xf0]  ;;  %v4702_v9 = vor.u32 %v6680_v60, %v4699_v62 }
  0xb2   :  { %3470 = vmatpush.bf16.msra.mxu1 %v4606_v38  ;;  %v6772_v1 = vld [vmem:[#allocation5 + $0x4e4] sm:$0xf]  ;;  %v5067_v2 = vld [vmem:[#allocation5 + $0x4f0] sm:$0xf0]  ;;  %v4830_v12 = vor.u32 %v6712_v63, %v4827_v0 }
  0xb3   :  { %3483 = vmatpush.bf16.msra.mxu2 %v4734_v40  ;;  %v6804_v3 = vld [vmem:[#allocation5 + $0x5e4] sm:$0xf]  ;;  %v5195_v5 = vld [vmem:[#allocation5 + $0x5f0] sm:$0xf0]  ;;  %v5070_v13 = vor.u32 %v6772_v1, %v5067_v2 }
  0xb4   :  { %3496 = vmatpush.bf16.msra.mxu3 %v4862_v47  ;;  %v6836_v6 = vld [vmem:[#allocation5 + $0x6e4] sm:$0xf]  ;;  %v5323_v7 = vld [vmem:[#allocation5 + $0x6f0] sm:$0xf0]  ;;  %v5198_v14 = vor.u32 %v6804_v3, %v5195_v5 }
  0xb5   :  { %3458 = vmatpush.bf16.msra.mxu0 %v4462_v53  ;;  %v6868_v10 = vld [vmem:[#allocation5 + $0x7e4] sm:$0xf]  ;;  %v5451_v11 = vld [vmem:[#allocation5 + $0x7f0] sm:$0xf0]  ;;  %v5326_v15 = vor.u32 %v6836_v6, %v5323_v7 }
  0xb6   :  { %3471 = vmatpush.bf16.msra.mxu1 %v4590_v56  ;;  %v6768_v16 = vld [vmem:[#allocation5 + $0x4c4] sm:$0xf]  ;;  %v5051_v17 = vld [vmem:[#allocation5 + $0x4d0] sm:$0xf0]  ;;  %v5454_v22 = vor.u32 %v6868_v10, %v5451_v11  ;;  %v618_v11 = vld [vmem:[#allocation7] sm:$0xf] }
  0xb7   :  { %3484 = vmatpush.bf16.msra.mxu2 %v4718_v57  ;;  %v6800_v18 = vld [vmem:[#allocation5 + $0x5c4] sm:$0xf]  ;;  %v5179_v25 = vld [vmem:[#allocation5 + $0x5d0] sm:$0xf0]  ;;  %v5054_v37 = vor.u32 %v6768_v16, %v5051_v17 }
  0xb8   :  { %3497 = vmatpush.bf16.msra.mxu3 %v4846_v61  ;;  %v6832_v27 = vld [vmem:[#allocation5 + $0x6c4] sm:$0xf]  ;;  %v5307_v28 = vld [vmem:[#allocation5 + $0x6d0] sm:$0xf0]  ;;  %v5182_v38 = vor.u32 %v6800_v18, %v5179_v25  ;;  %v620_v25 = vperm.slane %v618_v11, 0 }
  0xb9   :  { %3459 = vmatpush.bf16.msra.mxu0 %v4446_v4  ;;  %v6864_v33 = vld [vmem:[#allocation5 + $0x7c4] sm:$0xf]  ;;  %v5435_v35 = vld [vmem:[#allocation5 + $0x7d0] sm:$0xf0]  ;;  %v5310_v40 = vor.u32 %v6832_v27, %v5307_v28 }
  0xba   :  { %3472 = vmatpush.bf16.msra.mxu1 %v4574_v8  ;;  %v6764_v41 = vld [vmem:[#allocation5 + $0x4a4] sm:$0xf]  ;;  %v5035_v44 = vld [vmem:[#allocation5 + $0x4b0] sm:$0xf0]  ;;  %v5438_v47 = vor.u32 %v6864_v33, %v5435_v35 }
  0xbb   :  { %3485 = vmatpush.bf16.msra.mxu2 %v4702_v9  ;;  %v6796_v46 = vld [vmem:[#allocation5 + $0x5a4] sm:$0xf]  ;;  %v5163_v48 = vld [vmem:[#allocation5 + $0x5b0] sm:$0xf0]  ;;  %v5038_v53 = vor.u32 %v6764_v41, %v5035_v44 }
  0xbc   :  { %3498 = vmatpush.bf16.msra.mxu3 %v4830_v12  ;;  %v6828_v49 = vld [vmem:[#allocation5 + $0x6a4] sm:$0xf]  ;;  %v5291_v50 = vld [vmem:[#allocation5 + $0x6b0] sm:$0xf0]  ;;  %3460 = vmatmul.bf16.vlgmr.msra.gmra.mxu0 %v7369_v20  ;;  %v5166_v54 = vor.u32 %v6796_v46, %v5163_v48 }
  0xbd   :  { %3504 = vmatpush.bf16.msrb.mxu0 %v5070_v13  ;;  %v6860_v51 = vld [vmem:[#allocation5 + $0x7a4] sm:$0xf]  ;;  %v5419_v52 = vld [vmem:[#allocation5 + $0x7b0] sm:$0xf0]  ;;  %3473 = vmatmul.bf16.vlgmr.msra.gmra.mxu1 %v7373_v23  ;;  %v5294_v55 = vor.u32 %v6828_v49, %v5291_v50 }
  0xbe   :  { %3517 = vmatpush.bf16.msrb.mxu1 %v5198_v14  ;;  %3486 = vmatmul.bf16.vlgmr.msra.gmra.mxu2 %v7367_v19  ;;  %v6760_v56 = vld [vmem:[#allocation5 + $0x484] sm:$0xf]  ;;  %v5019_v57 = vld [vmem:[#allocation5 + $0x490] sm:$0xf0]  ;;  %v5422_v59 = vor.u32 %v6860_v51, %v5419_v52 }
  0xbf   :  { %3530 = vmatpush.bf16.msrb.mxu2 %v5326_v15  ;;  %3499 = vmatmul.bf16.vlgmr.msra.gmra.mxu3 %v7371_v21  ;;  %v6792_v58 = vld [vmem:[#allocation5 + $0x584] sm:$0xf]  ;;  %v5147_v60 = vld [vmem:[#allocation5 + $0x590] sm:$0xf0]  ;;  %v5022_v1 = vor.u32 %v6760_v56, %v5019_v57 }
  0xc0   :  { %3543 = vmatpush.bf16.msrb.mxu3 %v5454_v22  ;;  %v6824_v61 = vld [vmem:[#allocation5 + $0x684] sm:$0xf]  ;;  %v5275_v62 = vld [vmem:[#allocation5 + $0x690] sm:$0xf0]  ;;  %v5150_v3 = vor.u32 %v6792_v58, %v5147_v60 }
  0xc1   :  { %3505 = vmatpush.bf16.msrb.mxu0 %v5054_v37  ;;  %v6856_v63 = vld [vmem:[#allocation5 + $0x784] sm:$0xf]  ;;  %v5403_v0 = vld [vmem:[#allocation5 + $0x790] sm:$0xf0]  ;;  %v5278_v4 = vor.u32 %v6824_v61, %v5275_v62 }
  0xc2   :  { %3518 = vmatpush.bf16.msrb.mxu1 %v5182_v38  ;;  %v6756_v2 = vld [vmem:[#allocation5 + $0x464] sm:$0xf]  ;;  %v5003_v5 = vld [vmem:[#allocation5 + $0x470] sm:$0xf0]  ;;  %v5406_v8 = vor.u32 %v6856_v63, %v5403_v0 }
  0xc3   :  { %3531 = vmatpush.bf16.msrb.mxu2 %v5310_v40  ;;  %v6788_v6 = vld [vmem:[#allocation5 + $0x564] sm:$0xf]  ;;  %v5131_v7 = vld [vmem:[#allocation5 + $0x570] sm:$0xf0]  ;;  %v5006_v14 = vor.u32 %v6756_v2, %v5003_v5 }
  0xc4   :  { %3544 = vmatpush.bf16.msrb.mxu3 %v5438_v47  ;;  %v6820_v9 = vld [vmem:[#allocation5 + $0x664] sm:$0xf]  ;;  %v5259_v10 = vld [vmem:[#allocation5 + $0x670] sm:$0xf0]  ;;  %v5134_v16 = vor.u32 %v6788_v6, %v5131_v7 }
  0xc5   :  { %3506 = vmatpush.bf16.msrb.mxu0 %v5038_v53  ;;  %v6852_v12 = vld [vmem:[#allocation5 + $0x764] sm:$0xf]  ;;  %v5387_v13 = vld [vmem:[#allocation5 + $0x770] sm:$0xf0]  ;;  %v5262_v17 = vor.u32 %v6820_v9, %v5259_v10  ;;  %v3292_v9 = vpop.f32.mrf.mxu3 }
  0xc6   :  { %3519 = vmatpush.bf16.msrb.mxu1 %v5166_v54  ;;  %v6752_v15 = vld [vmem:[#allocation5 + $0x444] sm:$0xf]  ;;  %v4987_v18 = vld [vmem:[#allocation5 + $0x450] sm:$0xf0]  ;;  %v5390_v27 = vor.u32 %v6852_v12, %v5387_v13  ;;  %v3253_v41 = vpop.f32.mrf.mxu0  ;;  %v3266_v51 = vpop.f32.mrf.mxu1 }
  0xc7   :  { %3532 = vmatpush.bf16.msrb.mxu2 %v5294_v55  ;;  %v6784_v22 = vld [vmem:[#allocation5 + $0x544] sm:$0xf]  ;;  %v5115_v28 = vld [vmem:[#allocation5 + $0x550] sm:$0xf0]  ;;  %v4990_v40 = vor.u32 %v6752_v15, %v4987_v18  ;;  %v3254_v50 = vadd.f32 %v3253_v41, %v620_v25 }
  0xc8   :  { %3545 = vmatpush.bf16.msrb.mxu3 %v5422_v59  ;;  %v6816_v33 = vld [vmem:[#allocation5 + $0x644] sm:$0xf]  ;;  %v5243_v35 = vld [vmem:[#allocation5 + $0x650] sm:$0xf0]  ;;  %v5118_v44 = vor.u32 %v6784_v22, %v5115_v28 }
  0xc9   :  { %3507 = vmatpush.bf16.msrb.mxu0 %v5022_v1  ;;  %v6848_v37 = vld [vmem:[#allocation5 + $0x744] sm:$0xf]  ;;  %v5371_v38 = vld [vmem:[#allocation5 + $0x750] sm:$0xf0]  ;;  %v5246_v46 = vor.u32 %v6816_v33, %v5243_v35  ;;  %v3267_v58 = vadd.f32 %v3266_v51, %v3254_v50 }
  0xca   :  { %3520 = vmatpush.bf16.msrb.mxu1 %v5150_v3  ;;  %v6748_v47 = vld [vmem:[#allocation5 + $0x424] sm:$0xf]  ;;  %v4971_v48 = vld [vmem:[#allocation5 + $0x430] sm:$0xf0]  ;;  %v5374_v52 = vor.u32 %v6848_v37, %v5371_v38  ;;  %v3279_v3 = vpop.f32.mrf.mxu2 }
  0xcb   :  { %3533 = vmatpush.bf16.msrb.mxu2 %v5278_v4  ;;  %v6780_v49 = vld [vmem:[#allocation5 + $0x524] sm:$0xf]  ;;  %v5099_v53 = vld [vmem:[#allocation5 + $0x530] sm:$0xf0]  ;;  %v4974_v59 = vor.u32 %v6748_v47, %v4971_v48 }
  0xcc   :  { %3546 = vmatpush.bf16.msrb.mxu3 %v5406_v8  ;;  %v6812_v54 = vld [vmem:[#allocation5 + $0x624] sm:$0xf]  ;;  %v5227_v55 = vld [vmem:[#allocation5 + $0x630] sm:$0xf0]  ;;  %v5102_v62 = vor.u32 %v6780_v49, %v5099_v53  ;;  %v3280_v8 = vadd.f32 %v3279_v3, %v3267_v58 }
  0xcd   :  { %3508 = vmatpush.bf16.msrb.mxu0 %v5006_v14  ;;  %v6844_v56 = vld [vmem:[#allocation5 + $0x724] sm:$0xf]  ;;  %v5355_v57 = vld [vmem:[#allocation5 + $0x730] sm:$0xf0]  ;;  %v5230_v63 = vor.u32 %v6812_v54, %v5227_v55  ;;  %v3294_v55 = vpop.f32.mrf.mxu3 }
  0xce   :  { %3521 = vmatpush.bf16.msrb.mxu1 %v5134_v16  ;;  %v6744_v60 = vld [vmem:[#allocation5 + $0x404] sm:$0xf]  ;;  %v4955_v61 = vld [vmem:[#allocation5 + $0x410] sm:$0xf0]  ;;  %v5358_v4 = vor.u32 %v6844_v56, %v5355_v57  ;;  %v3255_v18 = vpop.f32.mrf.mxu0  ;;  %v3268_v33 = vpop.f32.mrf.mxu1 }
  0xcf   :  { %3534 = vmatpush.bf16.msrb.mxu2 %v5262_v17  ;;  %v6776_v0 = vld [vmem:[#allocation5 + $0x504] sm:$0xf]  ;;  %v5083_v1 = vld [vmem:[#allocation5 + $0x510] sm:$0xf0]  ;;  %v4958_v13 = vor.u32 %v6744_v60, %v4955_v61  ;;  %v7419_v17 = vadd.f32 %v3292_v9, %v3280_v8 }
  0xd0   :  { %3547 = vmatpush.bf16.msrb.mxu3 %v5390_v27  ;;  %v6808_v2 = vld [vmem:[#allocation5 + $0x604] sm:$0xf]  ;;  %v5211_v5 = vld [vmem:[#allocation5 + $0x610] sm:$0xf0]  ;;  %v5086_v22 = vor.u32 %v6776_v0, %v5083_v1 }
  0xd1   :  { %3509 = vmatpush.bf16.msrb.mxu0 %v4990_v40  ;;  %v6840_v6 = vld [vmem:[#allocation5 + $0x704] sm:$0xf]  ;;  %v5339_v7 = vld [vmem:[#allocation5 + $0x710] sm:$0xf0]  ;;  %v5214_v25 = vor.u32 %v6808_v2, %v5211_v5 }
  0xd2   :  { %3522 = vmatpush.bf16.msrb.mxu1 %v5118_v44  ;;  %v6900_v10 = vld [vmem:[#allocation5 + $0x8e4] sm:$0xf]  ;;  %v5579_v11 = vld [vmem:[#allocation5 + $0x8f0] sm:$0xf0]  ;;  %v5342_v35 = vor.u32 %v6840_v6, %v5339_v7  ;;  %v3281_v53 = vpop.f32.mrf.mxu2 }
  0xd3   :  { %3535 = vmatpush.bf16.msrb.mxu2 %v5246_v46  ;;  %v6932_v12 = vld [vmem:[#allocation5 + $0x9e4] sm:$0xf]  ;;  %v5707_v14 = vld [vmem:[#allocation5 + $0x9f0] sm:$0xf0]  ;;  %v5582_v37 = vor.u32 %v6900_v10, %v5579_v11 }
  0xd4   :  { %3548 = vmatpush.bf16.msrb.mxu3 %v5374_v52  ;;  %v6964_v15 = vld [vmem:[#allocation5 + $0xae4] sm:$0xf]  ;;  %v5835_v16 = vld [vmem:[#allocation5 + $0xaf0] sm:$0xf0]  ;;  %v5710_v38 = vor.u32 %v6932_v12, %v5707_v14 }
  0xd5   :  { %3510 = vmatpush.bf16.msrb.mxu0 %v4974_v59  ;;  %v6996_v27 = vld [vmem:[#allocation5 + $0xbe4] sm:$0xf]  ;;  %v5963_v28 = vld [vmem:[#allocation5 + $0xbf0] sm:$0xf0]  ;;  %v5838_v40 = vor.u32 %v6964_v15, %v5835_v16 }
  0xd6   :  { %3523 = vmatpush.bf16.msrb.mxu1 %v5102_v62  ;;  %v6896_v41 = vld [vmem:[#allocation5 + $0x8c4] sm:$0xf]  ;;  %v5563_v44 = vld [vmem:[#allocation5 + $0x8d0] sm:$0xf0]  ;;  %v5966_v47 = vor.u32 %v6996_v27, %v5963_v28 }
  0xd7   :  { %3536 = vmatpush.bf16.msrb.mxu2 %v5230_v63  ;;  %v6928_v46 = vld [vmem:[#allocation5 + $0x9c4] sm:$0xf]  ;;  %v5691_v48 = vld [vmem:[#allocation5 + $0x9d0] sm:$0xf0]  ;;  %v5566_v54 = vor.u32 %v6896_v41, %v5563_v44 }
  0xd8   :  { %3549 = vmatpush.bf16.msrb.mxu3 %v5358_v4  ;;  %v6960_v49 = vld [vmem:[#allocation5 + $0xac4] sm:$0xf]  ;;  %v5819_v50 = vld [vmem:[#allocation5 + $0xad0] sm:$0xf0]  ;;  %v5694_v56 = vor.u32 %v6928_v46, %v5691_v48 }
  0xd9   :  { %3511 = vmatpush.bf16.msrb.mxu0 %v4958_v13  ;;  %v6992_v51 = vld [vmem:[#allocation5 + $0xbc4] sm:$0xf]  ;;  %v5947_v52 = vld [vmem:[#allocation5 + $0xbd0] sm:$0xf0]  ;;  %v5822_v57 = vor.u32 %v6960_v49, %v5819_v50 }
  0xda   :  { %3524 = vmatpush.bf16.msrb.mxu1 %v5086_v22  ;;  %v6892_v58 = vld [vmem:[#allocation5 + $0x8a4] sm:$0xf]  ;;  %v5547_v59 = vld [vmem:[#allocation5 + $0x8b0] sm:$0xf0]  ;;  %v5950_v61 = vor.u32 %v6992_v51, %v5947_v52  ;;  %v3305_v16 = vpop.f32.mrf.mxu0 }
  0xdb   :  { %3537 = vmatpush.bf16.msrb.mxu2 %v5214_v25  ;;  %v6924_v60 = vld [vmem:[#allocation5 + $0x9a4] sm:$0xf]  ;;  %v5675_v62 = vld [vmem:[#allocation5 + $0x9b0] sm:$0xf0]  ;;  %v5550_v3 = vor.u32 %v6892_v58, %v5547_v59  ;;  %v3306_v33 = vadd.f32 %v3305_v16, %v7419_v17 }
  0xdc   :  { %3550 = vmatpush.bf16.msrb.mxu3 %v5342_v35  ;;  %v6956_v63 = vld [vmem:[#allocation5 + $0xaa4] sm:$0xf]  ;;  %v5803_v0 = vld [vmem:[#allocation5 + $0xab0] sm:$0xf0]  ;;  %3512 = vmatmul.bf16.vlgmr.msrb.gmra.mxu0 %v7381_v42  ;;  %v5678_v4 = vor.u32 %v6924_v60, %v5675_v62  ;;  %v3318_v35 = vpop.f32.mrf.mxu1 }
  0xdd   :  { %3556 = vmatpush.bf16.msra.mxu0 %v5582_v37  ;;  %v6988_v1 = vld [vmem:[#allocation5 + $0xba4] sm:$0xf]  ;;  %v5931_v2 = vld [vmem:[#allocation5 + $0xbb0] sm:$0xf0]  ;;  %3525 = vmatmul.bf16.vlgmr.msrb.gmra.mxu1 %v7385_v45  ;;  %v5806_v5 = vor.u32 %v6956_v63, %v5803_v0 }
  0xde   :  { %3569 = vmatpush.bf16.msra.mxu1 %v5710_v38  ;;  %3538 = vmatmul.bf16.vlgmr.msrb.gmra.mxu2 %v7379_v39  ;;  %v6888_v6 = vld [vmem:[#allocation5 + $0x884] sm:$0xf]  ;;  %v5531_v7 = vld [vmem:[#allocation5 + $0x890] sm:$0xf0]  ;;  %v5934_v9 = vor.u32 %v6988_v1, %v5931_v2 }
  0xdf   :  { %3582 = vmatpush.bf16.msra.mxu2 %v5838_v40  ;;  %3551 = vmatmul.bf16.vlgmr.msrb.gmra.mxu3 %v7383_v43  ;;  %v6920_v8 = vld [vmem:[#allocation5 + $0x984] sm:$0xf]  ;;  %v5659_v10 = vld [vmem:[#allocation5 + $0x990] sm:$0xf0]  ;;  %v5534_v15 = vor.u32 %v6888_v6, %v5531_v7 }
  0xe0   :  { %3595 = vmatpush.bf16.msra.mxu3 %v5966_v47  ;;  %v6952_v11 = vld [vmem:[#allocation5 + $0xa84] sm:$0xf]  ;;  %v5787_v12 = vld [vmem:[#allocation5 + $0xa90] sm:$0xf0]  ;;  %v5662_v18 = vor.u32 %v6920_v8, %v5659_v10  ;;  %v3319_v47 = vadd.f32 %v3318_v35, %v3306_v33 }
  0xe1   :  { %3557 = vmatpush.bf16.msra.mxu0 %v5566_v54  ;;  %v6984_v13 = vld [vmem:[#allocation5 + $0xb84] sm:$0xf]  ;;  %v5915_v14 = vld [vmem:[#allocation5 + $0xb90] sm:$0xf0]  ;;  %v5790_v22 = vor.u32 %v6952_v11, %v5787_v12  ;;  %v3331_v54 = vpop.f32.mrf.mxu2 }
  0xe2   :  { %3570 = vmatpush.bf16.msra.mxu1 %v5694_v56  ;;  %v6884_v25 = vld [vmem:[#allocation5 + $0x864] sm:$0xf]  ;;  %v5515_v27 = vld [vmem:[#allocation5 + $0x870] sm:$0xf0]  ;;  %v5918_v37 = vor.u32 %v6984_v13, %v5915_v14  ;;  %v3332_v58 = vadd.f32 %v3331_v54, %v3319_v47  ;;  %v3307_v0 = vpop.f32.mrf.mxu0 }
  0xe3   :  { %3583 = vmatpush.bf16.msra.mxu2 %v5822_v57  ;;  %v6916_v28 = vld [vmem:[#allocation5 + $0x964] sm:$0xf]  ;;  %v5643_v38 = vld [vmem:[#allocation5 + $0x970] sm:$0xf0]  ;;  %v5518_v48 = vor.u32 %v6884_v25, %v5515_v27  ;;  %v3344_v59 = vpop.f32.mrf.mxu3 }
  0xe4   :  { %3596 = vmatpush.bf16.msra.mxu3 %v5950_v61  ;;  %v6948_v40 = vld [vmem:[#allocation5 + $0xa64] sm:$0xf]  ;;  %v5771_v41 = vld [vmem:[#allocation5 + $0xa70] sm:$0xf0]  ;;  %v5646_v49 = vor.u32 %v6916_v28, %v5643_v38  ;;  %v7426_v63 = vadd.f32 %v3344_v59, %v3332_v58  ;;  %v3320_v6 = vpop.f32.mrf.mxu1 }
  0xe5   :  { %3558 = vmatpush.bf16.msra.mxu0 %v5550_v3  ;;  %v6980_v44 = vld [vmem:[#allocation5 + $0xb64] sm:$0xf]  ;;  %v5899_v46 = vld [vmem:[#allocation5 + $0xb70] sm:$0xf0]  ;;  %v5774_v50 = vor.u32 %v6948_v40, %v5771_v41 }
  0xe6   :  { %3571 = vmatpush.bf16.msra.mxu1 %v5678_v4  ;;  %v6880_v51 = vld [vmem:[#allocation5 + $0x844] sm:$0xf]  ;;  %v5499_v52 = vld [vmem:[#allocation5 + $0x850] sm:$0xf0]  ;;  %v5902_v17 = vor.u32 %v6980_v44, %v5899_v46 }
  0xe7   :  { %3584 = vmatpush.bf16.msra.mxu2 %v5806_v5  ;;  %v6912_v53 = vld [vmem:[#allocation5 + $0x944] sm:$0xf]  ;;  %v5627_v55 = vld [vmem:[#allocation5 + $0x950] sm:$0xf0]  ;;  %v5502_v62 = vor.u32 %v6880_v51, %v5499_v52 }
  0xe8   :  { %3597 = vmatpush.bf16.msra.mxu3 %v5934_v9  ;;  %v6944_v56 = vld [vmem:[#allocation5 + $0xa44] sm:$0xf]  ;;  %v5755_v57 = vld [vmem:[#allocation5 + $0xa50] sm:$0xf0]  ;;  %v5630_v1 = vor.u32 %v6912_v53, %v5627_v55 }
  0xe9   :  { %3559 = vmatpush.bf16.msra.mxu0 %v5534_v15  ;;  %v6976_v60 = vld [vmem:[#allocation5 + $0xb44] sm:$0xf]  ;;  %v5883_v61 = vld [vmem:[#allocation5 + $0xb50] sm:$0xf0]  ;;  %v5758_v2 = vor.u32 %v6944_v56, %v5755_v57  ;;  %v3333_v28 = vpop.f32.mrf.mxu2 }
  0xea   :  { %3572 = vmatpush.bf16.msra.mxu1 %v5662_v18  ;;  %v6876_v3 = vld [vmem:[#allocation5 + $0x824] sm:$0xf]  ;;  %v5483_v4 = vld [vmem:[#allocation5 + $0x830] sm:$0xf0]  ;;  %v5886_v7 = vor.u32 %v6976_v60, %v5883_v61 }
  0xeb   :  { %3585 = vmatpush.bf16.msra.mxu2 %v5790_v22  ;;  %v6908_v5 = vld [vmem:[#allocation5 + $0x924] sm:$0xf]  ;;  %v5611_v8 = vld [vmem:[#allocation5 + $0x930] sm:$0xf0]  ;;  %v5486_v13 = vor.u32 %v6876_v3, %v5483_v4  ;;  %v3346_v40 = vpop.f32.mrf.mxu3 }
  0xec   :  { %3598 = vmatpush.bf16.msra.mxu3 %v5918_v37  ;;  %v6940_v9 = vld [vmem:[#allocation5 + $0xa24] sm:$0xf]  ;;  %v5739_v10 = vld [vmem:[#allocation5 + $0xa30] sm:$0xf0]  ;;  %v5614_v16 = vor.u32 %v6908_v5, %v5611_v8 }
  0xed   :  { %3560 = vmatpush.bf16.msra.mxu0 %v5518_v48  ;;  %v6972_v11 = vld [vmem:[#allocation5 + $0xb24] sm:$0xf]  ;;  %v5867_v12 = vld [vmem:[#allocation5 + $0xb30] sm:$0xf0]  ;;  %v5742_v18 = vor.u32 %v6940_v9, %v5739_v10 }
  0xee   :  { %3573 = vmatpush.bf16.msra.mxu1 %v5646_v49  ;;  %v6872_v14 = vld [vmem:[#allocation5 + $0x804] sm:$0xf]  ;;  %v5467_v15 = vld [vmem:[#allocation5 + $0x810] sm:$0xf0]  ;;  %v5870_v33 = vor.u32 %v6972_v11, %v5867_v12 }
  0xef   :  { %3586 = vmatpush.bf16.msra.mxu2 %v5774_v50  ;;  %v6904_v22 = vld [vmem:[#allocation5 + $0x904] sm:$0xf]  ;;  %v5595_v25 = vld [vmem:[#allocation5 + $0x910] sm:$0xf0]  ;;  %v5470_v47 = vor.u32 %v6872_v14, %v5467_v15 }
  0xf0   :  { %3599 = vmatpush.bf16.msra.mxu3 %v5902_v17  ;;  %v6936_v27 = vld [vmem:[#allocation5 + $0xa04] sm:$0xf]  ;;  %v5723_v35 = vld [vmem:[#allocation5 + $0xa10] sm:$0xf0]  ;;  %v5598_v51 = vor.u32 %v6904_v22, %v5595_v25 }
  0xf1   :  { %3561 = vmatpush.bf16.msra.mxu0 %v5502_v62  ;;  %v6968_v37 = vld [vmem:[#allocation5 + $0xb04] sm:$0xf]  ;;  %v5851_v38 = vld [vmem:[#allocation5 + $0xb10] sm:$0xf0]  ;;  %v5726_v52 = vor.u32 %v6936_v27, %v5723_v35 }
  0xf2   :  { %3574 = vmatpush.bf16.msra.mxu1 %v5630_v1  ;;  %v7028_v41 = vld [vmem:[#allocation5 + $0xce4] sm:$0xf]  ;;  %v6091_v44 = vld [vmem:[#allocation5 + $0xcf0] sm:$0xf0]  ;;  %v5854_v17 = vor.u32 %v6968_v37, %v5851_v38 }
  0xf3   :  { %3587 = vmatpush.bf16.msra.mxu2 %v5758_v2  ;;  %v7060_v46 = vld [vmem:[#allocation5 + $0xde4] sm:$0xf]  ;;  %v6219_v48 = vld [vmem:[#allocation5 + $0xdf0] sm:$0xf0]  ;;  %v6094_v55 = vor.u32 %v7028_v41, %v6091_v44 }
  0xf4   :  { %3600 = vmatpush.bf16.msra.mxu3 %v5886_v7  ;;  %v7092_v49 = vld [vmem:[#allocation5 + $0xee4] sm:$0xf]  ;;  %v6347_v50 = vld [vmem:[#allocation5 + $0xef0] sm:$0xf0]  ;;  %v6222_v56 = vor.u32 %v7060_v46, %v6219_v48 }
  0xf5   :  { %3562 = vmatpush.bf16.msra.mxu0 %v5486_v13  ;;  %v7124_v53 = vld [vmem:[#allocation5 + $0xfe4] sm:$0xf]  ;;  %v6475_v54 = vld [vmem:[#allocation5 + $0xff0] sm:$0xf0]  ;;  %v6350_v57 = vor.u32 %v7092_v49, %v6347_v50 }
  0xf6   :  { %3575 = vmatpush.bf16.msra.mxu1 %v5614_v16  ;;  %v7024_v58 = vld [vmem:[#allocation5 + $0xcc4] sm:$0xf]  ;;  %v6075_v59 = vld [vmem:[#allocation5 + $0xcd0] sm:$0xf0]  ;;  %v6478_v61 = vor.u32 %v7124_v53, %v6475_v54 }
  0xf7   :  { %3588 = vmatpush.bf16.msra.mxu2 %v5742_v18  ;;  %v7056_v60 = vld [vmem:[#allocation5 + $0xdc4] sm:$0xf]  ;;  %v6203_v62 = vld [vmem:[#allocation5 + $0xdd0] sm:$0xf0]  ;;  %v6078_v4 = vor.u32 %v7024_v58, %v6075_v59 }
  0xf8   :  { %3601 = vmatpush.bf16.msra.mxu3 %v5870_v33  ;;  %v7088_v0 = vld [vmem:[#allocation5 + $0xec4] sm:$0xf]  ;;  %v6331_v1 = vld [vmem:[#allocation5 + $0xed0] sm:$0xf0]  ;;  %v6206_v5 = vor.u32 %v7056_v60, %v6203_v62 }
  0xf9   :  { %3563 = vmatpush.bf16.msra.mxu0 %v5470_v47  ;;  %v7120_v2 = vld [vmem:[#allocation5 + $0xfc4] sm:$0xf]  ;;  %v6459_v3 = vld [vmem:[#allocation5 + $0xfd0] sm:$0xf0]  ;;  %v6334_v6 = vor.u32 %v7088_v0, %v6331_v1 }
  0xfa   :  { %3576 = vmatpush.bf16.msra.mxu1 %v5598_v51  ;;  %v7020_v7 = vld [vmem:[#allocation5 + $0xca4] sm:$0xf]  ;;  %v6059_v8 = vld [vmem:[#allocation5 + $0xcb0] sm:$0xf0]  ;;  %v6462_v10 = vor.u32 %v7120_v2, %v6459_v3 }
  0xfb   :  { %3589 = vmatpush.bf16.msra.mxu2 %v5726_v52  ;;  %v7052_v9 = vld [vmem:[#allocation5 + $0xda4] sm:$0xf]  ;;  %v6187_v11 = vld [vmem:[#allocation5 + $0xdb0] sm:$0xf0]  ;;  %v6062_v16 = vor.u32 %v7020_v7, %v6059_v8  ;;  %v3357_v40 = vpop.f32.mrf.mxu0 }
  0xfc   :  { %3602 = vmatpush.bf16.msra.mxu3 %v5854_v17  ;;  %3564 = vmatmul.bf16.vlgmr.msra.gmra.mxu0 %v7391_v26  ;;  %v7084_v12 = vld [vmem:[#allocation5 + $0xea4] sm:$0xf]  ;;  %v6315_v13 = vld [vmem:[#allocation5 + $0xeb0] sm:$0xf0]  ;;  %v6190_v18 = vor.u32 %v7052_v9, %v6187_v11  ;;  %v3358_v46 = vadd.f32 %v3357_v40, %v7426_v63  ;;  %v3370_v48 = vpop.f32.mrf.mxu1 }
  0xfd   :  { %3608 = vmatpush.bf16.msrb.mxu0 %v6094_v55  ;;  %3577 = vmatmul.bf16.vlgmr.msra.gmra.mxu1 %v7395_v31  ;;  %v7116_v14 = vld [vmem:[#allocation5 + $0xfa4] sm:$0xf]  ;;  %v6443_v15 = vld [vmem:[#allocation5 + $0xfb0] sm:$0xf0]  ;;  %v6318_v22 = vor.u32 %v7084_v12, %v6315_v13 }
  0xfe   :  { %3621 = vmatpush.bf16.msrb.mxu1 %v6222_v56  ;;  %3590 = vmatmul.bf16.vlgmr.msra.gmra.mxu2 %v7393_v30  ;;  %v7016_v25 = vld [vmem:[#allocation5 + $0xc84] sm:$0xf]  ;;  %v6043_v27 = vld [vmem:[#allocation5 + $0xc90] sm:$0xf0]  ;;  %v6446_v33 = vor.u32 %v7116_v14, %v6443_v15  ;;  %v3371_v17 = vadd.f32 %v3370_v48, %v3358_v46 }
  0xff   :  { %3634 = vmatpush.bf16.msrb.mxu2 %v6350_v57  ;;  %3603 = vmatmul.bf16.vlgmr.msra.gmra.mxu3 %v7397_v34  ;;  %v7048_v28 = vld [vmem:[#allocation5 + $0xd84] sm:$0xf]  ;;  %v6171_v35 = vld [vmem:[#allocation5 + $0xd90] sm:$0xf0]  ;;  %v6046_v47 = vor.u32 %v7016_v25, %v6043_v27 }
 0x100   :  { %3647 = vmatpush.bf16.msrb.mxu3 %v6478_v61  ;;  %v7080_v37 = vld [vmem:[#allocation5 + $0xe84] sm:$0xf]  ;;  %v6299_v38 = vld [vmem:[#allocation5 + $0xe90] sm:$0xf0]  ;;  %v6174_v49 = vor.u32 %v7048_v28, %v6171_v35  ;;  %v3383_v3 = vpop.f32.mrf.mxu2 }
 0x101   :  { %3609 = vmatpush.bf16.msrb.mxu0 %v6078_v4  ;;  %v7112_v41 = vld [vmem:[#allocation5 + $0xf84] sm:$0xf]  ;;  %v6427_v44 = vld [vmem:[#allocation5 + $0xf90] sm:$0xf0]  ;;  %v6302_v50 = vor.u32 %v7080_v37, %v6299_v38  ;;  %v3384_v7 = vadd.f32 %v3383_v3, %v3371_v17 }
 0x102   :  { %3622 = vmatpush.bf16.msrb.mxu1 %v6206_v5  ;;  %v7012_v51 = vld [vmem:[#allocation5 + $0xc64] sm:$0xf]  ;;  %v6027_v52 = vld [vmem:[#allocation5 + $0xc70] sm:$0xf0]  ;;  %v6430_v54 = vor.u32 %v7112_v41, %v6427_v44 }
 0x103   :  { %3635 = vmatpush.bf16.msrb.mxu2 %v6334_v6  ;;  %v7044_v53 = vld [vmem:[#allocation5 + $0xd64] sm:$0xf]  ;;  %v6155_v55 = vld [vmem:[#allocation5 + $0xd70] sm:$0xf0]  ;;  %v6030_v60 = vor.u32 %v7012_v51, %v6027_v52  ;;  %v3359_v11 = vpop.f32.mrf.mxu0 }
 0x104   :  { %3648 = vmatpush.bf16.msrb.mxu3 %v6462_v10  ;;  %v7076_v56 = vld [vmem:[#allocation5 + $0xe64] sm:$0xf]  ;;  %v6283_v57 = vld [vmem:[#allocation5 + $0xe70] sm:$0xf0]  ;;  %v6158_v63 = vor.u32 %v7044_v53, %v6155_v55  ;;  %v3396_v8 = vpop.f32.mrf.mxu3  ;;  %v3372_v13 = vpop.f32.mrf.mxu1  ;;  %v4561_v55 = vld [vmem:[#allocation5 + $0xe8] sm:$0xf] }
 0x105   :  { %3610 = vmatpush.bf16.msrb.mxu0 %v6062_v16  ;;  %v7108_v58 = vld [vmem:[#allocation5 + $0xf64] sm:$0xf]  ;;  %v6411_v59 = vld [vmem:[#allocation5 + $0xf70] sm:$0xf0]  ;;  %v6286_v61 = vor.u32 %v7076_v56, %v6283_v57  ;;  %v7433_v14 = vadd.f32 %v3396_v8, %v3384_v7  ;;  %v6647_v56 = vld [vmem:[#allocation5 + $0xf4] sm:$0xf0] }
 0x106   :  { %3623 = vmatpush.bf16.msrb.mxu1 %v6190_v18  ;;  %v7008_v62 = vld [vmem:[#allocation5 + $0xc44] sm:$0xf]  ;;  %v6011_v0 = vld [vmem:[#allocation5 + $0xc50] sm:$0xf0]  ;;  %v6414_v2 = vor.u32 %v7108_v58, %v6411_v59  ;;  %v4689_v57 = vld [vmem:[#allocation5 + $0x1e8] sm:$0xf] }
 0x107   :  { %3636 = vmatpush.bf16.msrb.mxu2 %v6318_v22  ;;  %v7040_v1 = vld [vmem:[#allocation5 + $0xd44] sm:$0xf]  ;;  %v6139_v4 = vld [vmem:[#allocation5 + $0xd50] sm:$0xf0]  ;;  %v6014_v12 = vor.u32 %v7008_v62, %v6011_v0  ;;  %v4545_v7 = vld [vmem:[#allocation5 + $0xc8] sm:$0xf] }
 0x108   :  { %3649 = vmatpush.bf16.msrb.mxu3 %v6446_v33  ;;  %v7072_v5 = vld [vmem:[#allocation5 + $0xe44] sm:$0xf]  ;;  %v6267_v6 = vld [vmem:[#allocation5 + $0xe50] sm:$0xf0]  ;;  %v6142_v15 = vor.u32 %v7040_v1, %v6139_v4  ;;  %v3385_v17 = vpop.f32.mrf.mxu2  ;;  %v4945_v1 = vld [vmem:[#allocation5 + $0x3e8] sm:$0xf]  ;;  %v4562_v4 = vor.u32 %v6647_v56, %v4561_v55 }
 0x109   :  { %3611 = vmatpush.bf16.msrb.mxu0 %v6046_v47  ;;  %v7104_v9 = vld [vmem:[#allocation5 + $0xf44] sm:$0xf]  ;;  %v6395_v10 = vld [vmem:[#allocation5 + $0xf50] sm:$0xf0]  ;;  %v6270_v16 = vor.u32 %v7072_v5, %v6267_v6  ;;  %v6643_v8 = vld [vmem:[#allocation5 + $0xd4] sm:$0xf0] }
 0x10a   :  { %3624 = vmatpush.bf16.msrb.mxu1 %v6174_v49  ;;  %v7004_v18 = vld [vmem:[#allocation5 + $0xc24] sm:$0xf]  ;;  %v5995_v22 = vld [vmem:[#allocation5 + $0xc30] sm:$0xf0]  ;;  %v6398_v27 = vor.u32 %v7104_v9, %v6395_v10  ;;  %v4673_v9 = vld [vmem:[#allocation5 + $0x1c8] sm:$0xf] }
 0x10b   :  { %3637 = vmatpush.bf16.msrb.mxu2 %v6302_v50  ;;  %v7036_v25 = vld [vmem:[#allocation5 + $0xd24] sm:$0xf]  ;;  %v6123_v28 = vld [vmem:[#allocation5 + $0xd30] sm:$0xf0]  ;;  %v5998_v40 = vor.u32 %v7004_v18, %v5995_v22  ;;  %v6675_v11 = vld [vmem:[#allocation5 + $0x1d4] sm:$0xf0]  ;;  %v4546_v18 = vor.u32 %v6643_v8, %v4545_v7 }
 0x10c   :  { %3650 = vmatpush.bf16.msrb.mxu3 %v6430_v54  ;;  %v7068_v33 = vld [vmem:[#allocation5 + $0xe24] sm:$0xf]  ;;  %v6251_v35 = vld [vmem:[#allocation5 + $0xe30] sm:$0xf0]  ;;  %v6126_v46 = vor.u32 %v7036_v25, %v6123_v28  ;;  %v3398_v58 = vpop.f32.mrf.mxu3  ;;  %v6707_v13 = vld [vmem:[#allocation5 + $0x2d4] sm:$0xf0]  ;;  %v4674_v22 = vor.u32 %v6675_v11, %v4673_v9 }
 0x10d   :  { %3612 = vmatpush.bf16.msrb.mxu0 %v6030_v60  ;;  %v7100_v37 = vld [vmem:[#allocation5 + $0xf24] sm:$0xf]  ;;  %v6379_v38 = vld [vmem:[#allocation5 + $0xf30] sm:$0xf0]  ;;  %v6254_v47 = vor.u32 %v7068_v33, %v6251_v35  ;;  %v6679_v60 = vld [vmem:[#allocation5 + $0x1f4] sm:$0xf0] }
 0x10e   :  { %3625 = vmatpush.bf16.msrb.mxu1 %v6158_v63  ;;  %v7000_v41 = vld [vmem:[#allocation5 + $0xc04] sm:$0xf]  ;;  %v5979_v44 = vld [vmem:[#allocation5 + $0xc10] sm:$0xf0]  ;;  %v6382_v51 = vor.u32 %v7100_v37, %v6379_v38  ;;  %v4817_v63 = vld [vmem:[#allocation5 + $0x2e8] sm:$0xf]  ;;  %v4690_v5 = vor.u32 %v6679_v60, %v4689_v57 }
 0x10f   :  { %3638 = vmatpush.bf16.msrb.mxu2 %v6286_v61  ;;  %v7032_v48 = vld [vmem:[#allocation5 + $0xd04] sm:$0xf]  ;;  %v6107_v49 = vld [vmem:[#allocation5 + $0xd10] sm:$0xf0]  ;;  %v5982_v59 = vor.u32 %v7000_v41, %v5979_v44  ;;  %v6711_v61 = vld [vmem:[#allocation5 + $0x2f4] sm:$0xf0] }
 0x110   :  { %3651 = vmatpush.bf16.msrb.mxu3 %v6414_v2  ;;  %v7064_v50 = vld [vmem:[#allocation5 + $0xe04] sm:$0xf]  ;;  %v6235_v52 = vld [vmem:[#allocation5 + $0xe10] sm:$0xf0]  ;;  %v6110_v62 = vor.u32 %v7032_v48, %v6107_v49  ;;  %v6743_v2 = vld [vmem:[#allocation5 + $0x3f4] sm:$0xf0]  ;;  %v4818_v6 = vor.u32 %v6711_v61, %v4817_v63 }
 0x111   :  { %3613 = vmatpush.bf16.msrb.mxu0 %v6014_v12  ;;  %v7096_v53 = vld [vmem:[#allocation5 + $0xf04] sm:$0xf]  ;;  %v6363_v54 = vld [vmem:[#allocation5 + $0xf10] sm:$0xf0]  ;;  %v6238_v0 = vor.u32 %v7064_v50, %v6235_v52  ;;  %v4946_v10 = vor.u32 %v6743_v2, %v4945_v1  ;;  %v4801_v12 = vld [vmem:[#allocation5 + $0x2c8] sm:$0xf] }
 0x112   :  { %3626 = vmatpush.bf16.msrb.mxu1 %v6142_v15  ;;  %v6366_v3 = vor.u32 %v7096_v53, %v6363_v54  ;;  %v4929_v15 = vld [vmem:[#allocation5 + $0x3c8] sm:$0xf]  ;;  %v4802_v25 = vor.u32 %v6707_v13, %v4801_v12  ;;  %v6639_v28 = vld [vmem:[#allocation5 + $0xb4] sm:$0xf0] }
 0x113   :  { %3639 = vmatpush.bf16.msrb.mxu2 %v6270_v16  ;;  %v6739_v16 = vld [vmem:[#allocation5 + $0x3d4] sm:$0xf0]  ;;  %v4657_v33 = vld [vmem:[#allocation5 + $0x1a8] sm:$0xf] }
 0x114   :  { %3652 = vmatpush.bf16.msrb.mxu3 %v6398_v27  ;;  %v4529_v27 = vld [vmem:[#allocation5 + $0xa8] sm:$0xf]  ;;  %v4930_v35 = vor.u32 %v6739_v16, %v4929_v15  ;;  %v6671_v37 = vld [vmem:[#allocation5 + $0x1b4] sm:$0xf0] }
 0x115   :  { %3614 = vmatpush.bf16.msrb.mxu0 %v5998_v40  ;;  %v4785_v38 = vld [vmem:[#allocation5 + $0x2a8] sm:$0xf]  ;;  %v6703_v40 = vld [vmem:[#allocation5 + $0x2b4] sm:$0xf0] }
 0x116   :  { %3627 = vmatpush.bf16.msrb.mxu1 %v6126_v46  ;;  %v4913_v41 = vld [vmem:[#allocation5 + $0x3a8] sm:$0xf]  ;;  %v6735_v44 = vld [vmem:[#allocation5 + $0x3b4] sm:$0xf0]  ;;  %v4530_v46 = vor.u32 %v6639_v28, %v4529_v27  ;;  %v4786_v48 = vor.u32 %v6703_v40, %v4785_v38 }
 0x117   :  { %3640 = vmatpush.bf16.msrb.mxu2 %v6254_v47  ;;  %v4658_v47 = vor.u32 %v6671_v37, %v4657_v33  ;;  %v4513_v49 = vld [vmem:[#allocation5 + $0x88] sm:$0xf]  ;;  %v6635_v50 = vld [vmem:[#allocation5 + $0x94] sm:$0xf0]  ;;  %v4914_v52 = vor.u32 %v6735_v44, %v4913_v41 }
 0x118   :  { %3653 = vmatpush.bf16.msrb.mxu3 %v6382_v51  ;;  %v4641_v51 = vld [vmem:[#allocation5 + $0x188] sm:$0xf]  ;;  %v6667_v53 = vld [vmem:[#allocation5 + $0x194] sm:$0xf0] }
 0x119   :  { %3615 = vmatpush.bf16.msrb.mxu0 %v5982_v59  ;;  %v4769_v54 = vld [vmem:[#allocation5 + $0x288] sm:$0xf]  ;;  %v6699_v17 = vld [vmem:[#allocation5 + $0x294] sm:$0xf0]  ;;  %v4514_v59 = vor.u32 %v6635_v50, %v4513_v49  ;;  %v4642_v63 = vor.u32 %v6667_v53, %v4641_v51 }
 0x11a   :  { %3628 = vmatpush.bf16.msrb.mxu1 %v6110_v62  ;;  %v4897_v56 = vld [vmem:[#allocation5 + $0x388] sm:$0xf]  ;;  %v6731_v57 = vld [vmem:[#allocation5 + $0x394] sm:$0xf0]  ;;  %v3422_v60 = vpop.f32.mrf.mxu1  ;;  %v4770_v61 = vor.u32 %v6699_v17, %v4769_v54 }
 0x11b   :  { %3641 = vmatpush.bf16.msrb.mxu2 %v6238_v0  ;;  %v3409_v55 = vpop.f32.mrf.mxu0  ;;  %v4497_v62 = vld [vmem:[#allocation5 + $0x68] sm:$0xf]  ;;  %v6631_v0 = vld [vmem:[#allocation5 + $0x74] sm:$0xf0]  ;;  %v4898_v2 = vor.u32 %v6731_v57, %v4897_v56 }
 0x11c   :  { %3654 = vmatpush.bf16.msrb.mxu3 %v6366_v3  ;;  %3616 = vmatmul.bf16.vlgmr.msrb.gmra.mxu0 %v7403_v24  ;;  %v3410_v58 = vadd.f32 %v3409_v55, %v7433_v14  ;;  %v4625_v1 = vld [vmem:[#allocation5 + $0x168] sm:$0xf]  ;;  %v6727_v8 = vld [vmem:[#allocation5 + $0x374] sm:$0xf0]  ;;  %v4498_v9 = vor.u32 %v6631_v0, %v4497_v62 }
 0x11d   :  { %3660 = vmatpush.bf16.msra.mxu0 %v4562_v4  ;;  %3629 = vmatmul.bf16.vlgmr.msrb.gmra.mxu1 %v7407_v32  ;;  %v6663_v4 = vld [vmem:[#allocation5 + $0x174] sm:$0xf0]  ;;  %v4881_v7 = vld [vmem:[#allocation5 + $0x368] sm:$0xf] }
 0x11e   :  { %3673 = vmatpush.bf16.msra.mxu1 %v4690_v5  ;;  %3642 = vmatmul.bf16.vlgmr.msrb.gmra.mxu2 %v7405_v29  ;;  %v3423_v3 = vadd.f32 %v3422_v60, %v3410_v58  ;;  %v4753_v5 = vld [vmem:[#allocation5 + $0x268] sm:$0xf]  ;;  %v4626_v14 = vor.u32 %v6663_v4, %v4625_v1  ;;  %v6627_v12 = vld [vmem:[#allocation5 + $0x54] sm:$0xf0]  ;;  %v4882_v15 = vor.u32 %v6727_v8, %v4881_v7 }
 0x11f   :  { %3686 = vmatpush.bf16.msra.mxu2 %v4818_v6  ;;  %3655 = vmatmul.bf16.vlgmr.msrb.gmra.mxu3 %v7409_v36  ;;  %v6695_v6 = vld [vmem:[#allocation5 + $0x274] sm:$0xf0]  ;;  %v4481_v11 = vld [vmem:[#allocation5 + $0x48] sm:$0xf] }
 0x120   :  { %3699 = vmatpush.bf16.msra.mxu3 %v4946_v10  ;;  %v4754_v10 = vor.u32 %v6695_v6, %v4753_v5  ;;  %v4609_v13 = vld [vmem:[#allocation5 + $0x148] sm:$0xf]  ;;  %v4482_v38 = vor.u32 %v6627_v12, %v4481_v11  ;;  %v6655_v51 = vld [vmem:[#allocation5 + $0x134] sm:$0xf0] }
 0x121   :  { %3661 = vmatpush.bf16.msra.mxu0 %v4546_v18  ;;  %v6659_v18 = vld [vmem:[#allocation5 + $0x154] sm:$0xf0]  ;;  %v4865_v33 = vld [vmem:[#allocation5 + $0x348] sm:$0xf] }
 0x122   :  { %3674 = vmatpush.bf16.msra.mxu1 %v4674_v22  ;;  %v4737_v22 = vld [vmem:[#allocation5 + $0x248] sm:$0xf]  ;;  %v3448_v28 = vpop.f32.mrf.mxu3  ;;  %v3424_v40 = vpop.f32.mrf.mxu1  ;;  %v4610_v44 = vor.u32 %v6659_v18, %v4609_v13  ;;  %v6687_v53 = vld [vmem:[#allocation5 + $0x234] sm:$0xf0] }
 0x123   :  { %3687 = vmatpush.bf16.msra.mxu2 %v4802_v25  ;;  %v3435_v16 = vpop.f32.mrf.mxu2  ;;  %v6691_v25 = vld [vmem:[#allocation5 + $0x254] sm:$0xf0]  ;;  %v3411_v37 = vpop.f32.mrf.mxu0  ;;  %v4593_v49 = vld [vmem:[#allocation5 + $0x128] sm:$0xf] }
 0x124   :  { %3700 = vmatpush.bf16.msra.mxu3 %v4930_v35  ;;  %v3436_v27 = vadd.f32 %v3435_v16, %v3423_v3  ;;  %v6723_v35 = vld [vmem:[#allocation5 + $0x354] sm:$0xf0]  ;;  %v4849_v54 = vld [vmem:[#allocation5 + $0x328] sm:$0xf]  ;;  %v4594_v58 = vor.u32 %v6655_v51, %v4593_v49 }
 0x125   :  { %3662 = vmatpush.bf16.msra.mxu0 %v4530_v46  ;;  %v4738_v46 = vor.u32 %v6691_v25, %v4737_v22  ;;  %v4866_v50 = vor.u32 %v6723_v35, %v4865_v33  ;;  %v6719_v17 = vld [vmem:[#allocation5 + $0x334] sm:$0xf0]  ;;  %v4449_v56 = vld [vmem:[#allocation5 + $0x8] sm:$0xf] }
 0x126   :  { %3675 = vmatpush.bf16.msra.mxu1 %v4658_v47  ;;  %v7440_v41 = vadd.f32 %v3448_v28, %v3436_v27  ;;  %v4465_v47 = vld [vmem:[#allocation5 + $0x28] sm:$0xf]  ;;  %v6619_v57 = vld [vmem:[#allocation5 + $0x14] sm:$0xf0]  ;;  %v4850_v62 = vor.u32 %v6719_v17, %v4849_v54 }
 0x127   :  { %3688 = vmatpush.bf16.msra.mxu2 %v4786_v48  ;;  %v6623_v48 = vld [vmem:[#allocation5 + $0x34] sm:$0xf0]  ;;  %v4577_v60 = vld [vmem:[#allocation5 + $0x108] sm:$0xf]  ;;  %v4450_v8 = vor.u32 %v6619_v57, %v4449_v56 }
 0x128   :  { %3701 = vmatpush.bf16.msra.mxu3 %v4914_v52  ;;  %v4721_v52 = vld [vmem:[#allocation5 + $0x228] sm:$0xf]  ;;  %v4466_v55 = vor.u32 %v6623_v48, %v4465_v47  ;;  %v6683_v0 = vld [vmem:[#allocation5 + $0x214] sm:$0xf0] }
 0x129   :  { %3663 = vmatpush.bf16.msra.mxu0 %v4514_v59  ;;  %v4722_v59 = vor.u32 %v6687_v53, %v4721_v52  ;;  %v4833_v1 = vld [vmem:[#allocation5 + $0x308] sm:$0xf]  ;;  %v6775_v5 = vld [vmem:[#allocation5 + $0x4f4] sm:$0xf0] }
 0x12a   :  { %3676 = vmatpush.bf16.msra.mxu1 %v4642_v63  ;;  %v6651_v63 = vld [vmem:[#allocation5 + $0x114] sm:$0xf0]  ;;  %v5073_v4 = vld [vmem:[#allocation5 + $0x4e8] sm:$0xf]  ;;  %v3450_v7 = vpop.f32.mrf.mxu3 }
 0x12b   :  { %3689 = vmatpush.bf16.msra.mxu2 %v4770_v61  ;;  %v4705_v61 = vld [vmem:[#allocation5 + $0x208] sm:$0xf]  ;;  %v3437_v3 = vpop.f32.mrf.mxu2  ;;  %v4578_v11 = vor.u32 %v6651_v63, %v4577_v60  ;;  %v5074_v18 = vor.u32 %v6775_v5, %v5073_v4  ;;  %v6771_v28 = vld [vmem:[#allocation5 + $0x4d4] sm:$0xf0] }
 0x12c   :  { %3702 = vmatpush.bf16.msra.mxu3 %v4898_v2  ;;  %v6715_v2 = vld [vmem:[#allocation5 + $0x314] sm:$0xf0]  ;;  %v5201_v6 = vld [vmem:[#allocation5 + $0x5e8] sm:$0xf]  ;;  %v4706_v12 = vor.u32 %v6683_v0, %v4705_v61  ;;  %v7174_v0 = vld [vmem:[#allocation7] sm:$0xf] }
 0x12d   :  { %3664 = vmatpush.bf16.msra.mxu0 %v4498_v9  ;;  %v6807_v9 = vld [vmem:[#allocation5 + $0x5f4] sm:$0xf0]  ;;  %v5457_v13 = vld [vmem:[#allocation5 + $0x7e8] sm:$0xf]  ;;  %v4834_v16 = vor.u32 %v6715_v2, %v4833_v1  ;;  %v621_v1 = vperm.slane %v7174_v0, 1 }
 0x12e   :  { %3677 = vmatpush.bf16.msra.mxu1 %v4626_v14  ;;  %v5329_v14 = vld [vmem:[#allocation5 + $0x6e8] sm:$0xf]  ;;  %v5202_v22 = vor.u32 %v6807_v9, %v5201_v6  ;;  %v6803_v37 = vld [vmem:[#allocation5 + $0x5d4] sm:$0xf0] }
 0x12f   :  { %3690 = vmatpush.bf16.msra.mxu2 %v4754_v10  ;;  %v6839_v10 = vld [vmem:[#allocation5 + $0x6f4] sm:$0xf0]  ;;  %v5057_v27 = vld [vmem:[#allocation5 + $0x4c8] sm:$0xf] }
 0x130   :  { %3703 = vmatpush.bf16.msra.mxu3 %v4882_v15  ;;  %v6871_v15 = vld [vmem:[#allocation5 + $0x7f4] sm:$0xf0]  ;;  %v5330_v25 = vor.u32 %v6839_v10, %v5329_v14  ;;  %v5185_v33 = vld [vmem:[#allocation5 + $0x5c8] sm:$0xf]  ;;  %v5058_v47 = vor.u32 %v6771_v28, %v5057_v27 }
 0x131   :  { %3665 = vmatpush.bf16.msra.mxu0 %v4482_v38  ;;  %v5458_v35 = vor.u32 %v6871_v15, %v5457_v13  ;;  %v5313_v38 = vld [vmem:[#allocation5 + $0x6c8] sm:$0xf]  ;;  %v6835_v40 = vld [vmem:[#allocation5 + $0x6d4] sm:$0xf0]  ;;  %v5186_v48 = vor.u32 %v6803_v37, %v5185_v33 }
 0x132   :  { %3678 = vmatpush.bf16.msra.mxu1 %v4610_v44  ;;  %v5441_v44 = vld [vmem:[#allocation5 + $0x7c8] sm:$0xf]  ;;  %v5314_v49 = vor.u32 %v6835_v40, %v5313_v38  ;;  %v6767_v51 = vld [vmem:[#allocation5 + $0x4b4] sm:$0xf0] }
 0x133   :  { %3691 = vmatpush.bf16.msra.mxu2 %v4738_v46  ;;  %v6867_v46 = vld [vmem:[#allocation5 + $0x7d4] sm:$0xf0]  ;;  %v5169_v52 = vld [vmem:[#allocation5 + $0x5a8] sm:$0xf] }
 0x134   :  { %3704 = vmatpush.bf16.msra.mxu3 %v4866_v50  ;;  %v5041_v50 = vld [vmem:[#allocation5 + $0x4a8] sm:$0xf]  ;;  %v5442_v53 = vor.u32 %v6867_v46, %v5441_v44  ;;  %v6799_v54 = vld [vmem:[#allocation5 + $0x5b4] sm:$0xf0] }
 0x135   :  { %3666 = vmatpush.bf16.msra.mxu0 %v4466_v55  ;;  %v5297_v17 = vld [vmem:[#allocation5 + $0x6a8] sm:$0xf]  ;;  %v6831_v55 = vld [vmem:[#allocation5 + $0x6b4] sm:$0xf0]  ;;  %v5170_v60 = vor.u32 %v6799_v54, %v5169_v52 }
 0x136   :  { %3679 = vmatpush.bf16.msra.mxu1 %v4594_v58  ;;  %v5425_v56 = vld [vmem:[#allocation5 + $0x7a8] sm:$0xf]  ;;  %v6863_v57 = vld [vmem:[#allocation5 + $0x7b4] sm:$0xf0]  ;;  %v5042_v58 = vor.u32 %v6767_v51, %v5041_v50  ;;  %v5298_v63 = vor.u32 %v6831_v55, %v5297_v17 }
 0x137   :  { %3692 = vmatpush.bf16.msra.mxu2 %v4722_v59  ;;  %v5025_v59 = vld [vmem:[#allocation5 + $0x488] sm:$0xf]  ;;  %v6763_v61 = vld [vmem:[#allocation5 + $0x494] sm:$0xf0]  ;;  %v5426_v2 = vor.u32 %v6863_v57, %v5425_v56 }
 0x138   :  { %3705 = vmatpush.bf16.msra.mxu3 %v4850_v62  ;;  %v5153_v62 = vld [vmem:[#allocation5 + $0x588] sm:$0xf]  ;;  %v6795_v3 = vld [vmem:[#allocation5 + $0x594] sm:$0xf0] }
 0x139   :  { %3667 = vmatpush.bf16.msra.mxu0 %v4450_v8  ;;  %v5281_v4 = vld [vmem:[#allocation5 + $0x688] sm:$0xf]  ;;  %v6827_v5 = vld [vmem:[#allocation5 + $0x694] sm:$0xf0]  ;;  %v5026_v8 = vor.u32 %v6763_v61, %v5025_v59  ;;  %v3461_v9 = vpop.f32.mrf.mxu0  ;;  %v5154_v14 = vor.u32 %v6795_v3, %v5153_v62 }
 0x13a   :  { %3680 = vmatpush.bf16.msra.mxu1 %v4578_v11  ;;  %v5409_v6 = vld [vmem:[#allocation5 + $0x788] sm:$0xf]  ;;  %v6859_v7 = vld [vmem:[#allocation5 + $0x794] sm:$0xf0]  ;;  %v5282_v10 = vor.u32 %v6827_v5, %v5281_v4  ;;  %v3462_v15 = vadd.f32 %v3461_v9, %v621_v1 }
 0x13b   :  { %3693 = vmatpush.bf16.msra.mxu2 %v4706_v12  ;;  %v5009_v11 = vld [vmem:[#allocation5 + $0x468] sm:$0xf]  ;;  %v6759_v12 = vld [vmem:[#allocation5 + $0x474] sm:$0xf0] }
 0x13c   :  { %3706 = vmatpush.bf16.msra.mxu3 %v4834_v16  ;;  %3668 = vmatmul.bf16.vlgmr.msra.gmra.mxu0 %v7369_v20  ;;  %v5137_v13 = vld [vmem:[#allocation5 + $0x568] sm:$0xf]  ;;  %v3474_v16 = vpop.f32.mrf.mxu1  ;;  %v6823_v27 = vld [vmem:[#allocation5 + $0x674] sm:$0xf0]  ;;  %v5010_v37 = vor.u32 %v6759_v12, %v5009_v11 }
 0x13d   :  { %3712 = vmatpush.bf16.msrb.mxu0 %v5074_v18  ;;  %3681 = vmatmul.bf16.vlgmr.msra.gmra.mxu1 %v7373_v23  ;;  %v5410_v18 = vor.u32 %v6859_v7, %v5409_v6  ;;  %v5393_v28 = vld [vmem:[#allocation5 + $0x768] sm:$0xf]  ;;  %v6855_v33 = vld [vmem:[#allocation5 + $0x774] sm:$0xf0] }
 0x13e   :  { %3725 = vmatpush.bf16.msrb.mxu1 %v5202_v22  ;;  %3694 = vmatmul.bf16.vlgmr.msra.gmra.mxu2 %v7367_v19  ;;  %v6791_v22 = vld [vmem:[#allocation5 + $0x574] sm:$0xf0]  ;;  %v4993_v44 = vld [vmem:[#allocation5 + $0x448] sm:$0xf] }
 0x13f   :  { %3738 = vmatpush.bf16.msrb.mxu2 %v5330_v25  ;;  %3707 = vmatmul.bf16.vlgmr.msra.gmra.mxu3 %v7371_v21  ;;  %v5265_v25 = vld [vmem:[#allocation5 + $0x668] sm:$0xf]  ;;  %v5138_v38 = vor.u32 %v6791_v22, %v5137_v13  ;;  %v6755_v46 = vld [vmem:[#allocation5 + $0x454] sm:$0xf0] }
 0x140   :  { %3751 = vmatpush.bf16.msrb.mxu3 %v5458_v35  ;;  %v3475_v35 = vadd.f32 %v3474_v16, %v3462_v15  ;;  %v5266_v40 = vor.u32 %v6823_v27, %v5265_v25  ;;  %v6787_v50 = vld [vmem:[#allocation5 + $0x554] sm:$0xf0]  ;;  %v5249_v51 = vld [vmem:[#allocation5 + $0x648] sm:$0xf]  ;;  %v4994_v56 = vor.u32 %v6755_v46, %v4993_v44 }
 0x141   :  { %3713 = vmatpush.bf16.msrb.mxu0 %v5058_v47  ;;  %v5121_v47 = vld [vmem:[#allocation5 + $0x548] sm:$0xf]  ;;  %v6819_v52 = vld [vmem:[#allocation5 + $0x654] sm:$0xf0] }
 0x142   :  { %3726 = vmatpush.bf16.msrb.mxu1 %v5186_v48  ;;  %v3487_v48 = vpop.f32.mrf.mxu2  ;;  %v3500_v54 = vpop.f32.mrf.mxu3  ;;  %v5377_v17 = vld [vmem:[#allocation5 + $0x748] sm:$0xf]  ;;  %v6851_v55 = vld [vmem:[#allocation5 + $0x754] sm:$0xf0]  ;;  %v5122_v59 = vor.u32 %v6787_v50, %v5121_v47 }
 0x143   :  { %3739 = vmatpush.bf16.msrb.mxu2 %v5314_v49  ;;  %v5394_v49 = vor.u32 %v6855_v33, %v5393_v28  ;;  %v6751_v61 = vld [vmem:[#allocation5 + $0x434] sm:$0xf0]  ;;  %v5105_v62 = vld [vmem:[#allocation5 + $0x528] sm:$0xf]  ;;  %v5378_v1 = vor.u32 %v6851_v55, %v5377_v17 }
 0x144   :  { %3752 = vmatpush.bf16.msrb.mxu3 %v5442_v53  ;;  %v3488_v53 = vadd.f32 %v3487_v48, %v3475_v35  ;;  %v3476_v0 = vpop.f32.mrf.mxu1  ;;  %v5233_v3 = vld [vmem:[#allocation5 + $0x628] sm:$0xf]  ;;  %v6815_v4 = vld [vmem:[#allocation5 + $0x634] sm:$0xf0] }
 0x145   :  { %3714 = vmatpush.bf16.msrb.mxu0 %v5042_v58  ;;  %v3463_v58 = vpop.f32.mrf.mxu0  ;;  %v5361_v5 = vld [vmem:[#allocation5 + $0x728] sm:$0xf]  ;;  %v6847_v6 = vld [vmem:[#allocation5 + $0x734] sm:$0xf0] }
 0x146   :  { %3727 = vmatpush.bf16.msrb.mxu1 %v5170_v60  ;;  %v7446_v57 = vadd.f32 %v3500_v54, %v3488_v53  ;;  %v5250_v60 = vor.u32 %v6819_v52, %v5249_v51  ;;  %v6747_v9 = vld [vmem:[#allocation5 + $0x414] sm:$0xf0]  ;;  %v5089_v11 = vld [vmem:[#allocation5 + $0x508] sm:$0xf]  ;;  %v5362_v16 = vor.u32 %v6847_v6, %v5361_v5 }
 0x147   :  { %3740 = vmatpush.bf16.msrb.mxu2 %v5298_v63  ;;  %v4977_v63 = vld [vmem:[#allocation5 + $0x428] sm:$0xf]  ;;  %v6779_v12 = vld [vmem:[#allocation5 + $0x514] sm:$0xf0] }
 0x148   :  { %3753 = vmatpush.bf16.msrb.mxu3 %v5426_v2  ;;  %v6783_v2 = vld [vmem:[#allocation5 + $0x534] sm:$0xf0]  ;;  %v4978_v7 = vor.u32 %v6751_v61, %v4977_v63  ;;  %v5217_v13 = vld [vmem:[#allocation5 + $0x608] sm:$0xf]  ;;  %v5090_v46 = vor.u32 %v6779_v12, %v5089_v11 }
 0x149   :  { %3715 = vmatpush.bf16.msrb.mxu0 %v5026_v8  ;;  %v4961_v8 = vld [vmem:[#allocation5 + $0x408] sm:$0xf]  ;;  %v6843_v25 = vld [vmem:[#allocation5 + $0x714] sm:$0xf0] }
 0x14a   :  { %3728 = vmatpush.bf16.msrb.mxu1 %v5154_v14  ;;  %v5106_v14 = vor.u32 %v6783_v2, %v5105_v62  ;;  %v3489_v15 = vpop.f32.mrf.mxu2  ;;  %v5345_v22 = vld [vmem:[#allocation5 + $0x708] sm:$0xf]  ;;  %v3502_v27 = vpop.f32.mrf.mxu3  ;;  %v6903_v33 = vld [vmem:[#allocation5 + $0x8f4] sm:$0xf0] }
 0x14b   :  { %3741 = vmatpush.bf16.msrb.mxu2 %v5282_v10  ;;  %v5234_v10 = vor.u32 %v6815_v4, %v5233_v3  ;;  %v5585_v28 = vld [vmem:[#allocation5 + $0x8e8] sm:$0xf]  ;;  %v6967_v44 = vld [vmem:[#allocation5 + $0xaf4] sm:$0xf0]  ;;  %v5346_v50 = vor.u32 %v6843_v25, %v5345_v22 }
 0x14c   :  { %3754 = vmatpush.bf16.msrb.mxu3 %v5410_v18  ;;  %v6811_v18 = vld [vmem:[#allocation5 + $0x614] sm:$0xf0]  ;;  %v5713_v35 = vld [vmem:[#allocation5 + $0x9e8] sm:$0xf]  ;;  %v5586_v51 = vor.u32 %v6903_v33, %v5585_v28 }
 0x14d   :  { %3716 = vmatpush.bf16.msrb.mxu0 %v5010_v37  ;;  %v4962_v37 = vor.u32 %v6747_v9, %v4961_v8  ;;  %v5218_v47 = vor.u32 %v6811_v18, %v5217_v13  ;;  %v5969_v48 = vld [vmem:[#allocation5 + $0xbe8] sm:$0xf]  ;;  %v6899_v17 = vld [vmem:[#allocation5 + $0x8d4] sm:$0xf0] }
 0x14e   :  { %3729 = vmatpush.bf16.msrb.mxu1 %v5138_v38  ;;  %v6935_v38 = vld [vmem:[#allocation5 + $0x9f4] sm:$0xf0]  ;;  %v5569_v54 = vld [vmem:[#allocation5 + $0x8c8] sm:$0xf] }
 0x14f   :  { %3742 = vmatpush.bf16.msrb.mxu2 %v5266_v40  ;;  %v5841_v40 = vld [vmem:[#allocation5 + $0xae8] sm:$0xf]  ;;  %v5714_v52 = vor.u32 %v6935_v38, %v5713_v35  ;;  %v6931_v58 = vld [vmem:[#allocation5 + $0x9d4] sm:$0xf0]  ;;  %v5570_v62 = vor.u32 %v6899_v17, %v5569_v54 }
 0x150   :  { %3755 = vmatpush.bf16.msrb.mxu3 %v5394_v49  ;;  %v6999_v49 = vld [vmem:[#allocation5 + $0xbf4] sm:$0xf0]  ;;  %v5842_v53 = vor.u32 %v6967_v44, %v5841_v40  ;;  %v5697_v55 = vld [vmem:[#allocation5 + $0x9c8] sm:$0xf] }
 0x151   :  { %3717 = vmatpush.bf16.msrb.mxu0 %v4994_v56  ;;  %v5970_v56 = vor.u32 %v6999_v49, %v5969_v48  ;;  %v5953_v63 = vld [vmem:[#allocation5 + $0xbc8] sm:$0xf]  ;;  %v6995_v61 = vld [vmem:[#allocation5 + $0xbd4] sm:$0xf0]  ;;  %v5698_v0 = vor.u32 %v6931_v58, %v5697_v55 }
 0x152   :  { %3730 = vmatpush.bf16.msrb.mxu1 %v5122_v59  ;;  %v5825_v59 = vld [vmem:[#allocation5 + $0xac8] sm:$0xf]  ;;  %v6895_v3 = vld [vmem:[#allocation5 + $0x8b4] sm:$0xf0]  ;;  %v5954_v5 = vor.u32 %v6995_v61, %v5953_v63 }
 0x153   :  { %3743 = vmatpush.bf16.msrb.mxu2 %v5250_v60  ;;  %v6963_v60 = vld [vmem:[#allocation5 + $0xad4] sm:$0xf0]  ;;  %v5553_v2 = vld [vmem:[#allocation5 + $0x8a8] sm:$0xf] }
 0x154   :  { %3756 = vmatpush.bf16.msrb.mxu3 %v5378_v1  ;;  %v5826_v1 = vor.u32 %v6963_v60, %v5825_v59  ;;  %v5681_v4 = vld [vmem:[#allocation5 + $0x9a8] sm:$0xf]  ;;  %v6927_v6 = vld [vmem:[#allocation5 + $0x9b4] sm:$0xf0] }
 0x155   :  { %3718 = vmatpush.bf16.msrb.mxu0 %v4978_v7  ;;  %v5809_v7 = vld [vmem:[#allocation5 + $0xaa8] sm:$0xf]  ;;  %v6959_v8 = vld [vmem:[#allocation5 + $0xab4] sm:$0xf0]  ;;  %v5682_v11 = vor.u32 %v6927_v6, %v5681_v4 }
 0x156   :  { %3731 = vmatpush.bf16.msrb.mxu1 %v5106_v14  ;;  %v5937_v9 = vld [vmem:[#allocation5 + $0xba8] sm:$0xf]  ;;  %v6991_v14 = vld [vmem:[#allocation5 + $0xbb4] sm:$0xf0]  ;;  %v5810_v12 = vor.u32 %v6959_v8, %v5809_v7 }
 0x157   :  { %3744 = vmatpush.bf16.msrb.mxu2 %v5234_v10  ;;  %v5554_v10 = vor.u32 %v6895_v3, %v5553_v2  ;;  %v5537_v13 = vld [vmem:[#allocation5 + $0x888] sm:$0xf]  ;;  %v6891_v15 = vld [vmem:[#allocation5 + $0x894] sm:$0xf0]  ;;  %v5938_v18 = vor.u32 %v6991_v14, %v5937_v9 }
 0x158   :  { %3757 = vmatpush.bf16.msrb.mxu3 %v5362_v16  ;;  %v5665_v16 = vld [vmem:[#allocation5 + $0x988] sm:$0xf]  ;;  %v6923_v22 = vld [vmem:[#allocation5 + $0x994] sm:$0xf0]  ;;  %v5538_v35 = vor.u32 %v6891_v15, %v5537_v13 }
 0x159   :  { %3719 = vmatpush.bf16.msrb.mxu0 %v4962_v37  ;;  %v5793_v25 = vld [vmem:[#allocation5 + $0xa88] sm:$0xf]  ;;  %v6955_v27 = vld [vmem:[#allocation5 + $0xa94] sm:$0xf0]  ;;  %v3513_v37 = vpop.f32.mrf.mxu0  ;;  %v5666_v38 = vor.u32 %v6923_v22, %v5665_v16 }
 0x15a   :  { %3732 = vmatpush.bf16.msrb.mxu1 %v5090_v46  ;;  %v5921_v28 = vld [vmem:[#allocation5 + $0xb88] sm:$0xf]  ;;  %v6987_v33 = vld [vmem:[#allocation5 + $0xb94] sm:$0xf0]  ;;  %v5794_v40 = vor.u32 %v6955_v27, %v5793_v25  ;;  %v3514_v48 = vadd.f32 %v3513_v37, %v7446_v57  ;;  %v3526_v49 = vpop.f32.mrf.mxu1 }
 0x15b   :  { %3745 = vmatpush.bf16.msrb.mxu2 %v5218_v47  ;;  %v5521_v44 = vld [vmem:[#allocation5 + $0x868] sm:$0xf]  ;;  %v6887_v46 = vld [vmem:[#allocation5 + $0x874] sm:$0xf0] }
 0x15c   :  { %3758 = vmatpush.bf16.msrb.mxu3 %v5346_v50  ;;  %3720 = vmatmul.bf16.vlgmr.msrb.gmra.mxu0 %v7381_v42  ;;  %v5649_v47 = vld [vmem:[#allocation5 + $0x968] sm:$0xf]  ;;  %v5922_v50 = vor.u32 %v6987_v33, %v5921_v28  ;;  %v6983_v17 = vld [vmem:[#allocation5 + $0xb74] sm:$0xf0]  ;;  %v3527_v55 = vadd.f32 %v3526_v49, %v3514_v48 }
 0x15d   :  { %3764 = vmatpush.bf16.msra.mxu0 %v5586_v51  ;;  %3733 = vmatmul.bf16.vlgmr.msrb.gmra.mxu1 %v7385_v45  ;;  %v6919_v51 = vld [vmem:[#allocation5 + $0x974] sm:$0xf0]  ;;  %v5905_v54 = vld [vmem:[#allocation5 + $0xb68] sm:$0xf] }
 0x15e   :  { %3777 = vmatpush.bf16.msra.mxu1 %v5714_v52  ;;  %3746 = vmatmul.bf16.vlgmr.msrb.gmra.mxu2 %v7379_v39  ;;  %v5777_v52 = vld [vmem:[#allocation5 + $0xa68] sm:$0xf]  ;;  %v5650_v58 = vor.u32 %v6919_v51, %v5649_v47  ;;  %v6883_v63 = vld [vmem:[#allocation5 + $0x854] sm:$0xf0]  ;;  %v5906_v57 = vor.u32 %v6983_v17, %v5905_v54 }
 0x15f   :  { %3790 = vmatpush.bf16.msra.mxu2 %v5842_v53  ;;  %3759 = vmatmul.bf16.vlgmr.msrb.gmra.mxu3 %v7383_v43  ;;  %v6951_v53 = vld [vmem:[#allocation5 + $0xa74] sm:$0xf0]  ;;  %v5505_v60 = vld [vmem:[#allocation5 + $0x848] sm:$0xf] }
 0x160   :  { %3803 = vmatpush.bf16.msra.mxu3 %v5970_v56  ;;  %v5522_v56 = vor.u32 %v6887_v46, %v5521_v44  ;;  %v5778_v59 = vor.u32 %v6951_v53, %v5777_v52  ;;  %v5633_v61 = vld [vmem:[#allocation5 + $0x948] sm:$0xf]  ;;  %v6947_v2 = vld [vmem:[#allocation5 + $0xa54] sm:$0xf0]  ;;  %v5506_v7 = vor.u32 %v6883_v63, %v5505_v60 }
 0x161   :  { %3765 = vmatpush.bf16.msra.mxu0 %v5570_v62  ;;  %v3539_v62 = vpop.f32.mrf.mxu2  ;;  %v6979_v6 = vld [vmem:[#allocation5 + $0xb54] sm:$0xf0]  ;;  %v3515_v9 = vpop.f32.mrf.mxu0  ;;  %v5617_v13 = vld [vmem:[#allocation5 + $0x928] sm:$0xf] }
 0x162   :  { %3778 = vmatpush.bf16.msra.mxu1 %v5698_v0  ;;  %v6915_v0 = vld [vmem:[#allocation5 + $0x954] sm:$0xf0]  ;;  %v3540_v3 = vadd.f32 %v3539_v62, %v3527_v55  ;;  %v3552_v4 = vpop.f32.mrf.mxu3  ;;  %v3528_v15 = vpop.f32.mrf.mxu1  ;;  %v5745_v22 = vld [vmem:[#allocation5 + $0xa28] sm:$0xf] }
 0x163   :  { %3791 = vmatpush.bf16.msra.mxu2 %v5826_v1  ;;  %v5761_v1 = vld [vmem:[#allocation5 + $0xa48] sm:$0xf]  ;;  %v5634_v14 = vor.u32 %v6915_v0, %v5633_v61  ;;  %v6943_v25 = vld [vmem:[#allocation5 + $0xa34] sm:$0xf0] }
 0x164   :  { %3804 = vmatpush.bf16.msra.mxu3 %v5954_v5  ;;  %v5889_v5 = vld [vmem:[#allocation5 + $0xb48] sm:$0xf]  ;;  %v7453_v8 = vadd.f32 %v3552_v4, %v3540_v3  ;;  %v6975_v28 = vld [vmem:[#allocation5 + $0xb34] sm:$0xf0] }
 0x165   :  { %3766 = vmatpush.bf16.msra.mxu0 %v5554_v10  ;;  %v5762_v10 = vor.u32 %v6947_v2, %v5761_v1  ;;  %v5890_v16 = vor.u32 %v6979_v6, %v5889_v5  ;;  %v5873_v27 = vld [vmem:[#allocation5 + $0xb28] sm:$0xf]  ;;  %v6875_v37 = vld [vmem:[#allocation5 + $0x814] sm:$0xf0] }
 0x166   :  { %3779 = vmatpush.bf16.msra.mxu1 %v5682_v11  ;;  %v5489_v11 = vld [vmem:[#allocation5 + $0x828] sm:$0xf]  ;;  %v6907_v46 = vld [vmem:[#allocation5 + $0x914] sm:$0xf0]  ;;  %v5874_v49 = vor.u32 %v6975_v28, %v5873_v27 }
 0x167   :  { %3792 = vmatpush.bf16.msra.mxu2 %v5810_v12  ;;  %v6879_v12 = vld [vmem:[#allocation5 + $0x834] sm:$0xf0]  ;;  %v5601_v44 = vld [vmem:[#allocation5 + $0x908] sm:$0xf] }
 0x168   :  { %3805 = vmatpush.bf16.msra.mxu3 %v5938_v18  ;;  %v6911_v18 = vld [vmem:[#allocation5 + $0x934] sm:$0xf0]  ;;  %v5490_v33 = vor.u32 %v6879_v12, %v5489_v11  ;;  %v5729_v47 = vld [vmem:[#allocation5 + $0xa08] sm:$0xf]  ;;  %v5602_v63 = vor.u32 %v6907_v46, %v5601_v44 }
 0x169   :  { %3767 = vmatpush.bf16.msra.mxu0 %v5538_v35  ;;  %v5473_v35 = vld [vmem:[#allocation5 + $0x808] sm:$0xf]  ;;  %v3541_v48 = vpop.f32.mrf.mxu2  ;;  %v6971_v52 = vld [vmem:[#allocation5 + $0xb14] sm:$0xf0] }
 0x16a   :  { %3780 = vmatpush.bf16.msra.mxu1 %v5666_v38  ;;  %v5618_v38 = vor.u32 %v6911_v18, %v5617_v13  ;;  %v5857_v51 = vld [vmem:[#allocation5 + $0xb08] sm:$0xf]  ;;  %v3554_v53 = vpop.f32.mrf.mxu3  ;;  %v7031_v17 = vld [vmem:[#allocation5 + $0xcf4] sm:$0xf0] }
 0x16b   :  { %3793 = vmatpush.bf16.msra.mxu2 %v5794_v40  ;;  %v5746_v40 = vor.u32 %v6943_v25, %v5745_v22  ;;  %v6097_v54 = vld [vmem:[#allocation5 + $0xce8] sm:$0xf]  ;;  %v7095_v60 = vld [vmem:[#allocation5 + $0xef4] sm:$0xf0]  ;;  %v5858_v0 = vor.u32 %v6971_v52, %v5857_v51 }
 0x16c   :  { %3806 = vmatpush.bf16.msra.mxu3 %v5922_v50  ;;  %v6939_v50 = vld [vmem:[#allocation5 + $0xa14] sm:$0xf0]  ;;  %v6225_v55 = vld [vmem:[#allocation5 + $0xde8] sm:$0xf]  ;;  %v6098_v1 = vor.u32 %v7031_v17, %v6097_v54 }
 0x16d   :  { %3768 = vmatpush.bf16.msra.mxu0 %v5522_v56  ;;  %v5474_v56 = vor.u32 %v6875_v37, %v5473_v35  ;;  %v5730_v61 = vor.u32 %v6939_v50, %v5729_v47  ;;  %v6481_v62 = vld [vmem:[#allocation5 + $0xfe8] sm:$0xf]  ;;  %v7027_v5 = vld [vmem:[#allocation5 + $0xcd4] sm:$0xf0] }
 0x16e   :  { %3781 = vmatpush.bf16.msra.mxu1 %v5650_v58  ;;  %v7063_v58 = vld [vmem:[#allocation5 + $0xdf4] sm:$0xf0]  ;;  %v6081_v4 = vld [vmem:[#allocation5 + $0xcc8] sm:$0xf] }
 0x16f   :  { %3794 = vmatpush.bf16.msra.mxu2 %v5778_v59  ;;  %v6353_v59 = vld [vmem:[#allocation5 + $0xee8] sm:$0xf]  ;;  %v6226_v2 = vor.u32 %v7063_v58, %v6225_v55  ;;  %v7059_v9 = vld [vmem:[#allocation5 + $0xdd4] sm:$0xf0]  ;;  %v6082_v13 = vor.u32 %v7027_v5, %v6081_v4 }
 0x170   :  { %3807 = vmatpush.bf16.msra.mxu3 %v5906_v57  ;;  %v7127_v57 = vld [vmem:[#allocation5 + $0xff4] sm:$0xf0]  ;;  %v6354_v3 = vor.u32 %v7095_v60, %v6353_v59  ;;  %v6209_v6 = vld [vmem:[#allocation5 + $0xdc8] sm:$0xf] }
 0x171   :  { %3769 = vmatpush.bf16.msra.mxu0 %v5506_v7  ;;  %v6482_v7 = vor.u32 %v7127_v57, %v6481_v62  ;;  %v6465_v11 = vld [vmem:[#allocation5 + $0xfc8] sm:$0xf]  ;;  %v7123_v12 = vld [vmem:[#allocation5 + $0xfd4] sm:$0xf0]  ;;  %v6210_v15 = vor.u32 %v7059_v9, %v6209_v6 }
 0x172   :  { %3782 = vmatpush.bf16.msra.mxu1 %v5634_v14  ;;  %v6337_v14 = vld [vmem:[#allocation5 + $0xec8] sm:$0xf]  ;;  %v7023_v22 = vld [vmem:[#allocation5 + $0xcb4] sm:$0xf0]  ;;  %v6466_v27 = vor.u32 %v7123_v12, %v6465_v11 }
 0x173   :  { %3795 = vmatpush.bf16.msra.mxu2 %v5762_v10  ;;  %v7091_v10 = vld [vmem:[#allocation5 + $0xed4] sm:$0xf0]  ;;  %v6065_v18 = vld [vmem:[#allocation5 + $0xca8] sm:$0xf] }
 0x174   :  { %3808 = vmatpush.bf16.msra.mxu3 %v5890_v16  ;;  %v6338_v16 = vor.u32 %v7091_v10, %v6337_v14  ;;  %v6193_v25 = vld [vmem:[#allocation5 + $0xda8] sm:$0xf]  ;;  %v7055_v28 = vld [vmem:[#allocation5 + $0xdb4] sm:$0xf0] }
 0x175   :  { %3770 = vmatpush.bf16.msra.mxu0 %v5490_v33  ;;  %v6321_v33 = vld [vmem:[#allocation5 + $0xea8] sm:$0xf]  ;;  %v7087_v35 = vld [vmem:[#allocation5 + $0xeb4] sm:$0xf0]  ;;  %v6194_v44 = vor.u32 %v7055_v28, %v6193_v25 }
 0x176   :  { %3783 = vmatpush.bf16.msra.mxu1 %v5618_v38  ;;  %v6449_v37 = vld [vmem:[#allocation5 + $0xfa8] sm:$0xf]  ;;  %v7119_v38 = vld [vmem:[#allocation5 + $0xfb4] sm:$0xf0]  ;;  %v6322_v46 = vor.u32 %v7087_v35, %v6321_v33 }
 0x177   :  { %3796 = vmatpush.bf16.msra.mxu2 %v5746_v40  ;;  %v6066_v40 = vor.u32 %v7023_v22, %v6065_v18  ;;  %v6049_v47 = vld [vmem:[#allocation5 + $0xc88] sm:$0xf]  ;;  %v7019_v48 = vld [vmem:[#allocation5 + $0xc94] sm:$0xf0]  ;;  %v6450_v50 = vor.u32 %v7119_v38, %v6449_v37 }
 0x178   :  { %3809 = vmatpush.bf16.msra.mxu3 %v5874_v49  ;;  %v6177_v49 = vld [vmem:[#allocation5 + $0xd88] sm:$0xf]  ;;  %v7051_v51 = vld [vmem:[#allocation5 + $0xd94] sm:$0xf0]  ;;  %v6050_v58 = vor.u32 %v7019_v48, %v6049_v47 }
 0x179   :  { %3771 = vmatpush.bf16.msra.mxu0 %v5474_v56  ;;  %v6305_v52 = vld [vmem:[#allocation5 + $0xe88] sm:$0xf]  ;;  %v7083_v53 = vld [vmem:[#allocation5 + $0xe94] sm:$0xf0]  ;;  %v3565_v54 = vpop.f32.mrf.mxu0  ;;  %v6178_v60 = vor.u32 %v7051_v51, %v6177_v49 }
 0x17a   :  { %3784 = vmatpush.bf16.msra.mxu1 %v5602_v63  ;;  %v6433_v17 = vld [vmem:[#allocation5 + $0xf88] sm:$0xf]  ;;  %v7115_v55 = vld [vmem:[#allocation5 + $0xf94] sm:$0xf0]  ;;  %v3566_v56 = vadd.f32 %v3565_v54, %v7453_v8  ;;  %v3578_v59 = vpop.f32.mrf.mxu1  ;;  %v6306_v63 = vor.u32 %v7083_v53, %v6305_v52 }
 0x17b   :  { %3797 = vmatpush.bf16.msra.mxu2 %v5730_v61  ;;  %v6033_v61 = vld [vmem:[#allocation5 + $0xc68] sm:$0xf]  ;;  %v7015_v62 = vld [vmem:[#allocation5 + $0xc74] sm:$0xf0] }
 0x17c   :  { %3810 = vmatpush.bf16.msra.mxu3 %v5858_v0  ;;  %3772 = vmatmul.bf16.vlgmr.msra.gmra.mxu0 %v7391_v26  ;;  %v6161_v57 = vld [vmem:[#allocation5 + $0xd68] sm:$0xf]  ;;  %v6434_v0 = vor.u32 %v7115_v55, %v6433_v17  ;;  %v7079_v4 = vld [vmem:[#allocation5 + $0xe74] sm:$0xf0] }
 0x17d   :  { %3816 = vmatpush.bf16.msrb.mxu0 %v6098_v1  ;;  %3785 = vmatmul.bf16.vlgmr.msra.gmra.mxu1 %v7395_v31  ;;  %v3579_v1 = vadd.f32 %v3578_v59, %v3566_v56  ;;  %v6417_v5 = vld [vmem:[#allocation5 + $0xf68] sm:$0xf]  ;;  %v7111_v6 = vld [vmem:[#allocation5 + $0xf74] sm:$0xf0] }
 0x17e   :  { %3829 = vmatpush.bf16.msrb.mxu1 %v6226_v2  ;;  %3798 = vmatmul.bf16.vlgmr.msra.gmra.mxu2 %v7393_v30  ;;  %v7047_v2 = vld [vmem:[#allocation5 + $0xd74] sm:$0xf0]  ;;  %v6017_v14 = vld [vmem:[#allocation5 + $0xc48] sm:$0xf]  ;;  %v6418_v12 = vor.u32 %v7111_v6, %v6417_v5  ;;  %v6677_v5 = vld [vmem:[#allocation5 + $0x1ec] sm:$0xf] }
 0x17f   :  { %3842 = vmatpush.bf16.msrb.mxu2 %v6354_v3  ;;  %3811 = vmatmul.bf16.vlgmr.msra.gmra.mxu3 %v7397_v34  ;;  %v6289_v3 = vld [vmem:[#allocation5 + $0xe68] sm:$0xf]  ;;  %v6162_v8 = vor.u32 %v7047_v2, %v6161_v57  ;;  %v7011_v10 = vld [vmem:[#allocation5 + $0xc54] sm:$0xf0] }
 0x180   :  { %3855 = vmatpush.bf16.msrb.mxu3 %v6482_v7  ;;  %v6034_v7 = vor.u32 %v7015_v62, %v6033_v61  ;;  %v6290_v9 = vor.u32 %v7079_v4, %v6289_v3  ;;  %v6145_v11 = vld [vmem:[#allocation5 + $0xd48] sm:$0xf]  ;;  %v7075_v18 = vld [vmem:[#allocation5 + $0xe54] sm:$0xf0]  ;;  %v6018_v35 = vor.u32 %v7011_v10, %v6017_v14  ;;  %v6645_v3 = vld [vmem:[#allocation5 + $0xec] sm:$0xf] }
 0x181   :  { %3817 = vmatpush.bf16.msrb.mxu0 %v6082_v13  ;;  %v3591_v13 = vpop.f32.mrf.mxu2  ;;  %v7107_v28 = vld [vmem:[#allocation5 + $0xf54] sm:$0xf0]  ;;  %v3567_v33 = vpop.f32.mrf.mxu0  ;;  %v6129_v48 = vld [vmem:[#allocation5 + $0xd28] sm:$0xf]  ;;  %v4563_v4 = vld [vmem:[#allocation5 + $0xf8] sm:$0xf0] }
 0x182   :  { %3830 = vmatpush.bf16.msrb.mxu1 %v6210_v15  ;;  %v7043_v15 = vld [vmem:[#allocation5 + $0xd54] sm:$0xf0]  ;;  %v3592_v22 = vadd.f32 %v3591_v13, %v3579_v1  ;;  %v3604_v25 = vpop.f32.mrf.mxu3  ;;  %v3580_v37 = vpop.f32.mrf.mxu1  ;;  %v6257_v51 = vld [vmem:[#allocation5 + $0xe28] sm:$0xf]  ;;  %v4819_v14 = vld [vmem:[#allocation5 + $0x2f8] sm:$0xf0] }
 0x183   :  { %3843 = vmatpush.bf16.msrb.mxu2 %v6338_v16  ;;  %v6273_v16 = vld [vmem:[#allocation5 + $0xe48] sm:$0xf]  ;;  %v7007_v47 = vld [vmem:[#allocation5 + $0xc34] sm:$0xf0]  ;;  %v4947_v13 = vld [vmem:[#allocation5 + $0x3f8] sm:$0xf0] }
 0x184   :  { %3856 = vmatpush.bf16.msrb.mxu3 %v6466_v27  ;;  %v6401_v27 = vld [vmem:[#allocation5 + $0xf48] sm:$0xf]  ;;  %v7460_v38 = vadd.f32 %v3604_v25, %v3592_v22  ;;  %v7071_v52 = vld [vmem:[#allocation5 + $0xe34] sm:$0xf0]  ;;  %v6641_v25 = vld [vmem:[#allocation5 + $0xcc] sm:$0xf] }
 0x185   :  { %3818 = vmatpush.bf16.msrb.mxu0 %v6066_v40  ;;  %v6146_v40 = vor.u32 %v7043_v15, %v6145_v11  ;;  %v6402_v49 = vor.u32 %v7107_v28, %v6401_v27  ;;  %v6385_v53 = vld [vmem:[#allocation5 + $0xf28] sm:$0xf]  ;;  %v7103_v54 = vld [vmem:[#allocation5 + $0xf34] sm:$0xf0]  ;;  %v6258_v59 = vor.u32 %v7071_v52, %v6257_v51  ;;  %v4547_v27 = vld [vmem:[#allocation5 + $0xd8] sm:$0xf0] }
 0x186   :  { %3831 = vmatpush.bf16.msrb.mxu1 %v6194_v44  ;;  %v6274_v44 = vor.u32 %v7075_v18, %v6273_v16  ;;  %v5985_v55 = vld [vmem:[#allocation5 + $0xc08] sm:$0xf]  ;;  %v7003_v56 = vld [vmem:[#allocation5 + $0xc14] sm:$0xf0]  ;;  %v6386_v62 = vor.u32 %v7103_v54, %v6385_v53  ;;  %v4566_v16 = vor.u32 %v6645_v3, %v4563_v4  ;;  %v6673_v28 = vld [vmem:[#allocation5 + $0x1cc] sm:$0xf] }
 0x187   :  { %3844 = vmatpush.bf16.msrb.mxu2 %v6322_v46  ;;  %v6001_v46 = vld [vmem:[#allocation5 + $0xc28] sm:$0xf]  ;;  %v7067_v57 = vld [vmem:[#allocation5 + $0xe14] sm:$0xf0]  ;;  %v6705_v37 = vld [vmem:[#allocation5 + $0x2cc] sm:$0xf] }
 0x188   :  { %3857 = vmatpush.bf16.msrb.mxu3 %v6450_v50  ;;  %v7039_v50 = vld [vmem:[#allocation5 + $0xd34] sm:$0xf0]  ;;  %v6002_v17 = vor.u32 %v7007_v47, %v6001_v46  ;;  %v6241_v61 = vld [vmem:[#allocation5 + $0xe08] sm:$0xf]  ;;  %v4931_v46 = vld [vmem:[#allocation5 + $0x3d8] sm:$0xf0]  ;;  %v4550_v47 = vor.u32 %v6641_v25, %v4547_v27 }
 0x189   :  { %3819 = vmatpush.bf16.msrb.mxu0 %v6050_v58  ;;  %v6130_v58 = vor.u32 %v7039_v50, %v6129_v48  ;;  %v7099_v1 = vld [vmem:[#allocation5 + $0xf14] sm:$0xf0]  ;;  %v3593_v2 = vpop.f32.mrf.mxu2  ;;  %v6242_v11 = vor.u32 %v7067_v57, %v6241_v61  ;;  %v6637_v50 = vld [vmem:[#allocation5 + $0xac] sm:$0xf]  ;;  %v4531_v51 = vld [vmem:[#allocation5 + $0xb8] sm:$0xf0] }
 0x18a   :  { %3832 = vmatpush.bf16.msrb.mxu1 %v6178_v60  ;;  %v6113_v60 = vld [vmem:[#allocation5 + $0xd08] sm:$0xf]  ;;  %v3606_v6 = vpop.f32.mrf.mxu3  ;;  %v6669_v52 = vld [vmem:[#allocation5 + $0x1ac] sm:$0xf]  ;;  %v4659_v54 = vld [vmem:[#allocation5 + $0x1b8] sm:$0xf0] }
 0x18b   :  { %3845 = vmatpush.bf16.msrb.mxu2 %v6306_v63  ;;  %v7035_v63 = vld [vmem:[#allocation5 + $0xd14] sm:$0xf0]  ;;  %v6633_v61 = vld [vmem:[#allocation5 + $0x8c] sm:$0xf]  ;;  %v4771_v3 = vld [vmem:[#allocation5 + $0x298] sm:$0xf0] }
 0x18c   :  { %3858 = vmatpush.bf16.msrb.mxu3 %v6434_v0  ;;  %v6369_v0 = vld [vmem:[#allocation5 + $0xf08] sm:$0xf]  ;;  %v6114_v10 = vor.u32 %v7035_v63, %v6113_v60  ;;  %v4662_v60 = vor.u32 %v6669_v52, %v4659_v54  ;;  %v6665_v57 = vld [vmem:[#allocation5 + $0x18c] sm:$0xf]  ;;  %v4899_v6 = vld [vmem:[#allocation5 + $0x398] sm:$0xf0] }
 0x18d   :  { %3820 = vmatpush.bf16.msrb.mxu0 %v6034_v7  ;;  %v5986_v7 = vor.u32 %v7003_v56, %v5985_v55  ;;  %v6370_v15 = vor.u32 %v7099_v1, %v6369_v0  ;;  %v4787_v55 = vld [vmem:[#allocation5 + $0x2b8] sm:$0xf0]  ;;  %v6733_v56 = vld [vmem:[#allocation5 + $0x3ac] sm:$0xf] }
 0x18e   :  { %3833 = vmatpush.bf16.msrb.mxu1 %v6162_v8  ;;  %v4691_v8 = vld [vmem:[#allocation5 + $0x1f8] sm:$0xf0]  ;;  %v6697_v2 = vld [vmem:[#allocation5 + $0x28c] sm:$0xf] }
 0x18f   :  { %3846 = vmatpush.bf16.msrb.mxu2 %v6290_v9  ;;  %v6709_v9 = vld [vmem:[#allocation5 + $0x2ec] sm:$0xf]  ;;  %v4694_v18 = vor.u32 %v6677_v5, %v4691_v8  ;;  %v4643_v1 = vld [vmem:[#allocation5 + $0x198] sm:$0xf0] }
 0x190   :  { %3859 = vmatpush.bf16.msrb.mxu3 %v6418_v12  ;;  %v6741_v12 = vld [vmem:[#allocation5 + $0x3ec] sm:$0xf]  ;;  %v4822_v22 = vor.u32 %v6709_v9, %v4819_v14  ;;  %v4646_v14 = vor.u32 %v6665_v57, %v4643_v1  ;;  %v4755_v25 = vld [vmem:[#allocation5 + $0x278] sm:$0xf0] }
 0x191   :  { %3821 = vmatpush.bf16.msrb.mxu0 %v6018_v35  ;;  %v4950_v33 = vor.u32 %v6741_v12, %v4947_v13  ;;  %v4675_v35 = vld [vmem:[#allocation5 + $0x1d8] sm:$0xf0]  ;;  %v6729_v5 = vld [vmem:[#allocation5 + $0x38c] sm:$0xf] }
 0x192   :  { %3834 = vmatpush.bf16.msrb.mxu1 %v6146_v40  ;;  %v4803_v40 = vld [vmem:[#allocation5 + $0x2d8] sm:$0xf0]  ;;  %v4678_v48 = vor.u32 %v6673_v28, %v4675_v35  ;;  %v6661_v13 = vld [vmem:[#allocation5 + $0x16c] sm:$0xf] }
 0x193   :  { %3847 = vmatpush.bf16.msrb.mxu2 %v6274_v44  ;;  %v6737_v44 = vld [vmem:[#allocation5 + $0x3cc] sm:$0xf]  ;;  %v4499_v12 = vld [vmem:[#allocation5 + $0x78] sm:$0xf0] }
 0x194   :  { %3860 = vmatpush.bf16.msrb.mxu3 %v6402_v49  ;;  %v4806_v49 = vor.u32 %v6705_v37, %v4803_v40  ;;  %v4934_v53 = vor.u32 %v6737_v44, %v4931_v46  ;;  %v6725_v27 = vld [vmem:[#allocation5 + $0x36c] sm:$0xf]  ;;  %v4883_v28 = vld [vmem:[#allocation5 + $0x378] sm:$0xf0] }
 0x195   :  { %3822 = vmatpush.bf16.msrb.mxu0 %v6002_v17  ;;  %v6701_v17 = vld [vmem:[#allocation5 + $0x2ac] sm:$0xf]  ;;  %v4483_v40 = vld [vmem:[#allocation5 + $0x58] sm:$0xf0]  ;;  %v4886_v46 = vor.u32 %v6725_v27, %v4883_v28 }
 0x196   :  { %3835 = vmatpush.bf16.msrb.mxu1 %v6130_v58  ;;  %v4915_v58 = vld [vmem:[#allocation5 + $0x3b8] sm:$0xf0]  ;;  %v4790_v63 = vor.u32 %v6701_v17, %v4787_v55  ;;  %v6625_v37 = vld [vmem:[#allocation5 + $0x4c] sm:$0xf] }
 0x197   :  { %3848 = vmatpush.bf16.msrb.mxu2 %v6258_v59  ;;  %v4534_v59 = vor.u32 %v6637_v50, %v4531_v51  ;;  %v4918_v0 = vor.u32 %v6733_v56, %v4915_v58  ;;  %v6657_v44 = vld [vmem:[#allocation5 + $0x14c] sm:$0xf]  ;;  %v4739_v50 = vld [vmem:[#allocation5 + $0x258] sm:$0xf0]  ;;  %v4486_v55 = vor.u32 %v6625_v37, %v4483_v40 }
 0x198   :  { %3861 = vmatpush.bf16.msrb.mxu3 %v6386_v62  ;;  %v4515_v62 = vld [vmem:[#allocation5 + $0x98] sm:$0xf0]  ;;  %v6685_v1 = vld [vmem:[#allocation5 + $0x22c] sm:$0xf] }
 0x199   :  { %3823 = vmatpush.bf16.msrb.mxu0 %v5986_v7  ;;  %v3617_v4 = vpop.f32.mrf.mxu0  ;;  %v4518_v8 = vor.u32 %v6633_v61, %v4515_v62  ;;  %v4867_v54 = vld [vmem:[#allocation5 + $0x358] sm:$0xf0]  ;;  %v6653_v62 = vld [vmem:[#allocation5 + $0x12c] sm:$0xf] }
 0x19a   :  { %3836 = vmatpush.bf16.msrb.mxu1 %v6114_v10  ;;  %v3618_v7 = vadd.f32 %v3617_v4, %v7460_v38  ;;  %v3630_v9 = vpop.f32.mrf.mxu1  ;;  %v4774_v10 = vor.u32 %v6697_v2, %v4771_v3  ;;  %v4467_v61 = vld [vmem:[#allocation5 + $0x38] sm:$0xf0]  ;;  %v6717_v3 = vld [vmem:[#allocation5 + $0x32c] sm:$0xf] }
 0x19b   :  { %3849 = vmatpush.bf16.msrb.mxu2 %v6242_v11  ;;  %v6629_v11 = vld [vmem:[#allocation5 + $0x6c] sm:$0xf]  ;;  %v4723_v2 = vld [vmem:[#allocation5 + $0x238] sm:$0xf0] }
 0x19c   :  { %3862 = vmatpush.bf16.msrb.mxu3 %v6370_v15  ;;  %3824 = vmatmul.bf16.vlgmr.msrb.gmra.mxu0 %v7403_v24  ;;  %v4902_v15 = vor.u32 %v6729_v5, %v4899_v6  ;;  %v4851_v4 = vld [vmem:[#allocation5 + $0x338] sm:$0xf0]  ;;  %v6617_v6 = vld [vmem:[#allocation5 + $0xc] sm:$0xf] }
 0x19d   :  { %3868 = vmatpush.bf16.msra.mxu0 %v4566_v16  ;;  %3837 = vmatmul.bf16.vlgmr.msrb.gmra.mxu1 %v7407_v32  ;;  %v3631_v16 = vadd.f32 %v3630_v9, %v3618_v7  ;;  %v4451_v7 = vld [vmem:[#allocation5 + $0x18] sm:$0xf0]  ;;  %v4726_v9 = vor.u32 %v6685_v1, %v4723_v2  ;;  %v6805_v27 = vld [vmem:[#allocation5 + $0x5ec] sm:$0xf] }
 0x19e   :  { %3881 = vmatpush.bf16.msra.mxu1 %v4694_v18  ;;  %3850 = vmatmul.bf16.vlgmr.msrb.gmra.mxu2 %v7405_v29  ;;  %v4627_v18 = vld [vmem:[#allocation5 + $0x178] sm:$0xf0]  ;;  %v6797_v2 = vld [vmem:[#allocation5 + $0x5ac] sm:$0xf] }
 0x19f   :  { %3894 = vmatpush.bf16.msra.mxu2 %v4822_v22  ;;  %3863 = vmatmul.bf16.vlgmr.msrb.gmra.mxu3 %v7409_v36  ;;  %v6693_v22 = vld [vmem:[#allocation5 + $0x26c] sm:$0xf]  ;;  %v4630_v38 = vor.u32 %v6661_v13, %v4627_v18  ;;  %v4707_v13 = vld [vmem:[#allocation5 + $0x218] sm:$0xf0] }
 0x1a0   :  { %3907 = vmatpush.bf16.msra.mxu3 %v4950_v33  ;;  %v4502_v33 = vor.u32 %v6629_v11, %v4499_v12  ;;  %v4758_v35 = vor.u32 %v6693_v22, %v4755_v25  ;;  %v6681_v11 = vld [vmem:[#allocation5 + $0x20c] sm:$0xf]  ;;  %v4854_v12 = vor.u32 %v6717_v3, %v4851_v4  ;;  %v5075_v25 = vld [vmem:[#allocation5 + $0x4f8] sm:$0xf0] }
 0x1a1   :  { %3869 = vmatpush.bf16.msra.mxu0 %v4550_v47  ;;  %v3643_v47 = vpop.f32.mrf.mxu2  ;;  %v3619_v17 = vpop.f32.mrf.mxu0  ;;  %v6773_v22 = vld [vmem:[#allocation5 + $0x4ec] sm:$0xf]  ;;  %v5331_v37 = vld [vmem:[#allocation5 + $0x6f8] sm:$0xf0] }
 0x1a2   :  { %3882 = vmatpush.bf16.msra.mxu1 %v4678_v48  ;;  %v4611_v48 = vld [vmem:[#allocation5 + $0x158] sm:$0xf0]  ;;  %v3644_v51 = vadd.f32 %v3643_v47, %v3631_v16  ;;  %v3656_v52 = vpop.f32.mrf.mxu3  ;;  %v3632_v56 = vpop.f32.mrf.mxu1 }
 0x1a3   :  { %3895 = vmatpush.bf16.msra.mxu2 %v4806_v49  ;;  %v6689_v49 = vld [vmem:[#allocation5 + $0x24c] sm:$0xf]  ;;  %v4835_v16 = vld [vmem:[#allocation5 + $0x318] sm:$0xf0] }
 0x1a4   :  { %3908 = vmatpush.bf16.msra.mxu3 %v4934_v53  ;;  %v6721_v53 = vld [vmem:[#allocation5 + $0x34c] sm:$0xf]  ;;  %v7467_v58 = vadd.f32 %v3656_v52, %v3644_v51  ;;  %v5459_v47 = vld [vmem:[#allocation5 + $0x7f8] sm:$0xf0] }
 0x1a5   :  { %3870 = vmatpush.bf16.msra.mxu0 %v4534_v59  ;;  %v4614_v59 = vor.u32 %v6657_v44, %v4611_v48  ;;  %v4870_v57 = vor.u32 %v6721_v53, %v4867_v54  ;;  %v4710_v44 = vor.u32 %v6681_v11, %v4707_v13  ;;  %v6769_v52 = vld [vmem:[#allocation5 + $0x4cc] sm:$0xf]  ;;  %v5059_v53 = vld [vmem:[#allocation5 + $0x4d8] sm:$0xf0] }
 0x1a6   :  { %3883 = vmatpush.bf16.msra.mxu1 %v4662_v60  ;;  %v4742_v60 = vor.u32 %v6689_v49, %v4739_v50  ;;  %v5078_v49 = vor.u32 %v6773_v22, %v5075_v25  ;;  %v6801_v54 = vld [vmem:[#allocation5 + $0x5cc] sm:$0xf]  ;;  %v5043_v1 = vld [vmem:[#allocation5 + $0x4b8] sm:$0xf0] }
 0x1a7   :  { %3896 = vmatpush.bf16.msra.mxu2 %v4790_v63  ;;  %v6621_v63 = vld [vmem:[#allocation5 + $0x2c] sm:$0xf]  ;;  %v5171_v4 = vld [vmem:[#allocation5 + $0x5b8] sm:$0xf0] }
 0x1a8   :  { %3909 = vmatpush.bf16.msra.mxu3 %v4918_v0  ;;  %v4595_v0 = vld [vmem:[#allocation5 + $0x138] sm:$0xf0]  ;;  %v4470_v5 = vor.u32 %v6621_v63, %v4467_v61  ;;  %v6833_v56 = vld [vmem:[#allocation5 + $0x6cc] sm:$0xf]  ;;  %v5062_v61 = vor.u32 %v6769_v52, %v5059_v53 }
 0x1a9   :  { %3871 = vmatpush.bf16.msra.mxu0 %v4518_v8  ;;  %v4598_v8 = vor.u32 %v6653_v62, %v4595_v0  ;;  %v3645_v18 = vpop.f32.mrf.mxu2  ;;  %v5443_v63 = vld [vmem:[#allocation5 + $0x7d8] sm:$0xf0]  ;;  %v6765_v0 = vld [vmem:[#allocation5 + $0x4ac] sm:$0xf] }
 0x1aa   :  { %3884 = vmatpush.bf16.msra.mxu1 %v4646_v14  ;;  %v6649_v14 = vld [vmem:[#allocation5 + $0x10c] sm:$0xf]  ;;  %v3658_v28 = vpop.f32.mrf.mxu3  ;;  %v5411_v25 = vld [vmem:[#allocation5 + $0x798] sm:$0xf0] }
 0x1ab   :  { %3897 = vmatpush.bf16.msra.mxu2 %v4774_v10  ;;  %v4579_v10 = vld [vmem:[#allocation5 + $0x118] sm:$0xf0]  ;;  %v6793_v13 = vld [vmem:[#allocation5 + $0x58c] sm:$0xf] }
 0x1ac   :  { %3910 = vmatpush.bf16.msra.mxu3 %v4902_v15  ;;  %v6713_v15 = vld [vmem:[#allocation5 + $0x30c] sm:$0xf]  ;;  %v4582_v40 = vor.u32 %v6649_v14, %v4579_v10  ;;  %v5174_v10 = vor.u32 %v6797_v2, %v5171_v4 }
 0x1ad   :  { %3872 = vmatpush.bf16.msra.mxu0 %v4502_v33  ;;  %v4454_v33 = vor.u32 %v6617_v6, %v4451_v7  ;;  %v4838_v48 = vor.u32 %v6713_v15, %v4835_v16  ;;  %v5299_v6 = vld [vmem:[#allocation5 + $0x6b8] sm:$0xf0]  ;;  %v6861_v7 = vld [vmem:[#allocation5 + $0x7ac] sm:$0xf]  ;;  %v7473_v15 = vld [vmem:[#allocation7] sm:$0xf] }
 0x1ae   :  { %3885 = vmatpush.bf16.msra.mxu1 %v4630_v38  ;;  %v5203_v38 = vld [vmem:[#allocation5 + $0x5f8] sm:$0xf0]  ;;  %v6761_v14 = vld [vmem:[#allocation5 + $0x48c] sm:$0xf] }
 0x1af   :  { %3898 = vmatpush.bf16.msra.mxu2 %v4758_v35  ;;  %v6837_v35 = vld [vmem:[#allocation5 + $0x6ec] sm:$0xf]  ;;  %v5206_v50 = vor.u32 %v6805_v27, %v5203_v38 }
 0x1b0   :  { %3911 = vmatpush.bf16.msra.mxu3 %v4886_v46  ;;  %v6869_v46 = vld [vmem:[#allocation5 + $0x7ec] sm:$0xf]  ;;  %v5334_v51 = vor.u32 %v6837_v35, %v5331_v37  ;;  %v5011_v35 = vld [vmem:[#allocation5 + $0x478] sm:$0xf0] }
 0x1b1   :  { %3873 = vmatpush.bf16.msra.mxu0 %v4486_v55  ;;  %v5462_v17 = vor.u32 %v6869_v46, %v5459_v47  ;;  %v5187_v55 = vld [vmem:[#allocation5 + $0x5d8] sm:$0xf0]  ;;  %v6825_v18 = vld [vmem:[#allocation5 + $0x68c] sm:$0xf] }
 0x1b2   :  { %3886 = vmatpush.bf16.msra.mxu1 %v4614_v59  ;;  %v5315_v59 = vld [vmem:[#allocation5 + $0x6d8] sm:$0xf0]  ;;  %v5190_v62 = vor.u32 %v6801_v54, %v5187_v55  ;;  %v6857_v22 = vld [vmem:[#allocation5 + $0x78c] sm:$0xf] }
 0x1b3   :  { %3899 = vmatpush.bf16.msra.mxu2 %v4742_v60  ;;  %v6865_v60 = vld [vmem:[#allocation5 + $0x7cc] sm:$0xf]  ;;  %v5414_v46 = vor.u32 %v6857_v22, %v5411_v25  ;;  %v5139_v47 = vld [vmem:[#allocation5 + $0x578] sm:$0xf0] }
 0x1b4   :  { %3912 = vmatpush.bf16.msra.mxu3 %v4870_v57  ;;  %v5318_v57 = vor.u32 %v6833_v56, %v5315_v59  ;;  %v5446_v3 = vor.u32 %v6865_v60, %v5443_v63  ;;  %v6757_v38 = vld [vmem:[#allocation5 + $0x46c] sm:$0xf]  ;;  %v4995_v56 = vld [vmem:[#allocation5 + $0x458] sm:$0xf0] }
 0x1b5   :  { %3874 = vmatpush.bf16.msra.mxu0 %v4470_v5  ;;  %v6829_v5 = vld [vmem:[#allocation5 + $0x6ac] sm:$0xf]  ;;  %v5014_v53 = vor.u32 %v6757_v38, %v5011_v35  ;;  %v4963_v25 = vld [vmem:[#allocation5 + $0x418] sm:$0xf0] }
 0x1b6   :  { %3887 = vmatpush.bf16.msra.mxu1 %v4598_v8  ;;  %v5427_v8 = vld [vmem:[#allocation5 + $0x7b8] sm:$0xf0]  ;;  %v5302_v11 = vor.u32 %v6829_v5, %v5299_v6  ;;  %v6789_v37 = vld [vmem:[#allocation5 + $0x56c] sm:$0xf] }
 0x1b7   :  { %3900 = vmatpush.bf16.msra.mxu2 %v4726_v9  ;;  %v5046_v9 = vor.u32 %v6765_v0, %v5043_v1  ;;  %v5430_v16 = vor.u32 %v6861_v7, %v5427_v8  ;;  %v5142_v54 = vor.u32 %v6789_v37, %v5139_v47  ;;  %v6753_v55 = vld [vmem:[#allocation5 + $0x44c] sm:$0xf] }
 0x1b8   :  { %3913 = vmatpush.bf16.msra.mxu3 %v4854_v12  ;;  %v5027_v12 = vld [vmem:[#allocation5 + $0x498] sm:$0xf0]  ;;  %v6785_v59 = vld [vmem:[#allocation5 + $0x54c] sm:$0xf]  ;;  %v4998_v4 = vor.u32 %v6753_v55, %v4995_v56 }
 0x1b9   :  { %3875 = vmatpush.bf16.msra.mxu0 %v4454_v33  ;;  %v5030_v27 = vor.u32 %v6761_v14, %v5027_v12  ;;  %v6849_v2 = vld [vmem:[#allocation5 + $0x74c] sm:$0xf]  ;;  %v4979_v14 = vld [vmem:[#allocation5 + $0x438] sm:$0xf0] }
 0x1ba   :  { %3888 = vmatpush.bf16.msra.mxu1 %v4582_v40  ;;  %v6745_v22 = vld [vmem:[#allocation5 + $0x40c] sm:$0xf] }
 0x1bb   :  { %3901 = vmatpush.bf16.msra.mxu2 %v4710_v44  ;;  %v3682_v44 = vpop.f32.mrf.mxu1  ;;  %v6809_v38 = vld [vmem:[#allocation5 + $0x60c] sm:$0xf] }
 0x1bc   :  { %3914 = vmatpush.bf16.msra.mxu3 %v4838_v48  ;;  %3876 = vmatmul.bf16.vlgmr.msra.gmra.mxu0 %v7369_v20  ;;  %v5155_v20 = vld [vmem:[#allocation5 + $0x598] sm:$0xf0]  ;;  %v6821_v48 = vld [vmem:[#allocation5 + $0x66c] sm:$0xf] }
 0x1bd   :  { %3920 = vmatpush.bf16.msrb.mxu0 %v5078_v49  ;;  %3889 = vmatmul.bf16.vlgmr.msra.gmra.mxu1 %v7373_v23  ;;  %v3669_v23 = vpop.f32.mrf.mxu0  ;;  %v5158_v28 = vor.u32 %v6793_v13, %v5155_v20  ;;  %v5267_v49 = vld [vmem:[#allocation5 + $0x678] sm:$0xf0]  ;;  %v6845_v20 = vld [vmem:[#allocation5 + $0x72c] sm:$0xf] }
 0x1be   :  { %3933 = vmatpush.bf16.msrb.mxu1 %v5206_v50  ;;  %3902 = vmatmul.bf16.vlgmr.msra.gmra.mxu2 %v7367_v19  ;;  %v622_v19 = vperm.slane %v7473_v15, 2  ;;  %v6853_v50 = vld [vmem:[#allocation5 + $0x76c] sm:$0xf]  ;;  %v5107_v13 = vld [vmem:[#allocation5 + $0x538] sm:$0xf0] }
 0x1bf   :  { %3946 = vmatpush.bf16.msrb.mxu2 %v5334_v51  ;;  %3915 = vmatmul.bf16.vlgmr.msra.gmra.mxu3 %v7371_v21  ;;  %v5283_v21 = vld [vmem:[#allocation5 + $0x698] sm:$0xf0]  ;;  %v6997_v56 = vld [vmem:[#allocation5 + $0xbec] sm:$0xf] }
 0x1c0   :  { %3959 = vmatpush.bf16.msrb.mxu3 %v5462_v17  ;;  %v5286_v33 = vor.u32 %v6825_v18, %v5283_v21  ;;  %v3670_v40 = vadd.f32 %v3669_v23, %v622_v19  ;;  %v5395_v51 = vld [vmem:[#allocation5 + $0x778] sm:$0xf0]  ;;  %v5270_v17 = vor.u32 %v6821_v48, %v5267_v49  ;;  %v6813_v19 = vld [vmem:[#allocation5 + $0x62c] sm:$0xf] }
 0x1c1   :  { %3921 = vmatpush.bf16.msrb.mxu0 %v5062_v61  ;;  %v3695_v60 = vpop.f32.mrf.mxu2  ;;  %v5398_v63 = vor.u32 %v6853_v50, %v5395_v51  ;;  %v5123_v61 = vld [vmem:[#allocation5 + $0x558] sm:$0xf0]  ;;  %v6901_v48 = vld [vmem:[#allocation5 + $0x8ec] sm:$0xf]  ;;  %v4966_v51 = vor.u32 %v6745_v22, %v4963_v25 }
 0x1c2   :  { %3934 = vmatpush.bf16.msrb.mxu1 %v5190_v62  ;;  %v3683_v52 = vadd.f32 %v3682_v44, %v3670_v40  ;;  %v6817_v62 = vld [vmem:[#allocation5 + $0x64c] sm:$0xf]  ;;  %v3708_v1 = vpop.f32.mrf.mxu3  ;;  %v5126_v7 = vor.u32 %v6785_v59, %v5123_v61  ;;  %v5363_v18 = vld [vmem:[#allocation5 + $0x738] sm:$0xf0] }
 0x1c3   :  { %3947 = vmatpush.bf16.msrb.mxu2 %v5318_v57  ;;  %v5251_v57 = vld [vmem:[#allocation5 + $0x658] sm:$0xf0]  ;;  %v5366_v37 = vor.u32 %v6845_v20, %v5363_v18  ;;  %v6841_v44 = vld [vmem:[#allocation5 + $0x70c] sm:$0xf] }
 0x1c4   :  { %3960 = vmatpush.bf16.msrb.mxu3 %v5446_v3  ;;  %v3696_v0 = vadd.f32 %v3695_v60, %v3683_v52  ;;  %v5379_v3 = vld [vmem:[#allocation5 + $0x758] sm:$0xf0]  ;;  %v5254_v8 = vor.u32 %v6817_v62, %v5251_v57  ;;  %v6933_v50 = vld [vmem:[#allocation5 + $0x9ec] sm:$0xf] }
 0x1c5   :  { %3922 = vmatpush.bf16.msrb.mxu0 %v5046_v9  ;;  %v3671_v6 = vpop.f32.mrf.mxu0  ;;  %v6749_v9 = vld [vmem:[#allocation5 + $0x42c] sm:$0xf]  ;;  %v5382_v12 = vor.u32 %v6849_v2, %v5379_v3  ;;  %v5219_v40 = vld [vmem:[#allocation5 + $0x618] sm:$0xf0] }
 0x1c6   :  { %3935 = vmatpush.bf16.msrb.mxu1 %v5174_v10  ;;  %v7476_v5 = vadd.f32 %v3708_v1, %v3696_v0  ;;  %v6781_v10 = vld [vmem:[#allocation5 + $0x52c] sm:$0xf]  ;;  %v4982_v21 = vor.u32 %v6749_v9, %v4979_v14  ;;  %v5587_v49 = vld [vmem:[#allocation5 + $0x8f8] sm:$0xf0]  ;;  %v5222_v55 = vor.u32 %v6809_v38, %v5219_v40 }
 0x1c7   :  { %3948 = vmatpush.bf16.msrb.mxu2 %v5302_v11  ;;  %v3684_v11 = vpop.f32.mrf.mxu1  ;;  %v5715_v52 = vld [vmem:[#allocation5 + $0x9f8] sm:$0xf0]  ;;  %v6897_v57 = vld [vmem:[#allocation5 + $0x8cc] sm:$0xf] }
 0x1c8   :  { %3961 = vmatpush.bf16.msrb.mxu3 %v5430_v16  ;;  %v5235_v16 = vld [vmem:[#allocation5 + $0x638] sm:$0xf0]  ;;  %v5718_v61 = vor.u32 %v6933_v50, %v5715_v52  ;;  %v6929_v1 = vld [vmem:[#allocation5 + $0x9cc] sm:$0xf] }
 0x1c9   :  { %3923 = vmatpush.bf16.msrb.mxu0 %v5030_v27  ;;  %v5110_v27 = vor.u32 %v6781_v10, %v5107_v13  ;;  %v5238_v23 = vor.u32 %v6813_v19, %v5235_v16  ;;  %v3697_v35 = vpop.f32.mrf.mxu2  ;;  %v5971_v59 = vld [vmem:[#allocation5 + $0xbf8] sm:$0xf0]  ;;  %v6893_v11 = vld [vmem:[#allocation5 + $0x8ac] sm:$0xf] }
 0x1ca   :  { %3936 = vmatpush.bf16.msrb.mxu1 %v5158_v28  ;;  %v6777_v28 = vld [vmem:[#allocation5 + $0x50c] sm:$0xf]  ;;  %v3710_v47 = vpop.f32.mrf.mxu3  ;;  %v5571_v0 = vld [vmem:[#allocation5 + $0x8d8] sm:$0xf0]  ;;  %v5974_v2 = vor.u32 %v6997_v56, %v5971_v59 }
 0x1cb   :  { %3949 = vmatpush.bf16.msrb.mxu2 %v5286_v33  ;;  %v5091_v33 = vld [vmem:[#allocation5 + $0x518] sm:$0xf0]  ;;  %v5574_v9 = vor.u32 %v6897_v57, %v5571_v0  ;;  %v6925_v13 = vld [vmem:[#allocation5 + $0x9ac] sm:$0xf] }
 0x1cc   :  { %3962 = vmatpush.bf16.msrb.mxu3 %v5414_v46  ;;  %v5347_v46 = vld [vmem:[#allocation5 + $0x718] sm:$0xf0]  ;;  %v6957_v20 = vld [vmem:[#allocation5 + $0xaac] sm:$0xf] }
 0x1cd   :  { %3924 = vmatpush.bf16.msrb.mxu0 %v5014_v53  ;;  %v6965_v53 = vld [vmem:[#allocation5 + $0xaec] sm:$0xf]  ;;  %v5350_v60 = vor.u32 %v6841_v44, %v5347_v46  ;;  %v5699_v3 = vld [vmem:[#allocation5 + $0x9d8] sm:$0xf0] }
 0x1ce   :  { %3937 = vmatpush.bf16.msrb.mxu1 %v5142_v54  ;;  %v5843_v54 = vld [vmem:[#allocation5 + $0xaf8] sm:$0xf0]  ;;  %v5702_v14 = vor.u32 %v6929_v1, %v5699_v3  ;;  %v6985_v44 = vld [vmem:[#allocation5 + $0xb8c] sm:$0xf] }
 0x1cf   :  { %3950 = vmatpush.bf16.msrb.mxu2 %v5270_v17  ;;  %v5094_v17 = vor.u32 %v6777_v28, %v5091_v33  ;;  %v5846_v62 = vor.u32 %v6965_v53, %v5843_v54  ;;  %v5827_v6 = vld [vmem:[#allocation5 + $0xad8] sm:$0xf0]  ;;  %v6889_v28 = vld [vmem:[#allocation5 + $0x88c] sm:$0xf] }
 0x1d0   :  { %3963 = vmatpush.bf16.msrb.mxu3 %v5398_v63  ;;  %v5590_v63 = vor.u32 %v6901_v48, %v5587_v49  ;;  %v5683_v16 = vld [vmem:[#allocation5 + $0x9b8] sm:$0xf0]  ;;  %v6885_v48 = vld [vmem:[#allocation5 + $0x86c] sm:$0xf] }
 0x1d1   :  { %3925 = vmatpush.bf16.msrb.mxu0 %v4998_v4  ;;  %v6961_v4 = vld [vmem:[#allocation5 + $0xacc] sm:$0xf]  ;;  %v5811_v18 = vld [vmem:[#allocation5 + $0xab8] sm:$0xf0] }
 0x1d2   :  { %3938 = vmatpush.bf16.msrb.mxu1 %v5126_v7  ;;  %v6993_v7 = vld [vmem:[#allocation5 + $0xbcc] sm:$0xf]  ;;  %v5830_v10 = vor.u32 %v6961_v4, %v5827_v6  ;;  %v5939_v22 = vld [vmem:[#allocation5 + $0xbb8] sm:$0xf0] }
 0x1d3   :  { %3951 = vmatpush.bf16.msrb.mxu2 %v5254_v8  ;;  %v5955_v8 = vld [vmem:[#allocation5 + $0xbd8] sm:$0xf0]  ;;  %v6917_v50 = vld [vmem:[#allocation5 + $0x96c] sm:$0xf] }
 0x1d4   :  { %3964 = vmatpush.bf16.msrb.mxu3 %v5382_v12  ;;  %v5555_v12 = vld [vmem:[#allocation5 + $0x8b8] sm:$0xf0]  ;;  %v5958_v19 = vor.u32 %v6993_v7, %v5955_v8  ;;  %v6949_v54 = vld [vmem:[#allocation5 + $0xa6c] sm:$0xf] }
 0x1d5   :  { %3926 = vmatpush.bf16.msrb.mxu0 %v4982_v21  ;;  %v6989_v21 = vld [vmem:[#allocation5 + $0xbac] sm:$0xf]  ;;  %v5558_v25 = vor.u32 %v6893_v11, %v5555_v12  ;;  %v5539_v33 = vld [vmem:[#allocation5 + $0x898] sm:$0xf0] }
 0x1d6   :  { %3939 = vmatpush.bf16.msrb.mxu1 %v5110_v27  ;;  %v5686_v27 = vor.u32 %v6925_v13, %v5683_v16  ;;  %v5942_v38 = vor.u32 %v6989_v21, %v5939_v22  ;;  %v5667_v35 = vld [vmem:[#allocation5 + $0x998] sm:$0xf0]  ;;  %v6913_v57 = vld [vmem:[#allocation5 + $0x94c] sm:$0xf] }
 0x1d7   :  { %3952 = vmatpush.bf16.msrb.mxu2 %v5238_v23  ;;  %v5814_v23 = vor.u32 %v6957_v20, %v5811_v18  ;;  %v5795_v40 = vld [vmem:[#allocation5 + $0xa98] sm:$0xf0]  ;;  %v6945_v3 = vld [vmem:[#allocation5 + $0xa4c] sm:$0xf] }
 0x1d8   :  { %3965 = vmatpush.bf16.msrb.mxu3 %v5366_v37  ;;  %v6953_v37 = vld [vmem:[#allocation5 + $0xa8c] sm:$0xf]  ;;  %v5523_v49 = vld [vmem:[#allocation5 + $0x878] sm:$0xf0] }
 0x1d9   :  { %3927 = vmatpush.bf16.msrb.mxu0 %v4966_v51  ;;  %v7482_v46 = vpop.f32.mrf.mxu0  ;;  %v5798_v47 = vor.u32 %v6953_v37, %v5795_v40  ;;  %v5651_v53 = vld [vmem:[#allocation5 + $0x978] sm:$0xf0]  ;;  %v5526_v59 = vor.u32 %v6885_v48, %v5523_v49  ;;  %v6977_v7 = vld [vmem:[#allocation5 + $0xb4c] sm:$0xf] }
 0x1da   :  { %3940 = vmatpush.bf16.msrb.mxu1 %v5094_v17  ;;  %v7484_v51 = vpop.f32.mrf.mxu1  ;;  %v5779_v17 = vld [vmem:[#allocation5 + $0xa78] sm:$0xf0]  ;;  %v6877_v12 = vld [vmem:[#allocation5 + $0x82c] sm:$0xf] }
 0x1db   :  { %3953 = vmatpush.bf16.msrb.mxu2 %v5222_v55  ;;  %v6981_v55 = vld [vmem:[#allocation5 + $0xb6c] sm:$0xf]  ;;  %v5907_v56 = vld [vmem:[#allocation5 + $0xb78] sm:$0xf0] }
 0x1dc   :  { %3966 = vmatpush.bf16.msrb.mxu3 %v5350_v60  ;;  %3928 = vmatmul.bf16.vlgmr.msrb.gmra.mxu0 %v7381_v42  ;;  %v5923_v42 = vld [vmem:[#allocation5 + $0xb98] sm:$0xf0]  ;;  %v5654_v60 = vor.u32 %v6917_v50, %v5651_v53  ;;  %v5910_v1 = vor.u32 %v6981_v55, %v5907_v56  ;;  %v6941_v21 = vld [vmem:[#allocation5 + $0xa2c] sm:$0xf] }
 0x1dd   :  { %3972 = vmatpush.bf16.msra.mxu0 %v5590_v63  ;;  %3941 = vmatmul.bf16.vlgmr.msrb.gmra.mxu1 %v7385_v45  ;;  %v5926_v52 = vor.u32 %v6985_v44, %v5923_v42  ;;  %v5782_v63 = vor.u32 %v6949_v54, %v5779_v17  ;;  %v5763_v4 = vld [vmem:[#allocation5 + $0xa58] sm:$0xf0]  ;;  %v6937_v40 = vld [vmem:[#allocation5 + $0xa0c] sm:$0xf] }
 0x1de   :  { %3985 = vmatpush.bf16.msra.mxu1 %v5718_v61  ;;  %3954 = vmatmul.bf16.vlgmr.msrb.gmra.mxu2 %v7379_v39  ;;  %v6921_v39 = vld [vmem:[#allocation5 + $0x98c] sm:$0xf]  ;;  %v5891_v8 = vld [vmem:[#allocation5 + $0xb58] sm:$0xf0]  ;;  %v5766_v11 = vor.u32 %v6945_v3, %v5763_v4 }
 0x1df   :  { %3998 = vmatpush.bf16.msra.mxu2 %v5846_v62  ;;  %3967 = vmatmul.bf16.vlgmr.msrb.gmra.mxu3 %v7383_v43  ;;  %v5542_v43 = vor.u32 %v6889_v28, %v5539_v33  ;;  %v5670_v45 = vor.u32 %v6921_v39, %v5667_v35  ;;  %v6881_v61 = vld [vmem:[#allocation5 + $0x84c] sm:$0xf]  ;;  %v5507_v62 = vld [vmem:[#allocation5 + $0x858] sm:$0xf0]  ;;  %v5894_v20 = vor.u32 %v6977_v7, %v5891_v8 }
 0x1e0   :  { %4011 = vmatpush.bf16.msra.mxu3 %v5974_v2  ;;  %v5635_v2 = vld [vmem:[#allocation5 + $0x958] sm:$0xf0]  ;;  %v6873_v28 = vld [vmem:[#allocation5 + $0x80c] sm:$0xf] }
 0x1e1   :  { %3973 = vmatpush.bf16.msra.mxu0 %v5574_v9  ;;  %v7486_v0 = vpop.f32.mrf.mxu2  ;;  %v5510_v9 = vor.u32 %v6881_v61, %v5507_v62  ;;  %v5491_v13 = vld [vmem:[#allocation5 + $0x838] sm:$0xf0]  ;;  %v6905_v35 = vld [vmem:[#allocation5 + $0x90c] sm:$0xf] }
 0x1e2   :  { %3986 = vmatpush.bf16.msra.mxu1 %v5702_v14  ;;  %v7488_v6 = vpop.f32.mrf.mxu3  ;;  %v3723_v14 = vpop.f32.mrf.mxu0  ;;  %v5619_v18 = vld [vmem:[#allocation5 + $0x938] sm:$0xf0]  ;;  %v7029_v49 = vld [vmem:[#allocation5 + $0xcec] sm:$0xf] }
 0x1e3   :  { %3999 = vmatpush.bf16.msra.mxu2 %v5830_v10  ;;  %v5638_v10 = vor.u32 %v6913_v57, %v5635_v2  ;;  %v3736_v16 = vpop.f32.mrf.mxu1  ;;  %v5747_v22 = vld [vmem:[#allocation5 + $0xa38] sm:$0xf0]  ;;  %v7093_v17 = vld [vmem:[#allocation5 + $0xeec] sm:$0xf] }
 0x1e4   :  { %4012 = vmatpush.bf16.msra.mxu3 %v5958_v19  ;;  %v6909_v19 = vld [vmem:[#allocation5 + $0x92c] sm:$0xf]  ;;  %v5475_v33 = vld [vmem:[#allocation5 + $0x818] sm:$0xf0] }
 0x1e5   :  { %3974 = vmatpush.bf16.msra.mxu0 %v5558_v25  ;;  %v6973_v25 = vld [vmem:[#allocation5 + $0xb2c] sm:$0xf]  ;;  %v5622_v39 = vor.u32 %v6909_v19, %v5619_v18  ;;  %v5603_v37 = vld [vmem:[#allocation5 + $0x918] sm:$0xf0]  ;;  %v5478_v53 = vor.u32 %v6873_v28, %v5475_v33 }
 0x1e6   :  { %3987 = vmatpush.bf16.msra.mxu1 %v5686_v27  ;;  %v5875_v27 = vld [vmem:[#allocation5 + $0xb38] sm:$0xf0]  ;;  %v5606_v56 = vor.u32 %v6905_v35, %v5603_v37  ;;  %v7025_v2 = vld [vmem:[#allocation5 + $0xccc] sm:$0xf] }
 0x1e7   :  { %4000 = vmatpush.bf16.msra.mxu2 %v5814_v23  ;;  %v5494_v23 = vor.u32 %v6877_v12, %v5491_v13  ;;  %v5878_v42 = vor.u32 %v6973_v25, %v5875_v27  ;;  %v6099_v50 = vld [vmem:[#allocation5 + $0xcf8] sm:$0xf0]  ;;  %v7057_v4 = vld [vmem:[#allocation5 + $0xdcc] sm:$0xf] }
 0x1e8   :  { %4013 = vmatpush.bf16.msra.mxu3 %v5942_v38  ;;  %v5750_v38 = vor.u32 %v6941_v21, %v5747_v22  ;;  %v6227_v54 = vld [vmem:[#allocation5 + $0xdf8] sm:$0xf0]  ;;  %v6102_v62 = vor.u32 %v7029_v49, %v6099_v50  ;;  %v7021_v16 = vld [vmem:[#allocation5 + $0xcac] sm:$0xf] }
 0x1e9   :  { %3975 = vmatpush.bf16.msra.mxu0 %v5542_v43  ;;  %v3749_v44 = vpop.f32.mrf.mxu2  ;;  %v5731_v43 = vld [vmem:[#allocation5 + $0xa18] sm:$0xf0]  ;;  %v7053_v18 = vld [vmem:[#allocation5 + $0xdac] sm:$0xf] }
 0x1ea   :  { %3988 = vmatpush.bf16.msra.mxu1 %v5670_v45  ;;  %v6969_v45 = vld [vmem:[#allocation5 + $0xb0c] sm:$0xf]  ;;  %v3762_v48 = vpop.f32.mrf.mxu3  ;;  %v6355_v55 = vld [vmem:[#allocation5 + $0xef8] sm:$0xf0] }
 0x1eb   :  { %4001 = vmatpush.bf16.msra.mxu2 %v5798_v47  ;;  %v5859_v47 = vld [vmem:[#allocation5 + $0xb18] sm:$0xf0]  ;;  %v7085_v25 = vld [vmem:[#allocation5 + $0xeac] sm:$0xf] }
 0x1ec   :  { %4014 = vmatpush.bf16.msra.mxu3 %v5926_v52  ;;  %v7061_v52 = vld [vmem:[#allocation5 + $0xdec] sm:$0xf]  ;;  %v5862_v61 = vor.u32 %v6969_v45, %v5859_v47  ;;  %v6083_v3 = vld [vmem:[#allocation5 + $0xcd8] sm:$0xf0] }
 0x1ed   :  { %3976 = vmatpush.bf16.msra.mxu0 %v5526_v59  ;;  %v5734_v59 = vor.u32 %v6937_v40, %v5731_v43  ;;  %v6230_v57 = vor.u32 %v7061_v52, %v6227_v54  ;;  %v6211_v8 = vld [vmem:[#allocation5 + $0xdd8] sm:$0xf0]  ;;  %v6086_v12 = vor.u32 %v7025_v2, %v6083_v3  ;;  %v7017_v35 = vld [vmem:[#allocation5 + $0xc8c] sm:$0xf] }
 0x1ee   :  { %3989 = vmatpush.bf16.msra.mxu1 %v5654_v60  ;;  %v7125_v60 = vld [vmem:[#allocation5 + $0xfec] sm:$0xf]  ;;  %v6339_v14 = vld [vmem:[#allocation5 + $0xed8] sm:$0xf0]  ;;  %v6214_v13 = vor.u32 %v7057_v4, %v6211_v8 }
 0x1ef   :  { %4002 = vmatpush.bf16.msra.mxu2 %v5782_v63  ;;  %v6483_v63 = vld [vmem:[#allocation5 + $0xff8] sm:$0xf0]  ;;  %v7049_v37 = vld [vmem:[#allocation5 + $0xd8c] sm:$0xf] }
 0x1f0   :  { %4015 = vmatpush.bf16.msra.mxu3 %v5910_v1  ;;  %v6358_v1 = vor.u32 %v7093_v17, %v6355_v55  ;;  %v6486_v7 = vor.u32 %v7125_v60, %v6483_v63  ;;  %v6195_v22 = vld [vmem:[#allocation5 + $0xdb8] sm:$0xf0]  ;;  %v7013_v50 = vld [vmem:[#allocation5 + $0xc6c] sm:$0xf] }
 0x1f1   :  { %3977 = vmatpush.bf16.msra.mxu0 %v5510_v9  ;;  %v7089_v9 = vld [vmem:[#allocation5 + $0xecc] sm:$0xf]  ;;  %v6323_v27 = vld [vmem:[#allocation5 + $0xeb8] sm:$0xf0] }
 0x1f2   :  { %3990 = vmatpush.bf16.msra.mxu1 %v5638_v10  ;;  %v7121_v10 = vld [vmem:[#allocation5 + $0xfcc] sm:$0xf]  ;;  %v6342_v19 = vor.u32 %v7089_v9, %v6339_v14  ;;  %v6451_v28 = vld [vmem:[#allocation5 + $0xfb8] sm:$0xf0] }
 0x1f3   :  { %4003 = vmatpush.bf16.msra.mxu2 %v5766_v11  ;;  %v6467_v11 = vld [vmem:[#allocation5 + $0xfd8] sm:$0xf0]  ;;  %v7077_v55 = vld [vmem:[#allocation5 + $0xe6c] sm:$0xf] }
 0x1f4   :  { %4016 = vmatpush.bf16.msra.mxu3 %v5894_v20  ;;  %v6067_v20 = vld [vmem:[#allocation5 + $0xcb8] sm:$0xf0]  ;;  %v6470_v21 = vor.u32 %v7121_v10, %v6467_v11  ;;  %v7041_v2 = vld [vmem:[#allocation5 + $0xd4c] sm:$0xf] }
 0x1f5   :  { %3978 = vmatpush.bf16.msra.mxu0 %v5494_v23  ;;  %v7117_v23 = vld [vmem:[#allocation5 + $0xfac] sm:$0xf]  ;;  %v6070_v33 = vor.u32 %v7021_v16, %v6067_v20  ;;  %v6179_v44 = vld [vmem:[#allocation5 + $0xd98] sm:$0xf0] }
 0x1f6   :  { %3991 = vmatpush.bf16.msra.mxu1 %v5622_v39  ;;  %v6198_v39 = vor.u32 %v7053_v18, %v6195_v22  ;;  %v6454_v40 = vor.u32 %v7117_v23, %v6451_v28  ;;  %v6435_v45 = vld [vmem:[#allocation5 + $0xf98] sm:$0xf0]  ;;  %v6182_v48 = vor.u32 %v7049_v37, %v6179_v44  ;;  %v7073_v8 = vld [vmem:[#allocation5 + $0xe4c] sm:$0xf] }
 0x1f7   :  { %4004 = vmatpush.bf16.msra.mxu2 %v5750_v38  ;;  %v6326_v38 = vor.u32 %v7085_v25, %v6323_v27  ;;  %v6035_v52 = vld [vmem:[#allocation5 + $0xc78] sm:$0xf0]  ;;  %v7105_v10 = vld [vmem:[#allocation5 + $0xf4c] sm:$0xf] }
 0x1f8   :  { %4017 = vmatpush.bf16.msra.mxu3 %v5878_v42  ;;  %v7081_v42 = vld [vmem:[#allocation5 + $0xe8c] sm:$0xf]  ;;  %v6163_v17 = vld [vmem:[#allocation5 + $0xd78] sm:$0xf0]  ;;  %v6038_v63 = vor.u32 %v7013_v50, %v6035_v52 }
 0x1f9   :  { %3979 = vmatpush.bf16.msra.mxu0 %v5478_v53  ;;  %v7494_v43 = vpop.f32.mrf.mxu0  ;;  %v7045_v53 = vld [vmem:[#allocation5 + $0xd6c] sm:$0xf]  ;;  %v6419_v60 = vld [vmem:[#allocation5 + $0xf78] sm:$0xf0] }
 0x1fa   :  { %3992 = vmatpush.bf16.msra.mxu1 %v5606_v56  ;;  %v7496_v47 = vpop.f32.mrf.mxu1  ;;  %v6291_v56 = vld [vmem:[#allocation5 + $0xe78] sm:$0xf0]  ;;  %v7037_v25 = vld [vmem:[#allocation5 + $0xd2c] sm:$0xf] }
 0x1fb   :  { %4005 = vmatpush.bf16.msra.mxu2 %v5734_v59  ;;  %v7109_v59 = vld [vmem:[#allocation5 + $0xf6c] sm:$0xf]  ;;  %v6275_v9 = vld [vmem:[#allocation5 + $0xe58] sm:$0xf0] }
 0x1fc   :  { %4018 = vmatpush.bf16.msra.mxu3 %v5862_v61  ;;  %3980 = vmatmul.bf16.vlgmr.msra.gmra.mxu0 %v7391_v26  ;;  %v6051_v26 = vld [vmem:[#allocation5 + $0xc98] sm:$0xf0]  ;;  %v6166_v61 = vor.u32 %v7045_v53, %v6163_v17  ;;  %v6422_v3 = vor.u32 %v7109_v59, %v6419_v60  ;;  %v6278_v18 = vor.u32 %v7073_v8, %v6275_v9  ;;  %v7069_v28 = vld [vmem:[#allocation5 + $0xe2c] sm:$0xf] }
 0x1fd   :  { %4024 = vmatpush.bf16.msrb.mxu0 %v6102_v62  ;;  %3993 = vmatmul.bf16.vlgmr.msra.gmra.mxu1 %v7395_v31  ;;  %v7113_v31 = vld [vmem:[#allocation5 + $0xf8c] sm:$0xf]  ;;  %v6294_v62 = vor.u32 %v7077_v55, %v6291_v56  ;;  %v6403_v11 = vld [vmem:[#allocation5 + $0xf58] sm:$0xf0] }
 0x1fe   :  { %4037 = vmatpush.bf16.msrb.mxu1 %v6230_v57  ;;  %4006 = vmatmul.bf16.vlgmr.msra.gmra.mxu2 %v7393_v30  ;;  %v6307_v30 = vld [vmem:[#allocation5 + $0xe98] sm:$0xf0]  ;;  %v6438_v54 = vor.u32 %v7113_v31, %v6435_v45  ;;  %v7009_v57 = vld [vmem:[#allocation5 + $0xc4c] sm:$0xf]  ;;  %v6406_v27 = vor.u32 %v7105_v10, %v6403_v11 }
 0x1ff   :  { %4050 = vmatpush.bf16.msrb.mxu2 %v6358_v1  ;;  %4019 = vmatmul.bf16.vlgmr.msra.gmra.mxu3 %v7397_v34  ;;  %v6054_v34 = vor.u32 %v7017_v35, %v6051_v26  ;;  %v6310_v49 = vor.u32 %v7081_v42, %v6307_v30  ;;  %v6019_v1 = vld [vmem:[#allocation5 + $0xc58] sm:$0xf0]  ;;  %v7001_v37 = vld [vmem:[#allocation5 + $0xc0c] sm:$0xf] }
 0x200   :  { %4063 = vmatpush.bf16.msrb.mxu3 %v6486_v7  ;;  %v6147_v7 = vld [vmem:[#allocation5 + $0xd58] sm:$0xf0]  ;;  %v7033_v44 = vld [vmem:[#allocation5 + $0xd0c] sm:$0xf] }
 0x201   :  { %4025 = vmatpush.bf16.msrb.mxu0 %v6086_v12  ;;  %v7498_v4 = vpop.f32.mrf.mxu2  ;;  %v3775_v12 = vpop.f32.mrf.mxu0  ;;  %v6150_v20 = vor.u32 %v7041_v2, %v6147_v7  ;;  %v6003_v22 = vld [vmem:[#allocation5 + $0xc38] sm:$0xf0]  ;;  %v7065_v31 = vld [vmem:[#allocation5 + $0xe0c] sm:$0xf] }
 0x202   :  { %4038 = vmatpush.bf16.msrb.mxu1 %v6214_v13  ;;  %v7500_v14 = vpop.f32.mrf.mxu3  ;;  %v3722_v13 = vadd.f32 %v7482_v46, %v7476_v5  ;;  %v3788_v16 = vpop.f32.mrf.mxu1  ;;  %v6131_v23 = vld [vmem:[#allocation5 + $0xd38] sm:$0xf0] }
 0x203   :  { %4051 = vmatpush.bf16.msrb.mxu2 %v6342_v19  ;;  %v6022_v19 = vor.u32 %v7009_v57, %v6019_v1  ;;  %v6134_v46 = vor.u32 %v7037_v25, %v6131_v23  ;;  %v6115_v30 = vld [vmem:[#allocation5 + $0xd18] sm:$0xf0]  ;;  %v7141_v57 = vld [vmem:[%s7620_s3 + $0x68] sm:$0xff]  ;;  %v7138_v16 = vld [vmem:[%s7620_s3 + $0x50] sm:$0xff] }
 0x204   :  { %4064 = vmatpush.bf16.msrb.mxu3 %v6470_v21  ;;  %v7005_v21 = vld [vmem:[#allocation5 + $0xc2c] sm:$0xf]  ;;  %v3735_v35 = vadd.f32 %v7484_v51, %v3722_v13  ;;  %v6243_v45 = vld [vmem:[#allocation5 + $0xe18] sm:$0xf0]  ;;  %v6118_v53 = vor.u32 %v7033_v44, %v6115_v30 }
 0x205   :  { %4026 = vmatpush.bf16.msrb.mxu0 %v6070_v33  ;;  %v6259_v33 = vld [vmem:[#allocation5 + $0xe38] sm:$0xf0]  ;;  %v6006_v5 = vor.u32 %v7005_v21, %v6003_v22  ;;  %v7130_v13 = vld [vmem:[%s7620_s3 + $0x10] sm:$0xff]  ;;  %v7129_v21 = vld [vmem:[%s7620_s3 + $0x8] sm:$0xff] }
 0x206   :  { %4039 = vmatpush.bf16.msrb.mxu1 %v6198_v39  ;;  %v7101_v39 = vld [vmem:[#allocation5 + $0xf2c] sm:$0xf]  ;;  %v6262_v26 = vor.u32 %v7069_v28, %v6259_v33  ;;  %v3748_v51 = vadd.f32 %v7486_v0, %v3735_v35  ;;  %v7135_v55 = vld [vmem:[%s7620_s3 + $0x38] sm:$0xff]  ;;  %v7140_v1 = vld [vmem:[%s7620_s3 + $0x60] sm:$0xff] }
 0x207   :  { %4052 = vmatpush.bf16.msrb.mxu2 %v6326_v38  ;;  %v6387_v38 = vld [vmem:[#allocation5 + $0xf38] sm:$0xf0]  ;;  %v7137_v22 = vld [vmem:[%s7620_s3 + $0x48] sm:$0xff] }
 0x208   :  { %4065 = vmatpush.bf16.msrb.mxu3 %v6454_v40  ;;  %v5987_v40 = vld [vmem:[#allocation5 + $0xc18] sm:$0xf0]  ;;  %v6390_v42 = vor.u32 %v7101_v39, %v6387_v38  ;;  %v3761_v59 = vadd.f32 %v7488_v6, %v3748_v51  ;;  %v7150_v6 = vld [vmem:[%s7620_s3 + $0xb0] sm:$0xff]  ;;  %v7145_v25 = vld [vmem:[%s7620_s3 + $0x88] sm:$0xff]  ;;  %v4076_v39 = vmax.f32 %v7440_v41, 0.0  ;;  %v623_v41 = vperm.slane %v7473_v15, 3 }
 0x209   :  { %4027 = vmatpush.bf16.msrb.mxu0 %v6054_v34  ;;  %v3801_v34 = vpop.f32.mrf.mxu2  ;;  %v5990_v52 = vor.u32 %v7001_v37, %v5987_v40  ;;  %v7143_v56 = vld [vmem:[%s7620_s3 + $0x78] sm:$0xff]  ;;  %v7148_v2 = vld [vmem:[%s7620_s3 + $0xa0] sm:$0xff] }
 0x20a   :  { %4040 = vmatpush.bf16.msrb.mxu1 %v6182_v48  ;;  %v7097_v48 = vld [vmem:[#allocation5 + $0xf0c] sm:$0xf]  ;;  %v3814_v50 = vpop.f32.mrf.mxu3  ;;  %v7151_v0 = vld [vmem:[%s7620_s3 + $0xb8] sm:$0xff]  ;;  %v3774_v60 = vadd.f32 %v7494_v43, %v3761_v59  ;;  %v7128_v33 = vld [vmem:[%s7620_s3] sm:$0xff] }
 0x20b   :  { %4053 = vmatpush.bf16.msrb.mxu2 %v6310_v49  ;;  %v6371_v49 = vld [vmem:[#allocation5 + $0xf18] sm:$0xf0]  ;;  %v7158_v59 = vld [vmem:[%s7620_s3 + $0xf0] sm:$0xff] }
 0x20c   :  { %4066 = vmatpush.bf16.msrb.mxu3 %v6438_v54  ;;  %v6246_v54 = vor.u32 %v7065_v31, %v6243_v45  ;;  %v6374_v17 = vor.u32 %v7097_v48, %v6371_v49  ;;  %v3787_v43 = vadd.f32 %v7496_v47, %v3774_v60  ;;  %v7131_v7 = vld [vmem:[%s7620_s3 + $0x18] sm:$0xff]  ;;  %v7136_v38 = vld [vmem:[%s7620_s3 + $0x40] sm:$0xff] }
 0x20d   :  { %4028 = vmatpush.bf16.msrb.mxu0 %v6038_v63  ;;  %v7134_v63 = vld [vmem:[%s7620_s3 + $0x30] sm:$0xff]  ;;  %v7139_v8 = vld [vmem:[%s7620_s3 + $0x58] sm:$0xff]  ;;  %v7144_v35 = vld [vmem:[%s7620_s3 + $0x80] sm:$0xff] }
 0x20e   :  { %4041 = vmatpush.bf16.msrb.mxu1 %v6166_v61  ;;  %v7142_v61 = vld [vmem:[%s7620_s3 + $0x70] sm:$0xff]  ;;  %v7147_v9 = vld [vmem:[%s7620_s3 + $0x98] sm:$0xff] }
 0x20f   :  { %4054 = vmatpush.bf16.msrb.mxu2 %v6294_v62  ;;  %v7133_v62 = vld [vmem:[%s7620_s3 + $0x28] sm:$0xff]  ;;  %v7159_v15 = vld [vmem:[%s7620_s3 + $0xf8] sm:$0xff] }
 0x210   :  { %4067 = vmatpush.bf16.msrb.mxu3 %v6422_v3 }
 0x211   :  { %4029 = vmatpush.bf16.msrb.mxu0 %v6022_v19 }
 0x212   :  { %4042 = vmatpush.bf16.msrb.mxu1 %v6150_v20  ;;  %v7146_v20 = vld [vmem:[%s7620_s3 + $0x90] sm:$0xff] }
 0x213   :  { %4055 = vmatpush.bf16.msrb.mxu2 %v6278_v18 }
 0x214   :  { %4068 = vmatpush.bf16.msrb.mxu3 %v6406_v27 }
 0x215   :  { %4030 = vmatpush.bf16.msrb.mxu0 %v6006_v5  ;;  %v4077_v5 = vmax.f32 %v7467_v58, 0.0 }
 0x216   :  { %4043 = vmatpush.bf16.msrb.mxu1 %v6134_v46 }
 0x217   :  { %4056 = vmatpush.bf16.msrb.mxu2 %v6262_v26  ;;  %v4080_v26 = vpack.c.bf16 %v4076_v39, %v4076_v39  ;;  %v4081_v37 = vpack.c.bf16 %v4077_v5, %v4077_v5  ;;  %v7167_v5 = vld [vmem:[#allocation8] ss:$0 sm:$0xff] }
 0x218   :  { %4069 = vmatpush.bf16.msrb.mxu3 %v6390_v42 }
 0x219   :  { %4031 = vmatpush.bf16.msrb.mxu0 %v5990_v52 }
 0x21a   :  { %4044 = vmatpush.bf16.msrb.mxu1 %v6118_v53  ;;  %v3838_v47 = vpop.f32.mrf.mxu1 }
 0x21b   :  { %4057 = vmatpush.bf16.msrb.mxu2 %v6246_v54 }
 0x21c   :  { %4070 = vmatpush.bf16.msrb.mxu3 %v6374_v17  ;;  %4032 = vmatmul.bf16.vlgmr.msrb.gmra.mxu0 %v7403_v24  ;;  %v7149_v24 = vld [vmem:[%s7620_s3 + $0xa8] sm:$0xff] }
 0x21d   :  { %4344 = vmatpush.bf16.msra.mxu0 %v7135_v55  ;;  %4045 = vmatmul.bf16.vlgmr.msrb.gmra.mxu1 %v7407_v32  ;;  %v3825_v32 = vpop.f32.mrf.mxu0 }
 0x21e   :  { %4357 = vmatpush.bf16.msra.mxu1 %v7143_v56  ;;  %4058 = vmatmul.bf16.vlgmr.msrb.gmra.mxu2 %v7405_v29  ;;  %v3800_v29 = vadd.f32 %v7498_v4, %v3787_v43  ;;  %v7155_v43 = vld [vmem:[%s7620_s3 + $0xd8] sm:$0xff] }
 0x21f   :  { %4370 = vmatpush.bf16.msra.mxu2 %v7151_v0  ;;  %4071 = vmatmul.bf16.vlgmr.msrb.gmra.mxu3 %v7409_v36  ;;  %v7132_v36 = vld [vmem:[%s7620_s3 + $0x20] sm:$0xff] }
 0x220   :  { %v3813_v3 = vadd.f32 %v7500_v14, %v3800_v29  ;;  %4383 = vmatpush.bf16.msra.mxu3 %v7159_v15  ;;  %v7153_v29 = vld [vmem:[%s7620_s3 + $0xc8] sm:$0xff] }
 0x221   :  { %4345 = vmatpush.bf16.msra.mxu0 %v7134_v63  ;;  %v3851_v10 = vpop.f32.mrf.mxu2  ;;  %v7157_v63 = vld [vmem:[%s7620_s3 + $0xe8] sm:$0xff] }
 0x222   :  { %4358 = vmatpush.bf16.msra.mxu1 %v7142_v61  ;;  %v3826_v4 = vadd.f32 %v3825_v32, %v3813_v3  ;;  %v3864_v11 = vpop.f32.mrf.mxu3  ;;  %v3840_v19 = vpop.f32.mrf.mxu1  ;;  %v7152_v3 = vld [vmem:[%s7620_s3 + $0xc0] sm:$0xff] }
 0x223   :  { %4371 = vmatpush.bf16.msra.mxu2 %v7150_v6  ;;  %v7156_v6 = vld [vmem:[%s7620_s3 + $0xe0] sm:$0xff] }
 0x224   :  { %v3839_v14 = vadd.f32 %v3838_v47, %v3826_v4  ;;  %4384 = vmatpush.bf16.msra.mxu3 %v7158_v59 }
 0x225   :  { %4346 = vmatpush.bf16.msra.mxu0 %v7133_v62  ;;  %v3827_v12 = vpop.f32.mrf.mxu0 }
 0x226   :  { %4359 = vmatpush.bf16.msra.mxu1 %v7141_v57  ;;  %v3852_v18 = vadd.f32 %v3851_v10, %v3839_v14 }
 0x227   :  { %4372 = vmatpush.bf16.msra.mxu2 %v7149_v24  ;;  %v7154_v24 = vld [vmem:[%s7620_s3 + $0xd0] sm:$0xff] }
 0x228   :  { %v3865_v27 = vadd.f32 %v3864_v11, %v3852_v18  ;;  %4385 = vmatpush.bf16.msra.mxu3 %v7157_v63 }
 0x229   :  { %4347 = vmatpush.bf16.msra.mxu0 %v7132_v36  ;;  %v3853_v23 = vpop.f32.mrf.mxu2 }
 0x22a   :  { %4360 = vmatpush.bf16.msra.mxu1 %v7140_v1  ;;  %v3866_v28 = vpop.f32.mrf.mxu3  ;;  %v4078_v46 = vmax.f32 %v3865_v27, 0.0 }
 0x22b   :  { %4373 = vmatpush.bf16.msra.mxu2 %v7148_v2 }
 0x22c   :  { %v4082_v40 = vpack.c.bf16 %v4078_v46, %v4078_v46  ;;  %4386 = vmatpush.bf16.msra.mxu3 %v7156_v6 }
 0x22d   :  { %4348 = vmatpush.bf16.msra.mxu0 %v7131_v7 }
 0x22e   :  { %4361 = vmatpush.bf16.msra.mxu1 %v7139_v8 }
 0x22f   :  { %4374 = vmatpush.bf16.msra.mxu2 %v7147_v9 }
 0x230   :  { %4387 = vmatpush.bf16.msra.mxu3 %v7155_v43 }
 0x231   :  { %4349 = vmatpush.bf16.msra.mxu0 %v7130_v13 }
 0x232   :  { %4362 = vmatpush.bf16.msra.mxu1 %v7138_v16 }
 0x233   :  { %4375 = vmatpush.bf16.msra.mxu2 %v7146_v20 }
 0x234   :  { %4388 = vmatpush.bf16.msra.mxu3 %v7154_v24 }
 0x235   :  { %4350 = vmatpush.bf16.msra.mxu0 %v7129_v21 }
 0x236   :  { %4363 = vmatpush.bf16.msra.mxu1 %v7137_v22 }
 0x237   :  { %4376 = vmatpush.bf16.msra.mxu2 %v7145_v25 }
 0x238   :  { %4389 = vmatpush.bf16.msra.mxu3 %v7153_v29 }
 0x239   :  { %4351 = vmatpush.bf16.msra.mxu0 %v7128_v33  ;;  %v3877_v44 = vpop.f32.mrf.mxu0 }
 0x23a   :  { %4364 = vmatpush.bf16.msra.mxu1 %v7136_v38  ;;  %v3878_v42 = vadd.f32 %v3877_v44, %v623_v41  ;;  %v3890_v30 = vpop.f32.mrf.mxu1 }
 0x23b   :  { %4377 = vmatpush.bf16.msra.mxu2 %v7144_v35 }
 0x23c   :  { %4352 = vmatmul.bf16.vlgmr.msra.gmra.mxu0 %v4080_v26  ;;  %v3891_v31 = vadd.f32 %v3890_v30, %v3878_v42  ;;  %4390 = vmatpush.bf16.msra.mxu3 %v7152_v3 }
 0x23d   :  { %4365 = vmatmul.bf16.vlgmr.msra.gmra.mxu1 %v4081_v37 }
 0x23e   :  { %4378 = vmatmul.bf16.vlgmr.msra.gmra.mxu2 %v4082_v40 }
 0x241   :  { %v3903_v45 = vpop.f32.mrf.mxu2  ;;  %v3879_v49 = vpop.f32.mrf.mxu0 }
 0x242   :  { %v3904_v34 = vadd.f32 %v3903_v45, %v3891_v31  ;;  %v3916_v48 = vpop.f32.mrf.mxu3  ;;  %v3892_v50 = vpop.f32.mrf.mxu1 }
 0x244   :  { %v3917_v58 = vadd.f32 %v3916_v48, %v3904_v34  ;;  %v7168_v48 = vld [vmem:[#allocation10] ss:$0 sm:$0xff] }
 0x249   :  { %v3905_v51 = vpop.f32.mrf.mxu2 }
 0x24a   :  { %v3918_v52 = vpop.f32.mrf.mxu3 }
 0x24b   :  { %v7169_v52 = vld [vmem:[#allocation2] ss:$0 sm:$0xff] }
 0x259   :  { %v3929_v53 = vpop.f32.mrf.mxu0 }
 0x25a   :  { %v3942_v54 = vpop.f32.mrf.mxu1  ;;  %v3930_v32 = vadd.f32 %v3929_v53, %v3917_v58 }
 0x25c   :  { %v3943_v4 = vadd.f32 %v3942_v54, %v3930_v32 }
 0x261   :  { %v3955_v17 = vpop.f32.mrf.mxu2  ;;  %v3931_v56 = vpop.f32.mrf.mxu0 }
 0x262   :  { %v3968_v55 = vpop.f32.mrf.mxu3  ;;  %v3944_v0 = vpop.f32.mrf.mxu1  ;;  %v3956_v7 = vadd.f32 %v3955_v17, %v3943_v4 }
 0x264   :  { %v3969_v10 = vadd.f32 %v3968_v55, %v3956_v7 }
 0x269   :  { %v3957_v60 = vpop.f32.mrf.mxu2 }
 0x26a   :  { %v3970_v61 = vpop.f32.mrf.mxu3 }
 0x279   :  { %v3981_v62 = vpop.f32.mrf.mxu0 }
 0x27a   :  { %v3994_v57 = vpop.f32.mrf.mxu1  ;;  %v3982_v11 = vadd.f32 %v3981_v62, %v3969_v10 }
 0x27c   :  { %v3995_v12 = vadd.f32 %v3994_v57, %v3982_v11 }
 0x281   :  { %v4007_v36 = vpop.f32.mrf.mxu2  ;;  %v3983_v1 = vpop.f32.mrf.mxu0 }
 0x282   :  { %v4020_v47 = vpop.f32.mrf.mxu3  ;;  %v3996_v2 = vpop.f32.mrf.mxu1  ;;  %v4008_v14 = vadd.f32 %v4007_v36, %v3995_v12 }
 0x284   :  { %v4021_v13 = vadd.f32 %v4020_v47, %v4008_v14 }
 0x289   :  { %v4009_v8 = vpop.f32.mrf.mxu2 }
 0x28a   :  { %v4022_v9 = vpop.f32.mrf.mxu3 }
 0x299   :  { %v4033_v19 = vpop.f32.mrf.mxu0 }
 0x29a   :  { %v4046_v16 = vpop.f32.mrf.mxu1  ;;  %v4034_v20 = vadd.f32 %v4033_v19, %v4021_v13 }
 0x29c   :  { %v4047_v18 = vadd.f32 %v4046_v16, %v4034_v20 }
 0x2a1   :  { %v4059_v21 = vpop.f32.mrf.mxu2  ;;  %v4035_v27 = vpop.f32.mrf.mxu0 }
 0x2a2   :  { %v4072_v22 = vpop.f32.mrf.mxu3  ;;  %v4060_v25 = vadd.f32 %v4059_v21, %v4047_v18  ;;  %v4048_v23 = vpop.f32.mrf.mxu1 }
 0x2a4   :  { %v4073_v28 = vadd.f32 %v4072_v22, %v4060_v25 }
 0x2a6   :  { %v4079_v33 = vmax.f32 %v4073_v28, 0.0 }
 0x2a8   :  { %v4083_v39 = vpack.c.bf16 %v4079_v33, %v4079_v33 }
 0x2a9   :  { %v4061_v38 = vpop.f32.mrf.mxu2 }
 0x2aa   :  { %v4074_v35 = vpop.f32.mrf.mxu3  ;;  %4391 = vmatmul.bf16.vlgmr.msra.gmra.mxu3 %v4083_v39 }
 0x2b9   :  { %v4353_v46 = vpop.f32.mrf.mxu0 }
 0x2ba   :  { %v4354_v26 = vadd.f32 %v7167_v5, %v4353_v46  ;;  %v4366_v37 = vpop.f32.mrf.mxu1 }
 0x2bc   :  { %v4367_v40 = vadd.f32 %v4366_v37, %v4354_v26 }
 0x2c1   :  { %v4379_v41 = vpop.f32.mrf.mxu2  ;;  %v4355_v42 = vpop.f32.mrf.mxu0 }
 0x2c2   :  { %v4380_v44 = vadd.f32 %v4379_v41, %v4367_v40  ;;  %v4368_v30 = vpop.f32.mrf.mxu1 }
 0x2c9   :  { %v4381_v31 = vpop.f32.mrf.mxu2 }
 0x32d   :  { %v4392_v45 = vpop.f32.mrf.mxu3 }
 0x32e   :  { %v4393_v34 = vadd.f32 %v4392_v45, %v4380_v44 }
 0x330   :  { %v4396_v58 = vmax.f32 %v4393_v34, 0.0 }
 0x332   :  { %v4401_v49 = vmul.f32 %v7168_v48, %v4396_v58 }
 0x334   :  { %v4403_v50 = vsel %vm4402_vm0, %v4401_v49, 0.0 }
 0x335   :  { %v4394_v51 = vpop.f32.mrf.mxu3  ;;  %4404 = vadd.xlane.f32.xlu0 %v4403_v50 }
 0x3a8   :  { %v4405_v53 = vpop.xlane.xlu0 %4404 }
 0x3a9   :  { %v4410_v54 = vadd.f32 %v7169_v52, %v4405_v53 }
 0x3ab   :  { %v6615_v17 = vmul.f32 -1.442695, %v4410_v54 }
 0x3ad   :  { %7170 = vpow2.f32 %v6615_v17 }
 0x3b3   :  { %v7171_v55 = vpop.eup %7170 }
 0x3b4   :  { %v4414_v15 = vadd.f32 1.0, %v7171_v55 }
 0x3b6   :  { %7172 = vrcp.f32 %v4414_v15  ;;  %v4426_v60 = vand.u32 2147483648, %v4414_v15  ;;  %v4424_v61 = vand.u32 2147483647, %v4414_v15  ;;  %vm4420_vm2 = vweird.f32 %v4414_v15 }
 0x3b8   :  { %v4427_v43 = vor.u32 1.1754944e-38, %v4426_v60  ;;  %vm4425_vm5 = vcmp.eq.f32.partialorder %v4424_v61, 8.507059e+37 }
 0x3bc   :  { %v7173_v56 = vpop.eup %7172 }
 0x3bd   :  { %v4416_v0 = vmul.f32 %v7173_v56, %v4414_v15  ;;  %vm4421_vm1 = vweird.f32 %v7173_v56 }
 0x3be   :  { %vm4422_vm3 = vmor %vm4420_vm2, %vm4421_vm1 }
 0x3bf   :  { %v4417_v59 = vsub.f32 1.0, %v4416_v0 }
 0x3c1   :  { %v4418_v63 = vmul.f32 %v7173_v56, %v4417_v59 }
 0x3c3   :  { %v4419_v6 = vadd.f32 %v7173_v56, %v4418_v63 }
 0x3c5   :  { %v4423_v62 = vsel %vm4422_vm3, %v7173_v56, %v4419_v6 }
 0x3c6   :  { %v4428_v57 = vsel %vm4425_vm5, %v4427_v43, %v4423_v62 }
 0x3c7   :  { %4431 = vst.msk [vmem:[%s7624_s7] sm:$0xff] %vm4430_vm4, %v4428_v57 }
 0x3c8   :  { %4436 = vsyncpa [#allocation4], 1 }
 0x3c9   :  { %4437 = vsyncpa [#allocation6], 1 }
 0x3ca   :  { %4438 = vsyncpa [#allocation9], 1 }

</bundles_post_ra>
